<compile_context>
chip_gen: v6e
topology: v6e:2x2x1
jax: 0.10.0
libtpu: 0.0.40
codegen_flags: <defaults>
</compile_context>

<pallas_src>
import functools

import numpy as np
import jax
import jax.numpy as jnp
from jax.experimental import pallas as pl
from jax.experimental.pallas import tpu as pltpu

_CIN_PAD = 8  # conv1 input channels padded 3 -> 8 so layer-1 K = 16*8 = 128 exactly


# --------------------- tap-selection ("in-kernel im2col") -------------------- #

@functools.lru_cache(maxsize=None)
def _tap_select_matrices(s_in):
    """0/1 gather matrices for a 4x4 / stride-2 / pad-1 conv on an s_in x s_in map.

    Returns (16, s_out*s_out, s_in*s_in).  Block t = kh*4+kw maps raster input
    pixels to the tap-(kh,kw) read of every output pixel; taps that fall in the
    zero-padding ring are all-zero rows, folding the conv padding into the matmul.
    """
    s_out = s_in // 2
    a = np.zeros((16, s_out * s_out, s_in * s_in), np.float32)
    for kh in range(4):
        for kw in range(4):
            t = kh * 4 + kw
            for oh in range(s_out):
                for ow in range(s_out):
                    ih, iw = 2 * oh + kh - 1, 2 * ow + kw - 1
                    if 0 <= ih < s_in and 0 <= iw < s_in:
                        a[t, oh * s_out + ow, ih * s_in + iw] = 1.0
    return a


# ------------------------------- fused kernel -------------------------------- #

def _fused_disc_kernel(x_ref, a0_ref, w1_ref, a1_ref, w2_ref, b2_ref,
                       a2_ref, w3_ref, b3_ref, w4_ref, o_ref):
    """Whole discriminator for ONE image; all intermediates stay in vregs/VMEM."""
    f32 = jnp.float32

    def gather_patches(a_ref, act_bf16):
        # im2col via 16 tiny MXU gathers (0/1 matrices) + one lane-dim concat.
        pieces = []
        for t in range(16):                     # static unroll, t = kh*4 + kw
            g = jnp.dot(a_ref[t], act_bf16, preferred_element_type=f32)
            pieces.append(g.astype(jnp.bfloat16))
        return jnp.concatenate(pieces, axis=-1)  # (M, 16*C), K ordered (kh, kw, c)

    def lrelu(y):
        return jnp.maximum(y, 0.2 * y)           # LeakyReLU(0.2), one VALU op

    x = x_ref[0]                                  # (H*W, 8) bf16

    # conv1: 3(->8) -> 32, no BN, no bias
    p1 = gather_patches(a0_ref, x)                # (64, 128)
    h1 = lrelu(jnp.dot(p1, w1_ref[...], preferred_element_type=f32))
    h1 = h1.astype(jnp.bfloat16)                  # (64, 32)

    # conv2: 32 -> 64, BN folded into w2/b2
    p2 = gather_patches(a1_ref, h1)               # (16, 512)
    h2 = lrelu(jnp.dot(p2, w2_ref[...], preferred_element_type=f32) + b2_ref[...])
    h2 = h2.astype(jnp.bfloat16)                  # (16, 64)

    # conv3: 64 -> 128, BN folded into w3/b3
    p3 = gather_patches(a2_ref, h2)               # (4, 1024)
    h3 = lrelu(jnp.dot(p3, w3_ref[...], preferred_element_type=f32) + b3_ref[...])

    # head: 1x1 conv 128 -> 1 + sigmoid (VPU mul + lane reduce, no OC=1 matmul)
    logit = jnp.sum(h3 * w4_ref[...], axis=-1, keepdims=True)    # (4, 1) f32
    o_ref[0] = jax.nn.sigmoid(logit)


# ------------------------------- call wrapper -------------------------------- #

def _weight_2d(weight, scale, ic_pad=None):
    """(OC, IC, KH, KW) torch-layout weight -> (KH*KW*ICp, OC) bf16, BN scale folded."""
    oc, ic, kh, kw = weight.shape
    w = jnp.transpose(weight, (2, 3, 1, 0))                     # (KH, KW, IC, OC)
    if ic_pad is not None and ic_pad != ic:
        w = jnp.pad(w, ((0, 0), (0, 0), (0, ic_pad - ic), (0, 0)))
        ic = ic_pad
    w = w.reshape(kh * kw * ic, oc) * scale[None, :]
    return w.astype(jnp.bfloat16)


def discriminator_forward(x, p, img_channel, img_size):
    assert img_size % 8 == 0
    x = x.reshape(-1, img_channel, img_size, img_size)
    n = x.shape[0]
    s1, s2, s3 = img_size // 2, img_size // 4, img_size // 8

    # NCHW -> per-image (H*W, Cpad) bf16; channels on the lane axis.
    x_nhwc = jnp.transpose(x, (0, 2, 3, 1))
    x_nhwc = jnp.pad(x_nhwc, ((0, 0), (0, 0), (0, 0), (0, _CIN_PAD - img_channel)))
    x2d = x_nhwc.reshape(n, img_size * img_size, _CIN_PAD).astype(jnp.bfloat16)

    # Resident constants: tap-gather matrices + folded weights (~0.9 MiB total).
    a0 = jnp.asarray(_tap_select_matrices(img_size), jnp.bfloat16)  # (16, 64, 256)
    a1 = jnp.asarray(_tap_select_matrices(s1), jnp.bfloat16)        # (16, 16, 64)
    a2 = jnp.asarray(_tap_select_matrices(s2), jnp.bfloat16)        # (16,  4, 16)
    w1 = _weight_2d(p["w1"], p["s1"], ic_pad=_CIN_PAD)              # (128,  32)
    w2 = _weight_2d(p["w2"], p["s2"])                               # (512,  64)
    w3 = _weight_2d(p["w3"], p["s3"])                               # (1024, 128)
    b2 = p["b2"].reshape(1, -1).astype(jnp.float32)                 # (1, 64)
    b3 = p["b3"].reshape(1, -1).astype(jnp.float32)                 # (1, 128)
    w4 = p["w4"].reshape(1, -1).astype(jnp.float32)                 # (1, 128)

    def full(shape):
        return pl.BlockSpec(shape, lambda i, _s=len(shape): (0,) * _s)

    out = pl.pallas_call(
        _fused_disc_kernel,
        out_shape=jax.ShapeDtypeStruct((n, s3 * s3, 1), jnp.float32),
        grid=(n,),
        in_specs=[
            pl.BlockSpec((1, img_size * img_size, _CIN_PAD), lambda i: (i, 0, 0)),
            full(a0.shape), full(w1.shape),
            full(a1.shape), full(w2.shape), full(b2.shape),
            full(a2.shape), full(w3.shape), full(b3.shape), full(w4.shape),
        ],
        out_specs=pl.BlockSpec((1, s3 * s3, 1), lambda i: (i, 0, 0)),
        compiler_params=pltpu.CompilerParams(
            dimension_semantics=("parallel",)),
    )(x2d, a0, w1, a1, w2, b2, a2, w3, b3, w4)

    return out.reshape(n, 1, s3, s3)                                # NCHW


# ----------------------------- Parameter setup ------------------------------- #

def init_params(key):
    ks = jax.random.split(key, 10)
    eps = 1e-5
    p = {}
    # conv1: 3 -> 32, k4 s2 p1, bias=False, LeakyReLU (no BN)
    p["w1"] = 0.05 * jax.random.normal(ks[0], (32, 3, 4, 4), jnp.float32)
    p["s1"] = jnp.ones((32,), jnp.float32)
    p["b1"] = jnp.zeros((32,), jnp.float32)
    # conv2: 32 -> 64, bias=False, BN(64), LeakyReLU
    p["w2"] = 0.05 * jax.random.normal(ks[1], (64, 32, 4, 4), jnp.float32)
    g2 = 1.0 + 0.1 * jax.random.normal(ks[2], (64,), jnp.float32)
    be2 = 0.1 * jax.random.normal(ks[3], (64,), jnp.float32)
    rm2 = 0.1 * jax.random.normal(ks[4], (64,), jnp.float32)
    rv2 = jnp.abs(1.0 + 0.1 * jax.random.normal(ks[5], (64,), jnp.float32))
    p["s2"] = g2 / jnp.sqrt(rv2 + eps)
    p["b2"] = be2 - rm2 * p["s2"]
    # conv3: 64 -> 128, bias=False, BN(128), LeakyReLU
    p["w3"] = 0.05 * jax.random.normal(ks[6], (128, 64, 4, 4), jnp.float32)
    g3 = 1.0 + 0.1 * jax.random.normal(ks[7], (128,), jnp.float32)
    be3 = 0.1 * jax.random.normal(ks[8], (128,), jnp.float32)
    rm3 = 0.1 * jax.random.normal(ks[9], (128,), jnp.float32)
    rv3 = jnp.ones((128,), jnp.float32)
    p["s3"] = g3 / jnp.sqrt(rv3 + eps)
    p["b3"] = be3 - rm3 * p["s3"]
    # out: 128 -> 1, 1x1 conv, bias=False, Sigmoid
    p["w4"] = 0.05 * jax.random.normal(jax.random.fold_in(key, 99),
                                       (1, 128, 1, 1), jnp.float32)
    return p


# --------------------------- Reference (pure JAX) ---------------------------- #
# Mirrors the kernel numerics (bf16 conv operands, f32 accumulation, f32
# bias/activation epilogue, bf16 inter-layer storage) so the comparison isolates
# kernel correctness.

def reference_forward(x, p, img_channel, img_size):
    x = x.reshape(-1, img_channel, img_size, img_size)

    def block(h_f32, w, scale, bias, stride, pad):
        w_eff = (w * scale[:, None, None, None]).astype(jnp.bfloat16)
        y = jax.lax.conv_general_dilated(
            h_f32.astype(jnp.bfloat16), w_eff,
            window_strides=(stride, stride),
            padding=((pad, pad), (pad, pad)),
            dimension_numbers=("NCHW", "OIHW", "NCHW"),
            preferred_element_type=jnp.float32)
        y = y + bias[None, :, None, None]
        return jnp.maximum(y, 0.2 * y)

    h1 = block(x, p["w1"], p["s1"], p["b1"], 2, 1)
    h2 = block(h1, p["w2"], p["s2"], p["b2"], 2, 1)
    h3 = block(h2, p["w3"], p["s3"], p["b3"], 2, 1)
    w4 = p["w4"].reshape(-1)                                        # (128,)
    logit = jnp.sum(h3 * w4[None, :, None, None], axis=1, keepdims=True)
    return jax.nn.sigmoid(logit)


# ----------------------------------- Main ------------------------------------ #

if __name__ == "__main__":
    key = jax.random.PRNGKey(0)
    img_channel, img_size, batch = 3, 16, 2       # conv1 expects 3 input channels
    x = jax.random.normal(jax.random.fold_in(key, 1),
                          (batch, img_channel, img_size, img_size), jnp.float32)
    params = init_params(key)

    fwd = jax.jit(functools.partial(discriminator_forward,
                                    img_channel=img_channel, img_size=img_size))
    out = jax.block_until_ready(fwd(x, params))
    ref = jax.block_until_ready(
        reference_forward(x, params, img_channel, img_size))

    assert out.shape == (batch, 1, img_size // 8, img_size // 8), out.shape
    max_err = float(jnp.max(jnp.abs(out.astype(jnp.float32) - ref)))
    # bf16 MXU operands + f32 accumulation: only tiny reordering/rounding deltas.
    assert max_err < 5e-3, max_err

    print("KERNEL_OK")
</pallas_src>

<mosaic_0001>
module attributes {stable_mosaic.version = 11 : i64} {
  func.func @_fused_disc_kernel(%arg0: i32, %arg1: memref<1x256x8xbf16, #tpu.memory_space<vmem>>, %arg2: memref<16x64x256xbf16, #tpu.memory_space<vmem>>, %arg3: memref<128x32xbf16, #tpu.memory_space<vmem>>, %arg4: memref<16x16x64xbf16, #tpu.memory_space<vmem>>, %arg5: memref<512x64xbf16, #tpu.memory_space<vmem>>, %arg6: memref<1x64xf32, #tpu.memory_space<vmem>>, %arg7: memref<16x4x16xbf16, #tpu.memory_space<vmem>>, %arg8: memref<1024x128xbf16, #tpu.memory_space<vmem>>, %arg9: memref<1x128xf32, #tpu.memory_space<vmem>>, %arg10: memref<1x128xf32, #tpu.memory_space<vmem>>, %arg11: memref<1x4x1xf32, #tpu.memory_space<vmem>>) attributes {dimension_semantics = [#tpu.dimension_semantics<parallel>], iteration_bounds = array<i64: 2>, scalar_prefetch = 0 : i64, scratch_operands = 0 : i64, tpu.core_type = #tpu.core_type<tc>, window_params = [{transform_indices = @transform_0, window_bounds = array<i64: 1, 256, 8>}, {pipeline_mode = #tpu.pipeline_mode<synchronous>, transform_indices = @transform_1, window_bounds = array<i64: 16, 64, 256>}, {pipeline_mode = #tpu.pipeline_mode<synchronous>, transform_indices = @transform_2, window_bounds = array<i64: 128, 32>}, {pipeline_mode = #tpu.pipeline_mode<synchronous>, transform_indices = @transform_3, window_bounds = array<i64: 16, 16, 64>}, {pipeline_mode = #tpu.pipeline_mode<synchronous>, transform_indices = @transform_4, window_bounds = array<i64: 512, 64>}, {pipeline_mode = #tpu.pipeline_mode<synchronous>, transform_indices = @transform_5, window_bounds = array<i64: 1, 64>}, {pipeline_mode = #tpu.pipeline_mode<synchronous>, transform_indices = @transform_6, window_bounds = array<i64: 16, 4, 16>}, {pipeline_mode = #tpu.pipeline_mode<synchronous>, transform_indices = @transform_7, window_bounds = array<i64: 1024, 128>}, {pipeline_mode = #tpu.pipeline_mode<synchronous>, transform_indices = @transform_8, window_bounds = array<i64: 1, 128>}, {pipeline_mode = #tpu.pipeline_mode<synchronous>, transform_indices = @transform_9, window_bounds = array<i64: 1, 128>}, {transform_indices = @transform_10, window_bounds = array<i64: 1, 4, 1>}]} {
    %c0 = arith.constant 0 : index
    %c0_0 = arith.constant 0 : index
    %c0_1 = arith.constant 0 : index
    %0 = vector.load %arg1[%c0, %c0_0, %c0_1] : memref<1x256x8xbf16, #tpu.memory_space<vmem>>, vector<1x256x8xbf16>
    %1 = vector.shape_cast %0 : vector<1x256x8xbf16> to vector<256x8xbf16>
    %c0_2 = arith.constant 0 : index
    %c0_3 = arith.constant 0 : index
    %c0_4 = arith.constant 0 : index
    %2 = vector.load %arg2[%c0_2, %c0_3, %c0_4] : memref<16x64x256xbf16, #tpu.memory_space<vmem>>, vector<1x64x256xbf16>
    %3 = vector.shape_cast %2 : vector<1x64x256xbf16> to vector<64x256xbf16>
    %cst = arith.constant dense<0.000000e+00> : vector<64x8xf32>
    %4 = tpu.matmul %3, %1, %cst {dimension_numbers = #tpu.dot_dimension_numbers<[1], [0], [0], [1], [0, 0, 1, 1], [], []>} : vector<64x256xbf16>, vector<256x8xbf16>, vector<64x8xf32> -> vector<64x8xf32>
    %5 = arith.truncf %4 : vector<64x8xf32> to vector<64x8xbf16>
    %c1 = arith.constant 1 : index
    %c0_5 = arith.constant 0 : index
    %c0_6 = arith.constant 0 : index
    %6 = vector.load %arg2[%c1, %c0_5, %c0_6] : memref<16x64x256xbf16, #tpu.memory_space<vmem>>, vector<1x64x256xbf16>
    %7 = vector.shape_cast %6 : vector<1x64x256xbf16> to vector<64x256xbf16>
    %cst_7 = arith.constant dense<0.000000e+00> : vector<64x8xf32>
    %8 = tpu.matmul %7, %1, %cst_7 {dimension_numbers = #tpu.dot_dimension_numbers<[1], [0], [0], [1], [0, 0, 1, 1], [], []>} : vector<64x256xbf16>, vector<256x8xbf16>, vector<64x8xf32> -> vector<64x8xf32>
    %9 = arith.truncf %8 : vector<64x8xf32> to vector<64x8xbf16>
    %c2 = arith.constant 2 : index
    %c0_8 = arith.constant 0 : index
    %c0_9 = arith.constant 0 : index
    %10 = vector.load %arg2[%c2, %c0_8, %c0_9] : memref<16x64x256xbf16, #tpu.memory_space<vmem>>, vector<1x64x256xbf16>
    %11 = vector.shape_cast %10 : vector<1x64x256xbf16> to vector<64x256xbf16>
    %cst_10 = arith.constant dense<0.000000e+00> : vector<64x8xf32>
    %12 = tpu.matmul %11, %1, %cst_10 {dimension_numbers = #tpu.dot_dimension_numbers<[1], [0], [0], [1], [0, 0, 1, 1], [], []>} : vector<64x256xbf16>, vector<256x8xbf16>, vector<64x8xf32> -> vector<64x8xf32>
    %13 = arith.truncf %12 : vector<64x8xf32> to vector<64x8xbf16>
    %c3 = arith.constant 3 : index
    %c0_11 = arith.constant 0 : index
    %c0_12 = arith.constant 0 : index
    %14 = vector.load %arg2[%c3, %c0_11, %c0_12] : memref<16x64x256xbf16, #tpu.memory_space<vmem>>, vector<1x64x256xbf16>
    %15 = vector.shape_cast %14 : vector<1x64x256xbf16> to vector<64x256xbf16>
    %cst_13 = arith.constant dense<0.000000e+00> : vector<64x8xf32>
    %16 = tpu.matmul %15, %1, %cst_13 {dimension_numbers = #tpu.dot_dimension_numbers<[1], [0], [0], [1], [0, 0, 1, 1], [], []>} : vector<64x256xbf16>, vector<256x8xbf16>, vector<64x8xf32> -> vector<64x8xf32>
    %17 = arith.truncf %16 : vector<64x8xf32> to vector<64x8xbf16>
    %c4 = arith.constant 4 : index
    %c0_14 = arith.constant 0 : index
    %c0_15 = arith.constant 0 : index
    %18 = vector.load %arg2[%c4, %c0_14, %c0_15] : memref<16x64x256xbf16, #tpu.memory_space<vmem>>, vector<1x64x256xbf16>
    %19 = vector.shape_cast %18 : vector<1x64x256xbf16> to vector<64x256xbf16>
    %cst_16 = arith.constant dense<0.000000e+00> : vector<64x8xf32>
    %20 = tpu.matmul %19, %1, %cst_16 {dimension_numbers = #tpu.dot_dimension_numbers<[1], [0], [0], [1], [0, 0, 1, 1], [], []>} : vector<64x256xbf16>, vector<256x8xbf16>, vector<64x8xf32> -> vector<64x8xf32>
    %21 = arith.truncf %20 : vector<64x8xf32> to vector<64x8xbf16>
    %c5 = arith.constant 5 : index
    %c0_17 = arith.constant 0 : index
    %c0_18 = arith.constant 0 : index
    %22 = vector.load %arg2[%c5, %c0_17, %c0_18] : memref<16x64x256xbf16, #tpu.memory_space<vmem>>, vector<1x64x256xbf16>
    %23 = vector.shape_cast %22 : vector<1x64x256xbf16> to vector<64x256xbf16>
    %cst_19 = arith.constant dense<0.000000e+00> : vector<64x8xf32>
    %24 = tpu.matmul %23, %1, %cst_19 {dimension_numbers = #tpu.dot_dimension_numbers<[1], [0], [0], [1], [0, 0, 1, 1], [], []>} : vector<64x256xbf16>, vector<256x8xbf16>, vector<64x8xf32> -> vector<64x8xf32>
    %25 = arith.truncf %24 : vector<64x8xf32> to vector<64x8xbf16>
    %c6 = arith.constant 6 : index
    %c0_20 = arith.constant 0 : index
    %c0_21 = arith.constant 0 : index
    %26 = vector.load %arg2[%c6, %c0_20, %c0_21] : memref<16x64x256xbf16, #tpu.memory_space<vmem>>, vector<1x64x256xbf16>
    %27 = vector.shape_cast %26 : vector<1x64x256xbf16> to vector<64x256xbf16>
    %cst_22 = arith.constant dense<0.000000e+00> : vector<64x8xf32>
    %28 = tpu.matmul %27, %1, %cst_22 {dimension_numbers = #tpu.dot_dimension_numbers<[1], [0], [0], [1], [0, 0, 1, 1], [], []>} : vector<64x256xbf16>, vector<256x8xbf16>, vector<64x8xf32> -> vector<64x8xf32>
    %29 = arith.truncf %28 : vector<64x8xf32> to vector<64x8xbf16>
    %c7 = arith.constant 7 : index
    %c0_23 = arith.constant 0 : index
    %c0_24 = arith.constant 0 : index
    %30 = vector.load %arg2[%c7, %c0_23, %c0_24] : memref<16x64x256xbf16, #tpu.memory_space<vmem>>, vector<1x64x256xbf16>
    %31 = vector.shape_cast %30 : vector<1x64x256xbf16> to vector<64x256xbf16>
    %cst_25 = arith.constant dense<0.000000e+00> : vector<64x8xf32>
    %32 = tpu.matmul %31, %1, %cst_25 {dimension_numbers = #tpu.dot_dimension_numbers<[1], [0], [0], [1], [0, 0, 1, 1], [], []>} : vector<64x256xbf16>, vector<256x8xbf16>, vector<64x8xf32> -> vector<64x8xf32>
    %33 = arith.truncf %32 : vector<64x8xf32> to vector<64x8xbf16>
    %c8 = arith.constant 8 : index
    %c0_26 = arith.constant 0 : index
    %c0_27 = arith.constant 0 : index
    %34 = vector.load %arg2[%c8, %c0_26, %c0_27] : memref<16x64x256xbf16, #tpu.memory_space<vmem>>, vector<1x64x256xbf16>
    %35 = vector.shape_cast %34 : vector<1x64x256xbf16> to vector<64x256xbf16>
    %cst_28 = arith.constant dense<0.000000e+00> : vector<64x8xf32>
    %36 = tpu.matmul %35, %1, %cst_28 {dimension_numbers = #tpu.dot_dimension_numbers<[1], [0], [0], [1], [0, 0, 1, 1], [], []>} : vector<64x256xbf16>, vector<256x8xbf16>, vector<64x8xf32> -> vector<64x8xf32>
    %37 = arith.truncf %36 : vector<64x8xf32> to vector<64x8xbf16>
    %c9 = arith.constant 9 : index
    %c0_29 = arith.constant 0 : index
    %c0_30 = arith.constant 0 : index
    %38 = vector.load %arg2[%c9, %c0_29, %c0_30] : memref<16x64x256xbf16, #tpu.memory_space<vmem>>, vector<1x64x256xbf16>
    %39 = vector.shape_cast %38 : vector<1x64x256xbf16> to vector<64x256xbf16>
    %cst_31 = arith.constant dense<0.000000e+00> : vector<64x8xf32>
    %40 = tpu.matmul %39, %1, %cst_31 {dimension_numbers = #tpu.dot_dimension_numbers<[1], [0], [0], [1], [0, 0, 1, 1], [], []>} : vector<64x256xbf16>, vector<256x8xbf16>, vector<64x8xf32> -> vector<64x8xf32>
    %41 = arith.truncf %40 : vector<64x8xf32> to vector<64x8xbf16>
    %c10 = arith.constant 10 : index
    %c0_32 = arith.constant 0 : index
    %c0_33 = arith.constant 0 : index
    %42 = vector.load %arg2[%c10, %c0_32, %c0_33] : memref<16x64x256xbf16, #tpu.memory_space<vmem>>, vector<1x64x256xbf16>
    %43 = vector.shape_cast %42 : vector<1x64x256xbf16> to vector<64x256xbf16>
    %cst_34 = arith.constant dense<0.000000e+00> : vector<64x8xf32>
    %44 = tpu.matmul %43, %1, %cst_34 {dimension_numbers = #tpu.dot_dimension_numbers<[1], [0], [0], [1], [0, 0, 1, 1], [], []>} : vector<64x256xbf16>, vector<256x8xbf16>, vector<64x8xf32> -> vector<64x8xf32>
    %45 = arith.truncf %44 : vector<64x8xf32> to vector<64x8xbf16>
    %c11 = arith.constant 11 : index
    %c0_35 = arith.constant 0 : index
    %c0_36 = arith.constant 0 : index
    %46 = vector.load %arg2[%c11, %c0_35, %c0_36] : memref<16x64x256xbf16, #tpu.memory_space<vmem>>, vector<1x64x256xbf16>
    %47 = vector.shape_cast %46 : vector<1x64x256xbf16> to vector<64x256xbf16>
    %cst_37 = arith.constant dense<0.000000e+00> : vector<64x8xf32>
    %48 = tpu.matmul %47, %1, %cst_37 {dimension_numbers = #tpu.dot_dimension_numbers<[1], [0], [0], [1], [0, 0, 1, 1], [], []>} : vector<64x256xbf16>, vector<256x8xbf16>, vector<64x8xf32> -> vector<64x8xf32>
    %49 = arith.truncf %48 : vector<64x8xf32> to vector<64x8xbf16>
    %c12 = arith.constant 12 : index
    %c0_38 = arith.constant 0 : index
    %c0_39 = arith.constant 0 : index
    %50 = vector.load %arg2[%c12, %c0_38, %c0_39] : memref<16x64x256xbf16, #tpu.memory_space<vmem>>, vector<1x64x256xbf16>
    %51 = vector.shape_cast %50 : vector<1x64x256xbf16> to vector<64x256xbf16>
    %cst_40 = arith.constant dense<0.000000e+00> : vector<64x8xf32>
    %52 = tpu.matmul %51, %1, %cst_40 {dimension_numbers = #tpu.dot_dimension_numbers<[1], [0], [0], [1], [0, 0, 1, 1], [], []>} : vector<64x256xbf16>, vector<256x8xbf16>, vector<64x8xf32> -> vector<64x8xf32>
    %53 = arith.truncf %52 : vector<64x8xf32> to vector<64x8xbf16>
    %c13 = arith.constant 13 : index
    %c0_41 = arith.constant 0 : index
    %c0_42 = arith.constant 0 : index
    %54 = vector.load %arg2[%c13, %c0_41, %c0_42] : memref<16x64x256xbf16, #tpu.memory_space<vmem>>, vector<1x64x256xbf16>
    %55 = vector.shape_cast %54 : vector<1x64x256xbf16> to vector<64x256xbf16>
    %cst_43 = arith.constant dense<0.000000e+00> : vector<64x8xf32>
    %56 = tpu.matmul %55, %1, %cst_43 {dimension_numbers = #tpu.dot_dimension_numbers<[1], [0], [0], [1], [0, 0, 1, 1], [], []>} : vector<64x256xbf16>, vector<256x8xbf16>, vector<64x8xf32> -> vector<64x8xf32>
    %57 = arith.truncf %56 : vector<64x8xf32> to vector<64x8xbf16>
    %c14 = arith.constant 14 : index
    %c0_44 = arith.constant 0 : index
    %c0_45 = arith.constant 0 : index
    %58 = vector.load %arg2[%c14, %c0_44, %c0_45] : memref<16x64x256xbf16, #tpu.memory_space<vmem>>, vector<1x64x256xbf16>
    %59 = vector.shape_cast %58 : vector<1x64x256xbf16> to vector<64x256xbf16>
    %cst_46 = arith.constant dense<0.000000e+00> : vector<64x8xf32>
    %60 = tpu.matmul %59, %1, %cst_46 {dimension_numbers = #tpu.dot_dimension_numbers<[1], [0], [0], [1], [0, 0, 1, 1], [], []>} : vector<64x256xbf16>, vector<256x8xbf16>, vector<64x8xf32> -> vector<64x8xf32>
    %61 = arith.truncf %60 : vector<64x8xf32> to vector<64x8xbf16>
    %c15 = arith.constant 15 : index
    %c0_47 = arith.constant 0 : index
    %c0_48 = arith.constant 0 : index
    %62 = vector.load %arg2[%c15, %c0_47, %c0_48] : memref<16x64x256xbf16, #tpu.memory_space<vmem>>, vector<1x64x256xbf16>
    %63 = vector.shape_cast %62 : vector<1x64x256xbf16> to vector<64x256xbf16>
    %cst_49 = arith.constant dense<0.000000e+00> : vector<64x8xf32>
    %64 = tpu.matmul %63, %1, %cst_49 {dimension_numbers = #tpu.dot_dimension_numbers<[1], [0], [0], [1], [0, 0, 1, 1], [], []>} : vector<64x256xbf16>, vector<256x8xbf16>, vector<64x8xf32> -> vector<64x8xf32>
    %65 = arith.truncf %64 : vector<64x8xf32> to vector<64x8xbf16>
    %66 = tpu.concatenate %5, %9, %13, %17, %21, %25, %29, %33, %37, %41, %45, %49, %53, %57, %61, %65 in 1 : vector<64x8xbf16>, vector<64x8xbf16>, vector<64x8xbf16>, vector<64x8xbf16>, vector<64x8xbf16>, vector<64x8xbf16>, vector<64x8xbf16>, vector<64x8xbf16>, vector<64x8xbf16>, vector<64x8xbf16>, vector<64x8xbf16>, vector<64x8xbf16>, vector<64x8xbf16>, vector<64x8xbf16>, vector<64x8xbf16>, vector<64x8xbf16> -> vector<64x128xbf16>
    %c0_50 = arith.constant 0 : index
    %c0_51 = arith.constant 0 : index
    %67 = vector.load %arg3[%c0_50, %c0_51] : memref<128x32xbf16, #tpu.memory_space<vmem>>, vector<128x32xbf16>
    %cst_52 = arith.constant dense<0.000000e+00> : vector<64x32xf32>
    %68 = tpu.matmul %66, %67, %cst_52 {dimension_numbers = #tpu.dot_dimension_numbers<[1], [0], [0], [1], [0, 0, 1, 1], [], []>} : vector<64x128xbf16>, vector<128x32xbf16>, vector<64x32xf32> -> vector<64x32xf32>
    %cst_53 = arith.constant 2.000000e-01 : f32
    %69 = vector.broadcast %cst_53 : f32 to vector<64x32xf32>
    %70 = arith.mulf %69, %68 : vector<64x32xf32>
    %71 = arith.maximumf %68, %70 : vector<64x32xf32>
    %72 = arith.truncf %71 : vector<64x32xf32> to vector<64x32xbf16>
    %c0_54 = arith.constant 0 : index
    %c0_55 = arith.constant 0 : index
    %c0_56 = arith.constant 0 : index
    %73 = vector.load %arg4[%c0_54, %c0_55, %c0_56] : memref<16x16x64xbf16, #tpu.memory_space<vmem>>, vector<1x16x64xbf16>
    %74 = vector.shape_cast %73 : vector<1x16x64xbf16> to vector<16x64xbf16>
    %cst_57 = arith.constant dense<0.000000e+00> : vector<16x32xf32>
    %75 = tpu.matmul %74, %72, %cst_57 {dimension_numbers = #tpu.dot_dimension_numbers<[1], [0], [0], [1], [0, 0, 1, 1], [], []>} : vector<16x64xbf16>, vector<64x32xbf16>, vector<16x32xf32> -> vector<16x32xf32>
    %76 = arith.truncf %75 : vector<16x32xf32> to vector<16x32xbf16>
    %c1_58 = arith.constant 1 : index
    %c0_59 = arith.constant 0 : index
    %c0_60 = arith.constant 0 : index
    %77 = vector.load %arg4[%c1_58, %c0_59, %c0_60] : memref<16x16x64xbf16, #tpu.memory_space<vmem>>, vector<1x16x64xbf16>
    %78 = vector.shape_cast %77 : vector<1x16x64xbf16> to vector<16x64xbf16>
    %cst_61 = arith.constant dense<0.000000e+00> : vector<16x32xf32>
    %79 = tpu.matmul %78, %72, %cst_61 {dimension_numbers = #tpu.dot_dimension_numbers<[1], [0], [0], [1], [0, 0, 1, 1], [], []>} : vector<16x64xbf16>, vector<64x32xbf16>, vector<16x32xf32> -> vector<16x32xf32>
    %80 = arith.truncf %79 : vector<16x32xf32> to vector<16x32xbf16>
    %c2_62 = arith.constant 2 : index
    %c0_63 = arith.constant 0 : index
    %c0_64 = arith.constant 0 : index
    %81 = vector.load %arg4[%c2_62, %c0_63, %c0_64] : memref<16x16x64xbf16, #tpu.memory_space<vmem>>, vector<1x16x64xbf16>
    %82 = vector.shape_cast %81 : vector<1x16x64xbf16> to vector<16x64xbf16>
    %cst_65 = arith.constant dense<0.000000e+00> : vector<16x32xf32>
    %83 = tpu.matmul %82, %72, %cst_65 {dimension_numbers = #tpu.dot_dimension_numbers<[1], [0], [0], [1], [0, 0, 1, 1], [], []>} : vector<16x64xbf16>, vector<64x32xbf16>, vector<16x32xf32> -> vector<16x32xf32>
    %84 = arith.truncf %83 : vector<16x32xf32> to vector<16x32xbf16>
    %c3_66 = arith.constant 3 : index
    %c0_67 = arith.constant 0 : index
    %c0_68 = arith.constant 0 : index
    %85 = vector.load %arg4[%c3_66, %c0_67, %c0_68] : memref<16x16x64xbf16, #tpu.memory_space<vmem>>, vector<1x16x64xbf16>
    %86 = vector.shape_cast %85 : vector<1x16x64xbf16> to vector<16x64xbf16>
    %cst_69 = arith.constant dense<0.000000e+00> : vector<16x32xf32>
    %87 = tpu.matmul %86, %72, %cst_69 {dimension_numbers = #tpu.dot_dimension_numbers<[1], [0], [0], [1], [0, 0, 1, 1], [], []>} : vector<16x64xbf16>, vector<64x32xbf16>, vector<16x32xf32> -> vector<16x32xf32>
    %88 = arith.truncf %87 : vector<16x32xf32> to vector<16x32xbf16>
    %c4_70 = arith.constant 4 : index
    %c0_71 = arith.constant 0 : index
    %c0_72 = arith.constant 0 : index
    %89 = vector.load %arg4[%c4_70, %c0_71, %c0_72] : memref<16x16x64xbf16, #tpu.memory_space<vmem>>, vector<1x16x64xbf16>
    %90 = vector.shape_cast %89 : vector<1x16x64xbf16> to vector<16x64xbf16>
    %cst_73 = arith.constant dense<0.000000e+00> : vector<16x32xf32>
    %91 = tpu.matmul %90, %72, %cst_73 {dimension_numbers = #tpu.dot_dimension_numbers<[1], [0], [0], [1], [0, 0, 1, 1], [], []>} : vector<16x64xbf16>, vector<64x32xbf16>, vector<16x32xf32> -> vector<16x32xf32>
    %92 = arith.truncf %91 : vector<16x32xf32> to vector<16x32xbf16>
    %c5_74 = arith.constant 5 : index
    %c0_75 = arith.constant 0 : index
    %c0_76 = arith.constant 0 : index
    %93 = vector.load %arg4[%c5_74, %c0_75, %c0_76] : memref<16x16x64xbf16, #tpu.memory_space<vmem>>, vector<1x16x64xbf16>
    %94 = vector.shape_cast %93 : vector<1x16x64xbf16> to vector<16x64xbf16>
    %cst_77 = arith.constant dense<0.000000e+00> : vector<16x32xf32>
    %95 = tpu.matmul %94, %72, %cst_77 {dimension_numbers = #tpu.dot_dimension_numbers<[1], [0], [0], [1], [0, 0, 1, 1], [], []>} : vector<16x64xbf16>, vector<64x32xbf16>, vector<16x32xf32> -> vector<16x32xf32>
    %96 = arith.truncf %95 : vector<16x32xf32> to vector<16x32xbf16>
    %c6_78 = arith.constant 6 : index
    %c0_79 = arith.constant 0 : index
    %c0_80 = arith.constant 0 : index
    %97 = vector.load %arg4[%c6_78, %c0_79, %c0_80] : memref<16x16x64xbf16, #tpu.memory_space<vmem>>, vector<1x16x64xbf16>
    %98 = vector.shape_cast %97 : vector<1x16x64xbf16> to vector<16x64xbf16>
    %cst_81 = arith.constant dense<0.000000e+00> : vector<16x32xf32>
    %99 = tpu.matmul %98, %72, %cst_81 {dimension_numbers = #tpu.dot_dimension_numbers<[1], [0], [0], [1], [0, 0, 1, 1], [], []>} : vector<16x64xbf16>, vector<64x32xbf16>, vector<16x32xf32> -> vector<16x32xf32>
    %100 = arith.truncf %99 : vector<16x32xf32> to vector<16x32xbf16>
    %c7_82 = arith.constant 7 : index
    %c0_83 = arith.constant 0 : index
    %c0_84 = arith.constant 0 : index
    %101 = vector.load %arg4[%c7_82, %c0_83, %c0_84] : memref<16x16x64xbf16, #tpu.memory_space<vmem>>, vector<1x16x64xbf16>
    %102 = vector.shape_cast %101 : vector<1x16x64xbf16> to vector<16x64xbf16>
    %cst_85 = arith.constant dense<0.000000e+00> : vector<16x32xf32>
    %103 = tpu.matmul %102, %72, %cst_85 {dimension_numbers = #tpu.dot_dimension_numbers<[1], [0], [0], [1], [0, 0, 1, 1], [], []>} : vector<16x64xbf16>, vector<64x32xbf16>, vector<16x32xf32> -> vector<16x32xf32>
    %104 = arith.truncf %103 : vector<16x32xf32> to vector<16x32xbf16>
    %c8_86 = arith.constant 8 : index
    %c0_87 = arith.constant 0 : index
    %c0_88 = arith.constant 0 : index
    %105 = vector.load %arg4[%c8_86, %c0_87, %c0_88] : memref<16x16x64xbf16, #tpu.memory_space<vmem>>, vector<1x16x64xbf16>
    %106 = vector.shape_cast %105 : vector<1x16x64xbf16> to vector<16x64xbf16>
    %cst_89 = arith.constant dense<0.000000e+00> : vector<16x32xf32>
    %107 = tpu.matmul %106, %72, %cst_89 {dimension_numbers = #tpu.dot_dimension_numbers<[1], [0], [0], [1], [0, 0, 1, 1], [], []>} : vector<16x64xbf16>, vector<64x32xbf16>, vector<16x32xf32> -> vector<16x32xf32>
    %108 = arith.truncf %107 : vector<16x32xf32> to vector<16x32xbf16>
    %c9_90 = arith.constant 9 : index
    %c0_91 = arith.constant 0 : index
    %c0_92 = arith.constant 0 : index
    %109 = vector.load %arg4[%c9_90, %c0_91, %c0_92] : memref<16x16x64xbf16, #tpu.memory_space<vmem>>, vector<1x16x64xbf16>
    %110 = vector.shape_cast %109 : vector<1x16x64xbf16> to vector<16x64xbf16>
    %cst_93 = arith.constant dense<0.000000e+00> : vector<16x32xf32>
    %111 = tpu.matmul %110, %72, %cst_93 {dimension_numbers = #tpu.dot_dimension_numbers<[1], [0], [0], [1], [0, 0, 1, 1], [], []>} : vector<16x64xbf16>, vector<64x32xbf16>, vector<16x32xf32> -> vector<16x32xf32>
    %112 = arith.truncf %111 : vector<16x32xf32> to vector<16x32xbf16>
    %c10_94 = arith.constant 10 : index
    %c0_95 = arith.constant 0 : index
    %c0_96 = arith.constant 0 : index
    %113 = vector.load %arg4[%c10_94, %c0_95, %c0_96] : memref<16x16x64xbf16, #tpu.memory_space<vmem>>, vector<1x16x64xbf16>
    %114 = vector.shape_cast %113 : vector<1x16x64xbf16> to vector<16x64xbf16>
    %cst_97 = arith.constant dense<0.000000e+00> : vector<16x32xf32>
    %115 = tpu.matmul %114, %72, %cst_97 {dimension_numbers = #tpu.dot_dimension_numbers<[1], [0], [0], [1], [0, 0, 1, 1], [], []>} : vector<16x64xbf16>, vector<64x32xbf16>, vector<16x32xf32> -> vector<16x32xf32>
    %116 = arith.truncf %115 : vector<16x32xf32> to vector<16x32xbf16>
    %c11_98 = arith.constant 11 : index
    %c0_99 = arith.constant 0 : index
    %c0_100 = arith.constant 0 : index
    %117 = vector.load %arg4[%c11_98, %c0_99, %c0_100] : memref<16x16x64xbf16, #tpu.memory_space<vmem>>, vector<1x16x64xbf16>
    %118 = vector.shape_cast %117 : vector<1x16x64xbf16> to vector<16x64xbf16>
    %cst_101 = arith.constant dense<0.000000e+00> : vector<16x32xf32>
    %119 = tpu.matmul %118, %72, %cst_101 {dimension_numbers = #tpu.dot_dimension_numbers<[1], [0], [0], [1], [0, 0, 1, 1], [], []>} : vector<16x64xbf16>, vector<64x32xbf16>, vector<16x32xf32> -> vector<16x32xf32>
    %120 = arith.truncf %119 : vector<16x32xf32> to vector<16x32xbf16>
    %c12_102 = arith.constant 12 : index
    %c0_103 = arith.constant 0 : index
    %c0_104 = arith.constant 0 : index
    %121 = vector.load %arg4[%c12_102, %c0_103, %c0_104] : memref<16x16x64xbf16, #tpu.memory_space<vmem>>, vector<1x16x64xbf16>
    %122 = vector.shape_cast %121 : vector<1x16x64xbf16> to vector<16x64xbf16>
    %cst_105 = arith.constant dense<0.000000e+00> : vector<16x32xf32>
    %123 = tpu.matmul %122, %72, %cst_105 {dimension_numbers = #tpu.dot_dimension_numbers<[1], [0], [0], [1], [0, 0, 1, 1], [], []>} : vector<16x64xbf16>, vector<64x32xbf16>, vector<16x32xf32> -> vector<16x32xf32>
    %124 = arith.truncf %123 : vector<16x32xf32> to vector<16x32xbf16>
    %c13_106 = arith.constant 13 : index
    %c0_107 = arith.constant 0 : index
    %c0_108 = arith.constant 0 : index
    %125 = vector.load %arg4[%c13_106, %c0_107, %c0_108] : memref<16x16x64xbf16, #tpu.memory_space<vmem>>, vector<1x16x64xbf16>
    %126 = vector.shape_cast %125 : vector<1x16x64xbf16> to vector<16x64xbf16>
    %cst_109 = arith.constant dense<0.000000e+00> : vector<16x32xf32>
    %127 = tpu.matmul %126, %72, %cst_109 {dimension_numbers = #tpu.dot_dimension_numbers<[1], [0], [0], [1], [0, 0, 1, 1], [], []>} : vector<16x64xbf16>, vector<64x32xbf16>, vector<16x32xf32> -> vector<16x32xf32>
    %128 = arith.truncf %127 : vector<16x32xf32> to vector<16x32xbf16>
    %c14_110 = arith.constant 14 : index
    %c0_111 = arith.constant 0 : index
    %c0_112 = arith.constant 0 : index
    %129 = vector.load %arg4[%c14_110, %c0_111, %c0_112] : memref<16x16x64xbf16, #tpu.memory_space<vmem>>, vector<1x16x64xbf16>
    %130 = vector.shape_cast %129 : vector<1x16x64xbf16> to vector<16x64xbf16>
    %cst_113 = arith.constant dense<0.000000e+00> : vector<16x32xf32>
    %131 = tpu.matmul %130, %72, %cst_113 {dimension_numbers = #tpu.dot_dimension_numbers<[1], [0], [0], [1], [0, 0, 1, 1], [], []>} : vector<16x64xbf16>, vector<64x32xbf16>, vector<16x32xf32> -> vector<16x32xf32>
    %132 = arith.truncf %131 : vector<16x32xf32> to vector<16x32xbf16>
    %c15_114 = arith.constant 15 : index
    %c0_115 = arith.constant 0 : index
    %c0_116 = arith.constant 0 : index
    %133 = vector.load %arg4[%c15_114, %c0_115, %c0_116] : memref<16x16x64xbf16, #tpu.memory_space<vmem>>, vector<1x16x64xbf16>
    %134 = vector.shape_cast %133 : vector<1x16x64xbf16> to vector<16x64xbf16>
    %cst_117 = arith.constant dense<0.000000e+00> : vector<16x32xf32>
    %135 = tpu.matmul %134, %72, %cst_117 {dimension_numbers = #tpu.dot_dimension_numbers<[1], [0], [0], [1], [0, 0, 1, 1], [], []>} : vector<16x64xbf16>, vector<64x32xbf16>, vector<16x32xf32> -> vector<16x32xf32>
    %136 = arith.truncf %135 : vector<16x32xf32> to vector<16x32xbf16>
    %137 = tpu.concatenate %76, %80, %84, %88, %92, %96, %100, %104, %108, %112, %116, %120, %124, %128, %132, %136 in 1 : vector<16x32xbf16>, vector<16x32xbf16>, vector<16x32xbf16>, vector<16x32xbf16>, vector<16x32xbf16>, vector<16x32xbf16>, vector<16x32xbf16>, vector<16x32xbf16>, vector<16x32xbf16>, vector<16x32xbf16>, vector<16x32xbf16>, vector<16x32xbf16>, vector<16x32xbf16>, vector<16x32xbf16>, vector<16x32xbf16>, vector<16x32xbf16> -> vector<16x512xbf16>
    %c0_118 = arith.constant 0 : index
    %c0_119 = arith.constant 0 : index
    %138 = vector.load %arg5[%c0_118, %c0_119] : memref<512x64xbf16, #tpu.memory_space<vmem>>, vector<512x64xbf16>
    %cst_120 = arith.constant dense<0.000000e+00> : vector<16x64xf32>
    %139 = tpu.matmul %137, %138, %cst_120 {dimension_numbers = #tpu.dot_dimension_numbers<[1], [0], [0], [1], [0, 0, 1, 1], [], []>} : vector<16x512xbf16>, vector<512x64xbf16>, vector<16x64xf32> -> vector<16x64xf32>
    %c0_121 = arith.constant 0 : index
    %c0_122 = arith.constant 0 : index
    %140 = vector.load %arg6[%c0_121, %c0_122] : memref<1x64xf32, #tpu.memory_space<vmem>>, vector<1x64xf32>
    %141 = vector.broadcast %140 : vector<1x64xf32> to vector<16x64xf32>
    %142 = arith.addf %139, %141 : vector<16x64xf32>
    %cst_123 = arith.constant 2.000000e-01 : f32
    %143 = vector.broadcast %cst_123 : f32 to vector<16x64xf32>
    %144 = arith.mulf %143, %142 : vector<16x64xf32>
    %145 = arith.maximumf %142, %144 : vector<16x64xf32>
    %146 = arith.truncf %145 : vector<16x64xf32> to vector<16x64xbf16>
    %c0_124 = arith.constant 0 : index
    %c0_125 = arith.constant 0 : index
    %c0_126 = arith.constant 0 : index
    %147 = vector.load %arg7[%c0_124, %c0_125, %c0_126] : memref<16x4x16xbf16, #tpu.memory_space<vmem>>, vector<1x4x16xbf16>
    %148 = vector.shape_cast %147 : vector<1x4x16xbf16> to vector<4x16xbf16>
    %cst_127 = arith.constant dense<0.000000e+00> : vector<4x64xf32>
    %149 = tpu.matmul %148, %146, %cst_127 {dimension_numbers = #tpu.dot_dimension_numbers<[1], [0], [0], [1], [0, 0, 1, 1], [], []>} : vector<4x16xbf16>, vector<16x64xbf16>, vector<4x64xf32> -> vector<4x64xf32>
    %150 = arith.truncf %149 : vector<4x64xf32> to vector<4x64xbf16>
    %c1_128 = arith.constant 1 : index
    %c0_129 = arith.constant 0 : index
    %c0_130 = arith.constant 0 : index
    %151 = vector.load %arg7[%c1_128, %c0_129, %c0_130] : memref<16x4x16xbf16, #tpu.memory_space<vmem>>, vector<1x4x16xbf16>
    %152 = vector.shape_cast %151 : vector<1x4x16xbf16> to vector<4x16xbf16>
    %cst_131 = arith.constant dense<0.000000e+00> : vector<4x64xf32>
    %153 = tpu.matmul %152, %146, %cst_131 {dimension_numbers = #tpu.dot_dimension_numbers<[1], [0], [0], [1], [0, 0, 1, 1], [], []>} : vector<4x16xbf16>, vector<16x64xbf16>, vector<4x64xf32> -> vector<4x64xf32>
    %154 = arith.truncf %153 : vector<4x64xf32> to vector<4x64xbf16>
    %c2_132 = arith.constant 2 : index
    %c0_133 = arith.constant 0 : index
    %c0_134 = arith.constant 0 : index
    %155 = vector.load %arg7[%c2_132, %c0_133, %c0_134] : memref<16x4x16xbf16, #tpu.memory_space<vmem>>, vector<1x4x16xbf16>
    %156 = vector.shape_cast %155 : vector<1x4x16xbf16> to vector<4x16xbf16>
    %cst_135 = arith.constant dense<0.000000e+00> : vector<4x64xf32>
    %157 = tpu.matmul %156, %146, %cst_135 {dimension_numbers = #tpu.dot_dimension_numbers<[1], [0], [0], [1], [0, 0, 1, 1], [], []>} : vector<4x16xbf16>, vector<16x64xbf16>, vector<4x64xf32> -> vector<4x64xf32>
    %158 = arith.truncf %157 : vector<4x64xf32> to vector<4x64xbf16>
    %c3_136 = arith.constant 3 : index
    %c0_137 = arith.constant 0 : index
    %c0_138 = arith.constant 0 : index
    %159 = vector.load %arg7[%c3_136, %c0_137, %c0_138] : memref<16x4x16xbf16, #tpu.memory_space<vmem>>, vector<1x4x16xbf16>
    %160 = vector.shape_cast %159 : vector<1x4x16xbf16> to vector<4x16xbf16>
    %cst_139 = arith.constant dense<0.000000e+00> : vector<4x64xf32>
    %161 = tpu.matmul %160, %146, %cst_139 {dimension_numbers = #tpu.dot_dimension_numbers<[1], [0], [0], [1], [0, 0, 1, 1], [], []>} : vector<4x16xbf16>, vector<16x64xbf16>, vector<4x64xf32> -> vector<4x64xf32>
    %162 = arith.truncf %161 : vector<4x64xf32> to vector<4x64xbf16>
    %c4_140 = arith.constant 4 : index
    %c0_141 = arith.constant 0 : index
    %c0_142 = arith.constant 0 : index
    %163 = vector.load %arg7[%c4_140, %c0_141, %c0_142] : memref<16x4x16xbf16, #tpu.memory_space<vmem>>, vector<1x4x16xbf16>
    %164 = vector.shape_cast %163 : vector<1x4x16xbf16> to vector<4x16xbf16>
    %cst_143 = arith.constant dense<0.000000e+00> : vector<4x64xf32>
    %165 = tpu.matmul %164, %146, %cst_143 {dimension_numbers = #tpu.dot_dimension_numbers<[1], [0], [0], [1], [0, 0, 1, 1], [], []>} : vector<4x16xbf16>, vector<16x64xbf16>, vector<4x64xf32> -> vector<4x64xf32>
    %166 = arith.truncf %165 : vector<4x64xf32> to vector<4x64xbf16>
    %c5_144 = arith.constant 5 : index
    %c0_145 = arith.constant 0 : index
    %c0_146 = arith.constant 0 : index
    %167 = vector.load %arg7[%c5_144, %c0_145, %c0_146] : memref<16x4x16xbf16, #tpu.memory_space<vmem>>, vector<1x4x16xbf16>
    %168 = vector.shape_cast %167 : vector<1x4x16xbf16> to vector<4x16xbf16>
    %cst_147 = arith.constant dense<0.000000e+00> : vector<4x64xf32>
    %169 = tpu.matmul %168, %146, %cst_147 {dimension_numbers = #tpu.dot_dimension_numbers<[1], [0], [0], [1], [0, 0, 1, 1], [], []>} : vector<4x16xbf16>, vector<16x64xbf16>, vector<4x64xf32> -> vector<4x64xf32>
    %170 = arith.truncf %169 : vector<4x64xf32> to vector<4x64xbf16>
    %c6_148 = arith.constant 6 : index
    %c0_149 = arith.constant 0 : index
    %c0_150 = arith.constant 0 : index
    %171 = vector.load %arg7[%c6_148, %c0_149, %c0_150] : memref<16x4x16xbf16, #tpu.memory_space<vmem>>, vector<1x4x16xbf16>
    %172 = vector.shape_cast %171 : vector<1x4x16xbf16> to vector<4x16xbf16>
    %cst_151 = arith.constant dense<0.000000e+00> : vector<4x64xf32>
    %173 = tpu.matmul %172, %146, %cst_151 {dimension_numbers = #tpu.dot_dimension_numbers<[1], [0], [0], [1], [0, 0, 1, 1], [], []>} : vector<4x16xbf16>, vector<16x64xbf16>, vector<4x64xf32> -> vector<4x64xf32>
    %174 = arith.truncf %173 : vector<4x64xf32> to vector<4x64xbf16>
    %c7_152 = arith.constant 7 : index
    %c0_153 = arith.constant 0 : index
    %c0_154 = arith.constant 0 : index
    %175 = vector.load %arg7[%c7_152, %c0_153, %c0_154] : memref<16x4x16xbf16, #tpu.memory_space<vmem>>, vector<1x4x16xbf16>
    %176 = vector.shape_cast %175 : vector<1x4x16xbf16> to vector<4x16xbf16>
    %cst_155 = arith.constant dense<0.000000e+00> : vector<4x64xf32>
    %177 = tpu.matmul %176, %146, %cst_155 {dimension_numbers = #tpu.dot_dimension_numbers<[1], [0], [0], [1], [0, 0, 1, 1], [], []>} : vector<4x16xbf16>, vector<16x64xbf16>, vector<4x64xf32> -> vector<4x64xf32>
    %178 = arith.truncf %177 : vector<4x64xf32> to vector<4x64xbf16>
    %c8_156 = arith.constant 8 : index
    %c0_157 = arith.constant 0 : index
    %c0_158 = arith.constant 0 : index
    %179 = vector.load %arg7[%c8_156, %c0_157, %c0_158] : memref<16x4x16xbf16, #tpu.memory_space<vmem>>, vector<1x4x16xbf16>
    %180 = vector.shape_cast %179 : vector<1x4x16xbf16> to vector<4x16xbf16>
    %cst_159 = arith.constant dense<0.000000e+00> : vector<4x64xf32>
    %181 = tpu.matmul %180, %146, %cst_159 {dimension_numbers = #tpu.dot_dimension_numbers<[1], [0], [0], [1], [0, 0, 1, 1], [], []>} : vector<4x16xbf16>, vector<16x64xbf16>, vector<4x64xf32> -> vector<4x64xf32>
    %182 = arith.truncf %181 : vector<4x64xf32> to vector<4x64xbf16>
    %c9_160 = arith.constant 9 : index
    %c0_161 = arith.constant 0 : index
    %c0_162 = arith.constant 0 : index
    %183 = vector.load %arg7[%c9_160, %c0_161, %c0_162] : memref<16x4x16xbf16, #tpu.memory_space<vmem>>, vector<1x4x16xbf16>
    %184 = vector.shape_cast %183 : vector<1x4x16xbf16> to vector<4x16xbf16>
    %cst_163 = arith.constant dense<0.000000e+00> : vector<4x64xf32>
    %185 = tpu.matmul %184, %146, %cst_163 {dimension_numbers = #tpu.dot_dimension_numbers<[1], [0], [0], [1], [0, 0, 1, 1], [], []>} : vector<4x16xbf16>, vector<16x64xbf16>, vector<4x64xf32> -> vector<4x64xf32>
    %186 = arith.truncf %185 : vector<4x64xf32> to vector<4x64xbf16>
    %c10_164 = arith.constant 10 : index
    %c0_165 = arith.constant 0 : index
    %c0_166 = arith.constant 0 : index
    %187 = vector.load %arg7[%c10_164, %c0_165, %c0_166] : memref<16x4x16xbf16, #tpu.memory_space<vmem>>, vector<1x4x16xbf16>
    %188 = vector.shape_cast %187 : vector<1x4x16xbf16> to vector<4x16xbf16>
    %cst_167 = arith.constant dense<0.000000e+00> : vector<4x64xf32>
    %189 = tpu.matmul %188, %146, %cst_167 {dimension_numbers = #tpu.dot_dimension_numbers<[1], [0], [0], [1], [0, 0, 1, 1], [], []>} : vector<4x16xbf16>, vector<16x64xbf16>, vector<4x64xf32> -> vector<4x64xf32>
    %190 = arith.truncf %189 : vector<4x64xf32> to vector<4x64xbf16>
    %c11_168 = arith.constant 11 : index
    %c0_169 = arith.constant 0 : index
    %c0_170 = arith.constant 0 : index
    %191 = vector.load %arg7[%c11_168, %c0_169, %c0_170] : memref<16x4x16xbf16, #tpu.memory_space<vmem>>, vector<1x4x16xbf16>
    %192 = vector.shape_cast %191 : vector<1x4x16xbf16> to vector<4x16xbf16>
    %cst_171 = arith.constant dense<0.000000e+00> : vector<4x64xf32>
    %193 = tpu.matmul %192, %146, %cst_171 {dimension_numbers = #tpu.dot_dimension_numbers<[1], [0], [0], [1], [0, 0, 1, 1], [], []>} : vector<4x16xbf16>, vector<16x64xbf16>, vector<4x64xf32> -> vector<4x64xf32>
    %194 = arith.truncf %193 : vector<4x64xf32> to vector<4x64xbf16>
    %c12_172 = arith.constant 12 : index
    %c0_173 = arith.constant 0 : index
    %c0_174 = arith.constant 0 : index
    %195 = vector.load %arg7[%c12_172, %c0_173, %c0_174] : memref<16x4x16xbf16, #tpu.memory_space<vmem>>, vector<1x4x16xbf16>
    %196 = vector.shape_cast %195 : vector<1x4x16xbf16> to vector<4x16xbf16>
    %cst_175 = arith.constant dense<0.000000e+00> : vector<4x64xf32>
    %197 = tpu.matmul %196, %146, %cst_175 {dimension_numbers = #tpu.dot_dimension_numbers<[1], [0], [0], [1], [0, 0, 1, 1], [], []>} : vector<4x16xbf16>, vector<16x64xbf16>, vector<4x64xf32> -> vector<4x64xf32>
    %198 = arith.truncf %197 : vector<4x64xf32> to vector<4x64xbf16>
    %c13_176 = arith.constant 13 : index
    %c0_177 = arith.constant 0 : index
    %c0_178 = arith.constant 0 : index
    %199 = vector.load %arg7[%c13_176, %c0_177, %c0_178] : memref<16x4x16xbf16, #tpu.memory_space<vmem>>, vector<1x4x16xbf16>
    %200 = vector.shape_cast %199 : vector<1x4x16xbf16> to vector<4x16xbf16>
    %cst_179 = arith.constant dense<0.000000e+00> : vector<4x64xf32>
    %201 = tpu.matmul %200, %146, %cst_179 {dimension_numbers = #tpu.dot_dimension_numbers<[1], [0], [0], [1], [0, 0, 1, 1], [], []>} : vector<4x16xbf16>, vector<16x64xbf16>, vector<4x64xf32> -> vector<4x64xf32>
    %202 = arith.truncf %201 : vector<4x64xf32> to vector<4x64xbf16>
    %c14_180 = arith.constant 14 : index
    %c0_181 = arith.constant 0 : index
    %c0_182 = arith.constant 0 : index
    %203 = vector.load %arg7[%c14_180, %c0_181, %c0_182] : memref<16x4x16xbf16, #tpu.memory_space<vmem>>, vector<1x4x16xbf16>
    %204 = vector.shape_cast %203 : vector<1x4x16xbf16> to vector<4x16xbf16>
    %cst_183 = arith.constant dense<0.000000e+00> : vector<4x64xf32>
    %205 = tpu.matmul %204, %146, %cst_183 {dimension_numbers = #tpu.dot_dimension_numbers<[1], [0], [0], [1], [0, 0, 1, 1], [], []>} : vector<4x16xbf16>, vector<16x64xbf16>, vector<4x64xf32> -> vector<4x64xf32>
    %206 = arith.truncf %205 : vector<4x64xf32> to vector<4x64xbf16>
    %c15_184 = arith.constant 15 : index
    %c0_185 = arith.constant 0 : index
    %c0_186 = arith.constant 0 : index
    %207 = vector.load %arg7[%c15_184, %c0_185, %c0_186] : memref<16x4x16xbf16, #tpu.memory_space<vmem>>, vector<1x4x16xbf16>
    %208 = vector.shape_cast %207 : vector<1x4x16xbf16> to vector<4x16xbf16>
    %cst_187 = arith.constant dense<0.000000e+00> : vector<4x64xf32>
    %209 = tpu.matmul %208, %146, %cst_187 {dimension_numbers = #tpu.dot_dimension_numbers<[1], [0], [0], [1], [0, 0, 1, 1], [], []>} : vector<4x16xbf16>, vector<16x64xbf16>, vector<4x64xf32> -> vector<4x64xf32>
    %210 = arith.truncf %209 : vector<4x64xf32> to vector<4x64xbf16>
    %211 = tpu.concatenate %150, %154, %158, %162, %166, %170, %174, %178, %182, %186, %190, %194, %198, %202, %206, %210 in 1 : vector<4x64xbf16>, vector<4x64xbf16>, vector<4x64xbf16>, vector<4x64xbf16>, vector<4x64xbf16>, vector<4x64xbf16>, vector<4x64xbf16>, vector<4x64xbf16>, vector<4x64xbf16>, vector<4x64xbf16>, vector<4x64xbf16>, vector<4x64xbf16>, vector<4x64xbf16>, vector<4x64xbf16>, vector<4x64xbf16>, vector<4x64xbf16> -> vector<4x1024xbf16>
    %c0_188 = arith.constant 0 : index
    %c0_189 = arith.constant 0 : index
    %212 = vector.load %arg8[%c0_188, %c0_189] : memref<1024x128xbf16, #tpu.memory_space<vmem>>, vector<1024x128xbf16>
    %cst_190 = arith.constant dense<0.000000e+00> : vector<4x128xf32>
    %213 = tpu.matmul %211, %212, %cst_190 {dimension_numbers = #tpu.dot_dimension_numbers<[1], [0], [0], [1], [0, 0, 1, 1], [], []>} : vector<4x1024xbf16>, vector<1024x128xbf16>, vector<4x128xf32> -> vector<4x128xf32>
    %c0_191 = arith.constant 0 : index
    %c0_192 = arith.constant 0 : index
    %214 = vector.load %arg9[%c0_191, %c0_192] : memref<1x128xf32, #tpu.memory_space<vmem>>, vector<1x128xf32>
    %215 = vector.broadcast %214 : vector<1x128xf32> to vector<4x128xf32>
    %216 = arith.addf %213, %215 : vector<4x128xf32>
    %cst_193 = arith.constant 2.000000e-01 : f32
    %217 = vector.broadcast %cst_193 : f32 to vector<4x128xf32>
    %218 = arith.mulf %217, %216 : vector<4x128xf32>
    %219 = arith.maximumf %216, %218 : vector<4x128xf32>
    %c0_194 = arith.constant 0 : index
    %c0_195 = arith.constant 0 : index
    %220 = vector.load %arg10[%c0_194, %c0_195] : memref<1x128xf32, #tpu.memory_space<vmem>>, vector<1x128xf32>
    %221 = vector.broadcast %220 : vector<1x128xf32> to vector<4x128xf32>
    %222 = arith.mulf %219, %221 : vector<4x128xf32>
    %cst_196 = arith.constant dense<0.000000e+00> : vector<4xf32>
    %223 = vector.multi_reduction <add>, %222, %cst_196 [1] : vector<4x128xf32> to vector<4xf32>
    %224 = vector.shape_cast %223 : vector<4xf32> to vector<4x1xf32>
    %225 = arith.negf %224 : vector<4x1xf32>
    %226 = math.exp %225 : vector<4x1xf32>
    %cst_197 = arith.constant 1.000000e+00 : f32
    %227 = vector.broadcast %cst_197 : f32 to vector<4x1xf32>
    %228 = arith.addf %227, %226 : vector<4x1xf32>
    %229 = arith.divf %227, %228 : vector<4x1xf32>
    %c0_198 = arith.constant 0 : index
    %c0_199 = arith.constant 0 : index
    %c0_200 = arith.constant 0 : index
    %230 = vector.load %arg11[%c0_198, %c0_199, %c0_200] : memref<1x4x1xf32, #tpu.memory_space<vmem>>, vector<1x4x1xf32>
    %231 = vector.shape_cast %230 : vector<1x4x1xf32> to vector<4x1xf32>
    %232 = vector.shape_cast %229 : vector<4x1xf32> to vector<1x4x1xf32>
    tpu.vector_store %arg11[%c0_198, %c0_199, %c0_200], %232 {strides = array<i32>} : memref<1x4x1xf32, #tpu.memory_space<vmem>>, vector<1x4x1xf32>,
    return
  }
  func.func @transform_0(%arg0: i32) -> (i32, i32, i32) {
    %c0_i32 = arith.constant 0 : i32
    %c0_i32_0 = arith.constant 0 : i32
    %c0_i32_1 = arith.constant 0 : i32
    return %arg0, %c0_i32, %c0_i32_0 : i32, i32, i32
  }
  func.func @transform_1(%arg0: i32) -> (i32, i32, i32) {
    %c0_i32 = arith.constant 0 : i32
    %c0_i32_0 = arith.constant 0 : i32
    %c0_i32_1 = arith.constant 0 : i32
    %c0_i32_2 = arith.constant 0 : i32
    return %c0_i32, %c0_i32_0, %c0_i32_1 : i32, i32, i32
  }
  func.func @transform_2(%arg0: i32) -> (i32, i32) {
    %c0_i32 = arith.constant 0 : i32
    %c0_i32_0 = arith.constant 0 : i32
    %c0_i32_1 = arith.constant 0 : i32
    return %c0_i32, %c0_i32_0 : i32, i32
  }
  func.func @transform_3(%arg0: i32) -> (i32, i32, i32) {
    %c0_i32 = arith.constant 0 : i32
    %c0_i32_0 = arith.constant 0 : i32
    %c0_i32_1 = arith.constant 0 : i32
    %c0_i32_2 = arith.constant 0 : i32
    return %c0_i32, %c0_i32_0, %c0_i32_1 : i32, i32, i32
  }
  func.func @transform_4(%arg0: i32) -> (i32, i32) {
    %c0_i32 = arith.constant 0 : i32
    %c0_i32_0 = arith.constant 0 : i32
    %c0_i32_1 = arith.constant 0 : i32
    return %c0_i32, %c0_i32_0 : i32, i32
  }
  func.func @transform_5(%arg0: i32) -> (i32, i32) {
    %c0_i32 = arith.constant 0 : i32
    %c0_i32_0 = arith.constant 0 : i32
    %c0_i32_1 = arith.constant 0 : i32
    return %c0_i32, %c0_i32_0 : i32, i32
  }
  func.func @transform_6(%arg0: i32) -> (i32, i32, i32) {
    %c0_i32 = arith.constant 0 : i32
    %c0_i32_0 = arith.constant 0 : i32
    %c0_i32_1 = arith.constant 0 : i32
    %c0_i32_2 = arith.constant 0 : i32
    return %c0_i32, %c0_i32_0, %c0_i32_1 : i32, i32, i32
  }
  func.func @transform_7(%arg0: i32) -> (i32, i32) {
    %c0_i32 = arith.constant 0 : i32
    %c0_i32_0 = arith.constant 0 : i32
    %c0_i32_1 = arith.constant 0 : i32
    return %c0_i32, %c0_i32_0 : i32, i32
  }
  func.func @transform_8(%arg0: i32) -> (i32, i32) {
    %c0_i32 = arith.constant 0 : i32
    %c0_i32_0 = arith.constant 0 : i32
    %c0_i32_1 = arith.constant 0 : i32
    return %c0_i32, %c0_i32_0 : i32, i32
  }
  func.func @transform_9(%arg0: i32) -> (i32, i32) {
    %c0_i32 = arith.constant 0 : i32
    %c0_i32_0 = arith.constant 0 : i32
    %c0_i32_1 = arith.constant 0 : i32
    return %c0_i32, %c0_i32_0 : i32, i32
  }
  func.func @transform_10(%arg0: i32) -> (i32, i32, i32) {
    %c0_i32 = arith.constant 0 : i32
    %c0_i32_0 = arith.constant 0 : i32
    %c0_i32_1 = arith.constant 0 : i32
    return %arg0, %c0_i32, %c0_i32_0 : i32, i32, i32
  }
}

</mosaic_0001>

<bundles_post_ra>
// kernel: discriminator_forward.1
= control target key start
LH: loop header
LB: loop body
LE: loop exit
PB: predicated region body
PF: predicated region fallthrough
CT: control target
= control target key end

     0   :  { %s7793_s13 = smov 0   ;;  %s9550_s0 = inlined_call_operand.vmem [shape: bf16[2,256,8], index: 0, kind: input, shape index: {}]   ;;  %s9551_s1 = inlined_call_operand.vmem [shape: bf16[16,64,256], index: 1, kind: input, shape index: {}]   ;;  %s9552_s2 = inlined_call_operand.vmem [shape: bf16[128,32], index: 2, kind: input, shape index: {}]   ;;  %s9553_s3 = inlined_call_operand.vmem [shape: bf16[16,16,64], index: 3, kind: input, shape index: {}]   ;;  %s9554_s4 = inlined_call_operand.vmem [shape: bf16[512,64], index: 4, kind: input, shape index: {}]   ;;  %s9555_s5 = inlined_call_operand.vmem [shape: f32[1,64], index: 5, kind: input, shape index: {}]   ;;  %s9556_s6 = inlined_call_operand.vmem [shape: bf16[16,4,16], index: 6, kind: input, shape index: {}]   ;;  %s9557_s7 = inlined_call_operand.vmem [shape: bf16[1024,128], index: 7, kind: input, shape index: {}]   ;;  %s9558_s8 = inlined_call_operand.vmem [shape: f32[1,128], index: 8, kind: input, shape index: {}]   ;;  %s9559_s9 = inlined_call_operand.vmem [shape: f32[1,128], index: 9, kind: input, shape index: {}]   ;;  %s9560_s10 = inlined_call_operand.vmem [shape: f32[2,4,1], index: 10, kind: output, shape index: {}]  }
   0x1 LB: > { %s5656_s14 = sadd.s32 4294967295, %s7719_s13   ;;  %p5660_p0 = scmp.ge.s32.totalorder %s7719_s13, 1  ;;  %s7719_s13 = sphi %s7793_s13, %s20_s13  }
   0x2   : > { %p312_p1 = scmp.lt.s32.totalorder %s7719_s13, 3 }
   0x4   : > { %p313_p2 = pnand %p5660_p0, %p312_p1 }
   0x5   : > { %p349_p3 = scmp.lt.s32.totalorder (!%p313_p2), %s5656_s14, 1  ;;  %s7721_s23 = smov (!%p313_p2), 8  }
   0x6   : > { %316 = sbr.rel (%p313_p2) target bundleno = 2233 (0x8b9), region = 60  ;;  %s7723_s20 = smov (!%p313_p2), 16  }
   0x7   : > { %s7724_s16 = smov (!%p313_p2), 32   ;;  %s7725_s17 = smov (!%p313_p2), 40  }
   0x8   : > { %s7726_s18 = smov (!%p313_p2), 48   ;;  %s7730_s21 = smov (!%p313_p2), 80  }
   0x9   : > { %s7731_s24 = smov (!%p313_p2), 88   ;;  %s7732_s26 = smov (!%p313_p2), 96  }
   0xa   : > { %s7733_s29 = smov (!%p313_p2), 104   ;;  %s7734_s27 = smov (!%p313_p2), 112  }
   0xb   : > { %v7383_v0 = vld [vmem:[%s9551_s1 + $0x4] ss:$8 sps:$4 sm:$0xff]   ;;  %s9562_s14 = smov (!%p349_p3, %s5656_s14), 1  ;;  %v7381_v18 = vld [vmem:[%s9551_s1] ss:$8 sps:$4 sm:$0xff]   ;;  %vm2554_vm0 = vcmask 64512  }
   0xc   : > { %v7386_v1 = vld [vmem:[%s9551_s1 + $0x44] ss:$8 sps:$4 sm:$0xff]   ;;  %567 = vmatprep.mubr.bf16.mxu0 %v7383_v0  ;;  %s6131_s19 = sshll.u32 %s9562_s14, 7  ;;  %v7384_v19 = vld [vmem:[%s9551_s1 + $0x40] ss:$8 sps:$4 sm:$0xff]   ;;  %vm2567_vm1 = vcmask 130048  }
   0xd   : > { %685 = vmatprep.mubr.bf16.mxu1 %v7386_v1  ;;  %s7813_s22 = scalar_lea.vmem %s9550_s0, %s6131_s19  ;;  %v7387_v20 = vld [vmem:[%s9551_s1 + $0x14] ss:$8 sps:$4 sm:$0xff]   ;;  %v7391_v22 = vld [vmem:[%s9551_s1 + $0x10] ss:$8 sps:$4 sm:$0xff]   ;;  %v7393_v24 = vld [vmem:[%s9551_s1 + $0x24] ss:$8 sps:$4 sm:$0xff]  }
   0xe   : > { %v7816_v2 = vld [vmem:[%s7813_s22 + $0x78] sm:$0xff]   ;;  %v7824_v4 = vld [vmem:[%s7813_s22 + $0x70] sm:$0xff]   ;;  %v7834_v6 = vld [vmem:[%s7813_s22 + $0x68] sm:$0xff]   ;;  %s7727_s19 = smov 56   ;;  %vm2576_vm2 = vcmask 195584   ;;  %vm2585_vm3 = vcmask 261120  }
   0xf   : > { %v7819_v3 = vld [vmem:[%s7813_s22 + $0x38] sm:$0xff]   ;;  %6132 = vmatprep.subr.bf16.mxu0 %v7816_v2  ;;  %6172 = vmatprep.subr.bf16.mxu1 %v7816_v2  ;;  %v7829_v5 = vld [vmem:[%s7813_s22 + $0x30] sm:$0xff]   ;;  %v7839_v7 = vld [vmem:[%s7813_s22 + $0x28] sm:$0xff]   ;;  %vm2594_vm4 = vcmask 326656   ;;  %s7735_s28 = smov 120   ;;  %vm2603_vm5 = vcmask 392192  }
  0x10   : > { %6133 = vmatpush3.bf16.msra.mxu0 %v7819_v3  ;;  %6173 = vmatpush3.bf16.msra.mxu1 %v7819_v3  ;;  %v7844_v8 = vld [vmem:[%s7813_s22 + $0x60] sm:$0xff]   ;;  %v7854_v10 = vld [vmem:[%s7813_s22 + $0x58] sm:$0xff]   ;;  %v7864_v12 = vld [vmem:[%s7813_s22 + $0x50] sm:$0xff]   ;;  %vm2612_vm6 = vcmask 457728   ;;  %vm2621_vm7 = vcmask 523264   ;;  %vm2630_vm8 = vcmask 588800  }
  0x11   : > { %6134 = vmatprep.subr.bf16.mxu0 %v7824_v4  ;;  %6174 = vmatprep.subr.bf16.mxu1 %v7824_v4  ;;  %v7849_v9 = vld [vmem:[%s7813_s22 + $0x20] sm:$0xff]   ;;  %v7859_v11 = vld [vmem:[%s7813_s22 + $0x18] sm:$0xff]   ;;  %v7869_v13 = vld [vmem:[%s7813_s22 + $0x10] sm:$0xff]   ;;  %vm2639_vm9 = vcmask 654336   ;;  %vm2648_vm10 = vcmask 719872   ;;  %vm2657_vm11 = vcmask 785408  }
  0x12   : > { %v7874_v14 = vld [vmem:[%s7813_s22 + $0x48] sm:$0xff]   ;;  %v7884_v16 = vld [vmem:[%s7813_s22 + $0x40] sm:$0xff]   ;;  %v7389_v21 = vld [vmem:[%s9551_s1 + $0x54] ss:$8 sps:$4 sm:$0xff]   ;;  %vm2666_vm12 = vcmask 850944   ;;  %vm2675_vm13 = vcmask 916480  }
  0x13   : > { %v7879_v15 = vld [vmem:[%s7813_s22 + $0x8] sm:$0xff]   ;;  %v7889_v17 = vld [vmem:[%s7813_s22] sm:$0xff]   ;;  %v7392_v23 = vld [vmem:[%s9551_s1 + $0x50] ss:$8 sps:$4 sm:$0xff]   ;;  %vm2684_vm14 = vcmask 982016   ;;  %vm7737_vm15 = vmmov 0  }
  0x14   : > { %6135 = vmatpush3.bf16.msra.mxu0 %v7829_v5  ;;  %6175 = vmatpush3.bf16.msra.mxu1 %v7829_v5  ;;  %v7395_v25 = vld [vmem:[%s9551_s1 + $0x64] ss:$8 sps:$4 sm:$0xff]   ;;  %v7397_v26 = vld [vmem:[%s9551_s1 + $0x20] ss:$8 sps:$4 sm:$0xff]   ;;  %v7399_v28 = vld [vmem:[%s9551_s1 + $0x34] ss:$8 sps:$4 sm:$0xff]  }
  0x15   : > { %6136 = vmatprep.subr.bf16.mxu0 %v7834_v6  ;;  %6176 = vmatprep.subr.bf16.mxu1 %v7834_v6  ;;  %v7398_v27 = vld [vmem:[%s9551_s1 + $0x60] ss:$8 sps:$4 sm:$0xff]   ;;  %v7401_v29 = vld [vmem:[%s9551_s1 + $0x74] ss:$8 sps:$4 sm:$0xff]   ;;  %v7403_v30 = vld [vmem:[%s9551_s1 + $0x30] ss:$8 sps:$4 sm:$0xff]  }
  0x16   : > { %v7404_v31 = vld [vmem:[%s9551_s1 + $0x70] ss:$8 sps:$4 sm:$0xff]   ;;  %v7407_v32 = vld [vmem:[%s9551_s1 + $0x84] ss:$8 sps:$4 sm:$0xff]   ;;  %v7405_v34 = vld [vmem:[%s9551_s1 + $0x80] ss:$8 sps:$4 sm:$0xff]  }
  0x17   : > { %v7410_v33 = vld [vmem:[%s9551_s1 + $0xc4] ss:$8 sps:$4 sm:$0xff]   ;;  %v7408_v35 = vld [vmem:[%s9551_s1 + $0xc0] ss:$8 sps:$4 sm:$0xff]   ;;  %v7411_v36 = vld [vmem:[%s9551_s1 + $0x94] ss:$8 sps:$4 sm:$0xff]  }
  0x18   : > { %6137 = vmatpush3.bf16.msra.mxu0 %v7839_v7  ;;  %6177 = vmatpush3.bf16.msra.mxu1 %v7839_v7  ;;  %v7413_v37 = vld [vmem:[%s9551_s1 + $0xd4] ss:$8 sps:$4 sm:$0xff]   ;;  %v7415_v38 = vld [vmem:[%s9551_s1 + $0x90] ss:$8 sps:$4 sm:$0xff]   ;;  %v7417_v40 = vld [vmem:[%s9551_s1 + $0xa4] ss:$8 sps:$4 sm:$0xff]  }
  0x19   : > { %6138 = vmatprep.subr.bf16.mxu0 %v7844_v8  ;;  %6178 = vmatprep.subr.bf16.mxu1 %v7844_v8  ;;  %v7416_v39 = vld [vmem:[%s9551_s1 + $0xd0] ss:$8 sps:$4 sm:$0xff]   ;;  %v7419_v41 = vld [vmem:[%s9551_s1 + $0xe4] ss:$8 sps:$4 sm:$0xff]   ;;  %v7421_v42 = vld [vmem:[%s9551_s1 + $0xa0] ss:$8 sps:$4 sm:$0xff]  }
  0x1a   : > { %v7422_v43 = vld [vmem:[%s9551_s1 + $0xe0] ss:$8 sps:$4 sm:$0xff]   ;;  %v7423_v44 = vld [vmem:[%s9551_s1 + $0xb4] ss:$8 sps:$4 sm:$0xff]   ;;  %v7427_v46 = vld [vmem:[%s9551_s1 + $0xb0] ss:$8 sps:$4 sm:$0xff]  }
  0x1b   : > { %v7425_v45 = vld [vmem:[%s9551_s1 + $0xf4] ss:$8 sps:$4 sm:$0xff]   ;;  %v7428_v47 = vld [vmem:[%s9551_s1 + $0xf0] ss:$8 sps:$4 sm:$0xff]   ;;  %v7431_v48 = vld [vmem:[%s9551_s1 + $0x104] ss:$8 sps:$4 sm:$0xff]  }
  0x1c   : > { %6139 = vmatpush3.bf16.msra.mxu0 %v7849_v9  ;;  %6179 = vmatpush3.bf16.msra.mxu1 %v7849_v9  ;;  %v7434_v49 = vld [vmem:[%s9551_s1 + $0x144] ss:$8 sps:$4 sm:$0xff]   ;;  %v7429_v50 = vld [vmem:[%s9551_s1 + $0x100] ss:$8 sps:$4 sm:$0xff]   ;;  %v7435_v52 = vld [vmem:[%s9551_s1 + $0x114] ss:$8 sps:$4 sm:$0xff]  }
  0x1d   : > { %6140 = vmatprep.subr.bf16.mxu0 %v7854_v10  ;;  %6180 = vmatprep.subr.bf16.mxu1 %v7854_v10  ;;  %v7432_v51 = vld [vmem:[%s9551_s1 + $0x140] ss:$8 sps:$4 sm:$0xff]   ;;  %v7437_v53 = vld [vmem:[%s9551_s1 + $0x154] ss:$8 sps:$4 sm:$0xff]   ;;  %v7439_v54 = vld [vmem:[%s9551_s1 + $0x110] ss:$8 sps:$4 sm:$0xff]  }
  0x1e   : > { %v7440_v55 = vld [vmem:[%s9551_s1 + $0x150] ss:$8 sps:$4 sm:$0xff]   ;;  %v7441_v56 = vld [vmem:[%s9551_s1 + $0x124] ss:$8 sps:$4 sm:$0xff]   ;;  %v7445_v58 = vld [vmem:[%s9551_s1 + $0x120] ss:$8 sps:$4 sm:$0xff]  }
  0x1f   : > { %v7443_v57 = vld [vmem:[%s9551_s1 + $0x164] ss:$8 sps:$4 sm:$0xff]   ;;  %v7446_v59 = vld [vmem:[%s9551_s1 + $0x160] ss:$8 sps:$4 sm:$0xff]   ;;  %v7447_v60 = vld [vmem:[%s9551_s1 + $0x134] ss:$8 sps:$4 sm:$0xff]  }
  0x20   : > { %6141 = vmatpush3.bf16.msra.mxu0 %v7859_v11  ;;  %6181 = vmatpush3.bf16.msra.mxu1 %v7859_v11  ;;  %v7449_v61 = vld [vmem:[%s9551_s1 + $0x174] ss:$8 sps:$4 sm:$0xff]   ;;  %v7451_v62 = vld [vmem:[%s9551_s1 + $0x130] ss:$8 sps:$4 sm:$0xff]   ;;  %v7455_v0 = vld [vmem:[%s9551_s1 + $0x184] ss:$8 sps:$4 sm:$0xff]  }
  0x21   : > { %6142 = vmatprep.subr.bf16.mxu0 %v7864_v12  ;;  %6182 = vmatprep.subr.bf16.mxu1 %v7864_v12  ;;  %v7452_v63 = vld [vmem:[%s9551_s1 + $0x170] ss:$8 sps:$4 sm:$0xff]   ;;  %v7458_v1 = vld [vmem:[%s9551_s1 + $0x1c4] ss:$8 sps:$4 sm:$0xff]  }
  0x24   : > { %6143 = vmatpush3.bf16.msra.mxu0 %v7869_v13  ;;  %6183 = vmatpush3.bf16.msra.mxu1 %v7869_v13 }
  0x25   : > { %6144 = vmatprep.subr.bf16.mxu0 %v7874_v14  ;;  %6184 = vmatprep.subr.bf16.mxu1 %v7874_v14 }
  0x28   : > { %6145 = vmatpush3.bf16.msra.mxu0 %v7879_v15  ;;  %6185 = vmatpush3.bf16.msra.mxu1 %v7879_v15 }
  0x29   : > { %6146 = vmatprep.subr.bf16.mxu0 %v7884_v16  ;;  %6186 = vmatprep.subr.bf16.mxu1 %v7884_v16 }
  0x2c   : > { %6147 = vmatpush3.bf16.msra.mxu0 %v7889_v17  ;;  %6187 = vmatpush3.bf16.msra.mxu1 %v7889_v17 }
  0x2d   : > { %6212 = vmatprep.subr.bf16.mxu0 %v7816_v2  ;;  %6252 = vmatprep.subr.bf16.mxu1 %v7816_v2 }
  0x2f   : > { %568 = vmatmul.mubr.bf16.vlgmr.msra.gmra.mxu0 %v7381_v18  ;;  %686 = vmatmul.mubr.bf16.vlgmr.msra.gmra.mxu1 %v7384_v19  ;;  %v8198_v18 = vld [vmem:[%s7813_s22 + $0x20] sm:$0xff]   ;;  %v8203_v19 = vld [vmem:[%s7813_s22 + $0x58] sm:$0xff]  }
  0x30   : > { %6213 = vmatpush3.bf16.msra.mxu0 %v7819_v3  ;;  %6253 = vmatpush3.bf16.msra.mxu1 %v7819_v3 }
  0x31   : > { %6214 = vmatprep.subr.bf16.mxu0 %v7824_v4  ;;  %6254 = vmatprep.subr.bf16.mxu1 %v7824_v4 }
  0x32   : > { %575 = vmatprep.mubr.bf16.mxu0 %v7387_v20  ;;  %693 = vmatprep.mubr.bf16.mxu1 %v7389_v21  ;;  %v7471_v20 = vld [vmem:[%s9551_s1 + $0x1b4] ss:$8 sps:$4 sm:$0xff]  }
  0x33   : > { %v7473_v21 = vld [vmem:[%s9551_s1 + $0x1f4] ss:$8 sps:$4 sm:$0xff]  }
  0x34   : > { %6215 = vmatpush3.bf16.msra.mxu0 %v7829_v5  ;;  %6255 = vmatpush3.bf16.msra.mxu1 %v7829_v5 }
  0x35   : > { %6216 = vmatprep.subr.bf16.mxu0 %v7834_v6  ;;  %6256 = vmatprep.subr.bf16.mxu1 %v7834_v6 }
  0x37   : > { %576 = vmatmul.mubr.bf16.gmra.mxu0 %v7391_v22  ;;  %694 = vmatmul.mubr.bf16.gmra.mxu1 %v7392_v23  ;;  %v8214_v22 = vld [vmem:[%s7813_s22 + $0x18] sm:$0xff]   ;;  %v8219_v23 = vld [vmem:[%s7813_s22 + $0x50] sm:$0xff]  }
  0x38   : > { %6217 = vmatpush3.bf16.msra.mxu0 %v7839_v7  ;;  %6257 = vmatpush3.bf16.msra.mxu1 %v7839_v7 }
  0x39   : > { %6218 = vmatprep.subr.bf16.mxu0 %v7844_v8  ;;  %6258 = vmatprep.subr.bf16.mxu1 %v7844_v8 }
  0x3a   : > { %583 = vmatprep.mubr.bf16.mxu0 %v7393_v24  ;;  %701 = vmatprep.mubr.bf16.mxu1 %v7395_v25  ;;  %v7475_v24 = vld [vmem:[%s9551_s1 + $0x1b0] ss:$8 sps:$4 sm:$0xff]  }
  0x3b   : > { %v7476_v25 = vld [vmem:[%s9551_s1 + $0x1f0] ss:$8 sps:$4 sm:$0xff]  }
  0x3c   : > { %6219 = vmatpush3.bf16.msra.mxu0 %v7849_v9  ;;  %6259 = vmatpush3.bf16.msra.mxu1 %v7849_v9 }
  0x3d   : > { %6220 = vmatprep.subr.bf16.mxu0 %v7854_v10  ;;  %6260 = vmatprep.subr.bf16.mxu1 %v7854_v10 }
  0x3f   : > { %584 = vmatmul.mubr.bf16.gmra.mxu0 %v7397_v26  ;;  %702 = vmatmul.mubr.bf16.gmra.mxu1 %v7398_v27  ;;  %v8230_v26 = vld [vmem:[%s7813_s22 + $0x10] sm:$0xff]   ;;  %v8235_v27 = vld [vmem:[%s7813_s22 + $0x48] sm:$0xff]  }
  0x40   : > { %6221 = vmatpush3.bf16.msra.mxu0 %v7859_v11  ;;  %6261 = vmatpush3.bf16.msra.mxu1 %v7859_v11 }
  0x41   : > { %6222 = vmatprep.subr.bf16.mxu0 %v7864_v12  ;;  %6262 = vmatprep.subr.bf16.mxu1 %v7864_v12 }
  0x42   : > { %591 = vmatprep.mubr.bf16.mxu0 %v7399_v28  ;;  %709 = vmatprep.mubr.bf16.mxu1 %v7401_v29  ;;  %v7479_v28 = vld [vmem:[%s9551_s1 + $0x204] ss:$8 sps:$4 sm:$0xff]  }
  0x43   : > { %v7482_v29 = vld [vmem:[%s9551_s1 + $0x244] ss:$8 sps:$4 sm:$0xff]  }
  0x44   : > { %6223 = vmatpush3.bf16.msra.mxu0 %v7869_v13  ;;  %6263 = vmatpush3.bf16.msra.mxu1 %v7869_v13 }
  0x45   : > { %6224 = vmatprep.subr.bf16.mxu0 %v7874_v14  ;;  %6264 = vmatprep.subr.bf16.mxu1 %v7874_v14 }
  0x47   : > { %592 = vmatmul.mubr.bf16.gmra.mxu0 %v7403_v30  ;;  %710 = vmatmul.mubr.bf16.gmra.mxu1 %v7404_v31  ;;  %v8246_v30 = vld [vmem:[%s7813_s22 + $0x8] sm:$0xff]   ;;  %v8251_v31 = vld [vmem:[%s7813_s22 + $0x40] sm:$0xff]  }
  0x48   : > { %6225 = vmatpush3.bf16.msra.mxu0 %v7879_v15  ;;  %6265 = vmatpush3.bf16.msra.mxu1 %v7879_v15 }
  0x49   : > { %6226 = vmatprep.subr.bf16.mxu0 %v7884_v16  ;;  %6266 = vmatprep.subr.bf16.mxu1 %v7884_v16 }
  0x4a   : > { %803 = vmatprep.mubr.bf16.mxu0 %v7407_v32  ;;  %921 = vmatprep.mubr.bf16.mxu1 %v7410_v33  ;;  %v7477_v32 = vld [vmem:[%s9551_s1 + $0x200] ss:$8 sps:$4 sm:$0xff]  }
  0x4b   : > { %v7480_v33 = vld [vmem:[%s9551_s1 + $0x240] ss:$8 sps:$4 sm:$0xff]  }
  0x4c   : > { %6227 = vmatpush3.bf16.msra.mxu0 %v7889_v17  ;;  %6267 = vmatpush3.bf16.msra.mxu1 %v7889_v17 }
  0x4d   : > { %6292 = vmatprep.subr.bf16.mxu0 %v7816_v2  ;;  %6332 = vmatprep.subr.bf16.mxu1 %v7816_v2 }
  0x4f   : > { %804 = vmatmul.mubr.bf16.vlgmr.msra.gmra.mxu0 %v7405_v34  ;;  %922 = vmatmul.mubr.bf16.vlgmr.msra.gmra.mxu1 %v7408_v35  ;;  %v8262_v34 = vld [vmem:[%s7813_s22] sm:$0xff]   ;;  %v7483_v35 = vld [vmem:[%s9551_s1 + $0x214] ss:$8 sps:$4 sm:$0xff]  }
  0x50   : > { %6293 = vmatpush3.bf16.msra.mxu0 %v7819_v3  ;;  %6333 = vmatpush3.bf16.msra.mxu1 %v7819_v3 }
  0x51   : > { %6294 = vmatprep.subr.bf16.mxu0 %v7824_v4  ;;  %6334 = vmatprep.subr.bf16.mxu1 %v7824_v4 }
  0x52   : > { %811 = vmatprep.mubr.bf16.mxu0 %v7411_v36  ;;  %929 = vmatprep.mubr.bf16.mxu1 %v7413_v37  ;;  %v7485_v36 = vld [vmem:[%s9551_s1 + $0x254] ss:$8 sps:$4 sm:$0xff]  }
  0x53   : > { %v8273_v37 = vld [vmem:[%s7813_s22 + $0x78] sm:$0xff]  }
  0x54   : > { %6295 = vmatpush3.bf16.msra.mxu0 %v7829_v5  ;;  %6335 = vmatpush3.bf16.msra.mxu1 %v7829_v5 }
  0x55   : > { %6296 = vmatprep.subr.bf16.mxu0 %v7834_v6  ;;  %6336 = vmatprep.subr.bf16.mxu1 %v7834_v6 }
  0x57   : > { %812 = vmatmul.mubr.bf16.gmra.mxu0 %v7415_v38  ;;  %930 = vmatmul.mubr.bf16.gmra.mxu1 %v7416_v39  ;;  %v7487_v38 = vld [vmem:[%s9551_s1 + $0x210] ss:$8 sps:$4 sm:$0xff]  }
  0x58   : > { %6297 = vmatpush3.bf16.msra.mxu0 %v7839_v7  ;;  %6337 = vmatpush3.bf16.msra.mxu1 %v7839_v7  ;;  %v7488_v39 = vld [vmem:[%s9551_s1 + $0x250] ss:$8 sps:$4 sm:$0xff]  }
  0x59   : > { %6298 = vmatprep.subr.bf16.mxu0 %v7844_v8  ;;  %6338 = vmatprep.subr.bf16.mxu1 %v7844_v8 }
  0x5a   : > { %819 = vmatprep.mubr.bf16.mxu0 %v7417_v40  ;;  %937 = vmatprep.mubr.bf16.mxu1 %v7419_v41  ;;  %v7489_v40 = vld [vmem:[%s9551_s1 + $0x224] ss:$8 sps:$4 sm:$0xff]  }
  0x5b   : > { %v7491_v41 = vld [vmem:[%s9551_s1 + $0x264] ss:$8 sps:$4 sm:$0xff]  }
  0x5c   : > { %6299 = vmatpush3.bf16.msra.mxu0 %v7849_v9  ;;  %6339 = vmatpush3.bf16.msra.mxu1 %v7849_v9 }
  0x5d   : > { %6300 = vmatprep.subr.bf16.mxu0 %v7854_v10  ;;  %6340 = vmatprep.subr.bf16.mxu1 %v7854_v10 }
  0x5f   : > { %820 = vmatmul.mubr.bf16.gmra.mxu0 %v7421_v42  ;;  %938 = vmatmul.mubr.bf16.gmra.mxu1 %v7422_v43  ;;  %v7493_v42 = vld [vmem:[%s9551_s1 + $0x220] ss:$8 sps:$4 sm:$0xff]  }
  0x60   : > { %6301 = vmatpush3.bf16.msra.mxu0 %v7859_v11  ;;  %6341 = vmatpush3.bf16.msra.mxu1 %v7859_v11  ;;  %v7494_v43 = vld [vmem:[%s9551_s1 + $0x260] ss:$8 sps:$4 sm:$0xff]  }
  0x61   : > { %6302 = vmatprep.subr.bf16.mxu0 %v7864_v12  ;;  %6342 = vmatprep.subr.bf16.mxu1 %v7864_v12 }
  0x62   : > { %827 = vmatprep.mubr.bf16.mxu0 %v7423_v44  ;;  %945 = vmatprep.mubr.bf16.mxu1 %v7425_v45  ;;  %v7495_v44 = vld [vmem:[%s9551_s1 + $0x234] ss:$8 sps:$4 sm:$0xff]  }
  0x63   : > { %v7497_v45 = vld [vmem:[%s9551_s1 + $0x274] ss:$8 sps:$4 sm:$0xff]  }
  0x64   : > { %6303 = vmatpush3.bf16.msra.mxu0 %v7869_v13  ;;  %6343 = vmatpush3.bf16.msra.mxu1 %v7869_v13 }
  0x65   : > { %6304 = vmatprep.subr.bf16.mxu0 %v7874_v14  ;;  %6344 = vmatprep.subr.bf16.mxu1 %v7874_v14 }
  0x67   : > { %828 = vmatmul.mubr.bf16.gmra.mxu0 %v7427_v46  ;;  %946 = vmatmul.mubr.bf16.gmra.mxu1 %v7428_v47  ;;  %v7499_v46 = vld [vmem:[%s9551_s1 + $0x230] ss:$8 sps:$4 sm:$0xff]  }
  0x68   : > { %6305 = vmatpush3.bf16.msra.mxu0 %v7879_v15  ;;  %6345 = vmatpush3.bf16.msra.mxu1 %v7879_v15  ;;  %v7500_v47 = vld [vmem:[%s9551_s1 + $0x270] ss:$8 sps:$4 sm:$0xff]  }
  0x69   : > { %6306 = vmatprep.subr.bf16.mxu0 %v7884_v16  ;;  %6346 = vmatprep.subr.bf16.mxu1 %v7884_v16 }
  0x6a   : > { %1039 = vmatprep.mubr.bf16.mxu0 %v7431_v48  ;;  %1157 = vmatprep.mubr.bf16.mxu1 %v7434_v49  ;;  %v7503_v48 = vld [vmem:[%s9551_s1 + $0x284] ss:$8 sps:$4 sm:$0xff]  }
  0x6b   : > { %v7506_v49 = vld [vmem:[%s9551_s1 + $0x2c4] ss:$8 sps:$4 sm:$0xff]  }
  0x6c   : > { %6307 = vmatpush3.bf16.msra.mxu0 %v7889_v17  ;;  %6347 = vmatpush3.bf16.msra.mxu1 %v7889_v17 }
  0x6d   : > { %6372 = vmatprep.subr.bf16.mxu0 %v7816_v2  ;;  %6412 = vmatprep.subr.bf16.mxu1 %v7816_v2 }
  0x6f   : > { %1040 = vmatmul.mubr.bf16.vlgmr.msra.gmra.mxu0 %v7429_v50  ;;  %1158 = vmatmul.mubr.bf16.vlgmr.msra.gmra.mxu1 %v7432_v51  ;;  %v7501_v50 = vld [vmem:[%s9551_s1 + $0x280] ss:$8 sps:$4 sm:$0xff]  }
  0x70   : > { %6373 = vmatpush3.bf16.msra.mxu0 %v7819_v3  ;;  %6413 = vmatpush3.bf16.msra.mxu1 %v7819_v3  ;;  %v7504_v51 = vld [vmem:[%s9551_s1 + $0x2c0] ss:$8 sps:$4 sm:$0xff]  }
  0x71   : > { %6374 = vmatprep.subr.bf16.mxu0 %v7824_v4  ;;  %6414 = vmatprep.subr.bf16.mxu1 %v7824_v4 }
  0x72   : > { %1047 = vmatprep.mubr.bf16.mxu0 %v7435_v52  ;;  %1165 = vmatprep.mubr.bf16.mxu1 %v7437_v53  ;;  %v7507_v52 = vld [vmem:[%s9551_s1 + $0x294] ss:$8 sps:$4 sm:$0xff]  }
  0x73   : > { %v7509_v53 = vld [vmem:[%s9551_s1 + $0x2d4] ss:$8 sps:$4 sm:$0xff]  }
  0x74   : > { %6375 = vmatpush3.bf16.msra.mxu0 %v7829_v5  ;;  %6415 = vmatpush3.bf16.msra.mxu1 %v7829_v5  ;;  %v7453_v5 = vld [vmem:[%s9551_s1 + $0x180] ss:$8 sps:$4 sm:$0xff]  }
  0x75   : > { %6376 = vmatprep.subr.bf16.mxu0 %v7834_v6  ;;  %6416 = vmatprep.subr.bf16.mxu1 %v7834_v6  ;;  %v7456_v6 = vld [vmem:[%s9551_s1 + $0x1c0] ss:$8 sps:$4 sm:$0xff]  }
  0x77   : > { %1048 = vmatmul.mubr.bf16.gmra.mxu0 %v7439_v54  ;;  %1166 = vmatmul.mubr.bf16.gmra.mxu1 %v7440_v55  ;;  %v7511_v54 = vld [vmem:[%s9551_s1 + $0x290] ss:$8 sps:$4 sm:$0xff]  }
  0x78   : > { %6377 = vmatpush3.bf16.msra.mxu0 %v7839_v7  ;;  %6417 = vmatpush3.bf16.msra.mxu1 %v7839_v7  ;;  %v7459_v7 = vld [vmem:[%s9551_s1 + $0x194] ss:$8 sps:$4 sm:$0xff]   ;;  %v7512_v55 = vld [vmem:[%s9551_s1 + $0x2d0] ss:$8 sps:$4 sm:$0xff]  }
  0x79   : > { %6378 = vmatprep.subr.bf16.mxu0 %v7844_v8  ;;  %6418 = vmatprep.subr.bf16.mxu1 %v7844_v8  ;;  %v7461_v8 = vld [vmem:[%s9551_s1 + $0x1d4] ss:$8 sps:$4 sm:$0xff]  }
  0x7a   : > { %1055 = vmatprep.mubr.bf16.mxu0 %v7441_v56  ;;  %1173 = vmatprep.mubr.bf16.mxu1 %v7443_v57  ;;  %v7513_v56 = vld [vmem:[%s9551_s1 + $0x2a4] ss:$8 sps:$4 sm:$0xff]  }
  0x7b   : > { %v7515_v57 = vld [vmem:[%s9551_s1 + $0x2e4] ss:$8 sps:$4 sm:$0xff]  }
  0x7c   : > { %6379 = vmatpush3.bf16.msra.mxu0 %v7849_v9  ;;  %6419 = vmatpush3.bf16.msra.mxu1 %v7849_v9  ;;  %v8151_v9 = vld [vmem:[%s7813_s22 + $0x38] sm:$0xff]  }
  0x7d   : > { %6380 = vmatprep.subr.bf16.mxu0 %v7854_v10  ;;  %6420 = vmatprep.subr.bf16.mxu1 %v7854_v10  ;;  %v7463_v10 = vld [vmem:[%s9551_s1 + $0x190] ss:$8 sps:$4 sm:$0xff]  }
  0x7f   : > { %1056 = vmatmul.mubr.bf16.gmra.mxu0 %v7445_v58  ;;  %1174 = vmatmul.mubr.bf16.gmra.mxu1 %v7446_v59  ;;  %v7517_v58 = vld [vmem:[%s9551_s1 + $0x2a0] ss:$8 sps:$4 sm:$0xff]  }
  0x80   : > { %6381 = vmatpush3.bf16.msra.mxu0 %v7859_v11  ;;  %6421 = vmatpush3.bf16.msra.mxu1 %v7859_v11  ;;  %v7464_v11 = vld [vmem:[%s9551_s1 + $0x1d0] ss:$8 sps:$4 sm:$0xff]   ;;  %v7518_v59 = vld [vmem:[%s9551_s1 + $0x2e0] ss:$8 sps:$4 sm:$0xff]  }
  0x81   : > { %6382 = vmatprep.subr.bf16.mxu0 %v7864_v12  ;;  %6422 = vmatprep.subr.bf16.mxu1 %v7864_v12  ;;  %v7465_v12 = vld [vmem:[%s9551_s1 + $0x1a4] ss:$8 sps:$4 sm:$0xff]  }
  0x82   : > { %1063 = vmatprep.mubr.bf16.mxu0 %v7447_v60  ;;  %1181 = vmatprep.mubr.bf16.mxu1 %v7449_v61  ;;  %v7519_v60 = vld [vmem:[%s9551_s1 + $0x2b4] ss:$8 sps:$4 sm:$0xff]  }
  0x83   : > { %v7521_v61 = vld [vmem:[%s9551_s1 + $0x2f4] ss:$8 sps:$4 sm:$0xff]  }
  0x84   : > { %6383 = vmatpush3.bf16.msra.mxu0 %v7869_v13  ;;  %6423 = vmatpush3.bf16.msra.mxu1 %v7869_v13  ;;  %v7467_v13 = vld [vmem:[%s9551_s1 + $0x1e4] ss:$8 sps:$4 sm:$0xff]  }
  0x85   : > { %6384 = vmatprep.subr.bf16.mxu0 %v7874_v14  ;;  %6424 = vmatprep.subr.bf16.mxu1 %v7874_v14  ;;  %v8182_v14 = vld [vmem:[%s7813_s22 + $0x28] sm:$0xff]  }
  0x87   : > { %1064 = vmatmul.mubr.bf16.gmra.mxu0 %v7451_v62  ;;  %1182 = vmatmul.mubr.bf16.gmra.mxu1 %v7452_v63  ;;  %v7523_v62 = vld [vmem:[%s9551_s1 + $0x2b0] ss:$8 sps:$4 sm:$0xff]  }
  0x88   : > { %6385 = vmatpush3.bf16.msra.mxu0 %v7879_v15  ;;  %6425 = vmatpush3.bf16.msra.mxu1 %v7879_v15  ;;  %v8187_v15 = vld [vmem:[%s7813_s22 + $0x60] sm:$0xff]   ;;  %v7524_v63 = vld [vmem:[%s9551_s1 + $0x2f0] ss:$8 sps:$4 sm:$0xff]  }
  0x89   : > { %6386 = vmatprep.subr.bf16.mxu0 %v7884_v16  ;;  %6426 = vmatprep.subr.bf16.mxu1 %v7884_v16  ;;  %v7469_v16 = vld [vmem:[%s9551_s1 + $0x1a0] ss:$8 sps:$4 sm:$0xff]  }
  0x8a   : > { %1275 = vmatprep.mubr.bf16.mxu0 %v7455_v0  ;;  %1393 = vmatprep.mubr.bf16.mxu1 %v7458_v1  ;;  %v7527_v0 = vld [vmem:[%s9551_s1 + $0x304] ss:$8 sps:$4 sm:$0xff]  }
  0x8b   : > { %v7530_v1 = vld [vmem:[%s9551_s1 + $0x344] ss:$8 sps:$4 sm:$0xff]  }
  0x8c   : > { %6387 = vmatpush3.bf16.msra.mxu0 %v7889_v17  ;;  %6427 = vmatpush3.bf16.msra.mxu1 %v7889_v17  ;;  %v7470_v17 = vld [vmem:[%s9551_s1 + $0x1e0] ss:$8 sps:$4 sm:$0xff]  }
  0x8d   : > { %6452 = vmatprep.subr.bf16.mxu0 %v7816_v2  ;;  %6492 = vmatprep.subr.bf16.mxu1 %v7816_v2  ;;  %v8156_v2 = vld [vmem:[%s7813_s22 + $0x70] sm:$0xff]  }
  0x8f   : > { %1276 = vmatmul.mubr.bf16.vlgmr.msra.gmra.mxu0 %v7453_v5  ;;  %1394 = vmatmul.mubr.bf16.vlgmr.msra.gmra.mxu1 %v7456_v6  ;;  %v7525_v5 = vld [vmem:[%s9551_s1 + $0x300] ss:$8 sps:$4 sm:$0xff]  }
  0x90   : > { %6453 = vmatpush3.bf16.msra.mxu0 %v7819_v3  ;;  %6493 = vmatpush3.bf16.msra.mxu1 %v8151_v9  ;;  %v8166_v3 = vld [vmem:[%s7813_s22 + $0x30] sm:$0xff]   ;;  %v7528_v6 = vld [vmem:[%s9551_s1 + $0x340] ss:$8 sps:$4 sm:$0xff]  }
  0x91   : > { %6454 = vmatprep.subr.bf16.mxu0 %v7824_v4  ;;  %6494 = vmatprep.subr.bf16.mxu1 %v8156_v2  ;;  %v8171_v4 = vld [vmem:[%s7813_s22 + $0x68] sm:$0xff]  }
  0x92   : > { %1283 = vmatprep.mubr.bf16.mxu0 %v7459_v7  ;;  %1401 = vmatprep.mubr.bf16.mxu1 %v7461_v8  ;;  %v7531_v7 = vld [vmem:[%s9551_s1 + $0x314] ss:$8 sps:$4 sm:$0xff]  }
  0x93   : > { %v7533_v8 = vld [vmem:[%s9551_s1 + $0x354] ss:$8 sps:$4 sm:$0xff]  }
  0x94   : > { %6455 = vmatpush3.bf16.msra.mxu0 %v8166_v3  ;;  %6495 = vmatpush3.bf16.msra.mxu1 %v8166_v3 }
  0x95   : > { %6456 = vmatprep.subr.bf16.mxu0 %v8171_v4  ;;  %6496 = vmatprep.subr.bf16.mxu1 %v8171_v4 }
  0x97   : > { %1284 = vmatmul.mubr.bf16.gmra.mxu0 %v7463_v10  ;;  %1402 = vmatmul.mubr.bf16.gmra.mxu1 %v7464_v11 }
  0x98   : > { %6457 = vmatpush3.bf16.msra.mxu0 %v8182_v14  ;;  %6497 = vmatpush3.bf16.msra.mxu1 %v8182_v14 }
  0x99   : > { %6458 = vmatprep.subr.bf16.mxu0 %v8187_v15  ;;  %6498 = vmatprep.subr.bf16.mxu1 %v8187_v15 }
  0x9a   : > { %1291 = vmatprep.mubr.bf16.mxu0 %v7465_v12  ;;  %1409 = vmatprep.mubr.bf16.mxu1 %v7467_v13 }
  0x9c   : > { %6459 = vmatpush3.bf16.msra.mxu0 %v8198_v18  ;;  %6499 = vmatpush3.bf16.msra.mxu1 %v8198_v18 }
  0x9d   : > { %6460 = vmatprep.subr.bf16.mxu0 %v8203_v19  ;;  %6500 = vmatprep.subr.bf16.mxu1 %v8203_v19 }
  0x9f   : > { %1292 = vmatmul.mubr.bf16.gmra.mxu0 %v7469_v16  ;;  %1410 = vmatmul.mubr.bf16.gmra.mxu1 %v7470_v17 }
  0xa0   : > { %6461 = vmatpush3.bf16.msra.mxu0 %v8214_v22  ;;  %6501 = vmatpush3.bf16.msra.mxu1 %v8214_v22 }
  0xa1   : > { %6462 = vmatprep.subr.bf16.mxu0 %v8219_v23  ;;  %6502 = vmatprep.subr.bf16.mxu1 %v8219_v23 }
  0xa2   : > { %1299 = vmatprep.mubr.bf16.mxu0 %v7471_v20  ;;  %1417 = vmatprep.mubr.bf16.mxu1 %v7473_v21  ;;  %v7535_v21 = vld [vmem:[%s9551_s1 + $0x310] ss:$8 sps:$4 sm:$0xff]  }
  0xa4   : > { %6463 = vmatpush3.bf16.msra.mxu0 %v8230_v26  ;;  %6503 = vmatpush3.bf16.msra.mxu1 %v8230_v26 }
  0xa5   : > { %6464 = vmatprep.subr.bf16.mxu0 %v8235_v27  ;;  %6504 = vmatprep.subr.bf16.mxu1 %v8235_v27 }
  0xa7   : > { %1300 = vmatmul.mubr.bf16.gmra.mxu0 %v7475_v24  ;;  %1418 = vmatmul.mubr.bf16.gmra.mxu1 %v7476_v25 }
  0xa8   : > { %6465 = vmatpush3.bf16.msra.mxu0 %v8246_v30  ;;  %6505 = vmatpush3.bf16.msra.mxu1 %v8246_v30 }
  0xa9   : > { %6466 = vmatprep.subr.bf16.mxu0 %v8251_v31  ;;  %6506 = vmatprep.subr.bf16.mxu1 %v8251_v31 }
  0xaa   : > { %1511 = vmatprep.mubr.bf16.mxu0 %v7479_v28  ;;  %1629 = vmatprep.mubr.bf16.mxu1 %v7482_v29 }
  0xac   : > { %6467 = vmatpush3.bf16.msra.mxu0 %v8262_v34  ;;  %6507 = vmatpush3.bf16.msra.mxu1 %v8262_v34 }
  0xad   : > { %6532 = vmatprep.subr.bf16.mxu0 %v8273_v37  ;;  %6572 = vmatprep.subr.bf16.mxu1 %v8273_v37 }
  0xaf   : > { %1512 = vmatmul.mubr.bf16.vlgmr.msra.gmra.mxu0 %v7477_v32  ;;  %1630 = vmatmul.mubr.bf16.vlgmr.msra.gmra.mxu1 %v7480_v33  ;;  %v7537_v32 = vld [vmem:[%s9551_s1 + $0x324] ss:$8 sps:$4 sm:$0xff]  }
  0xb0   : > { %6533 = vmatpush3.bf16.msra.mxu0 %v8151_v9  ;;  %6573 = vmatpush3.bf16.msra.mxu1 %v8151_v9 }
  0xb1   : > { %6534 = vmatprep.subr.bf16.mxu0 %v8156_v2  ;;  %6574 = vmatprep.subr.bf16.mxu1 %v8156_v2 }
  0xb2   : > { %1519 = vmatprep.mubr.bf16.mxu0 %v7483_v35  ;;  %1637 = vmatprep.mubr.bf16.mxu1 %v7485_v36 }
  0xb4   : > { %6535 = vmatpush3.bf16.msra.mxu0 %v8166_v3  ;;  %6575 = vmatpush3.bf16.msra.mxu1 %v8166_v3 }
  0xb5   : > { %6536 = vmatprep.subr.bf16.mxu0 %v8171_v4  ;;  %6576 = vmatprep.subr.bf16.mxu1 %v8171_v4 }
  0xb7   : > { %1520 = vmatmul.mubr.bf16.gmra.mxu0 %v7487_v38  ;;  %1638 = vmatmul.mubr.bf16.gmra.mxu1 %v7488_v39 }
  0xb8   : > { %6537 = vmatpush3.bf16.msra.mxu0 %v8182_v14  ;;  %6577 = vmatpush3.bf16.msra.mxu1 %v8182_v14 }
  0xb9   : > { %6538 = vmatprep.subr.bf16.mxu0 %v8187_v15  ;;  %6578 = vmatprep.subr.bf16.mxu1 %v8187_v15 }
  0xba   : > { %1527 = vmatprep.mubr.bf16.mxu0 %v7489_v40  ;;  %1645 = vmatprep.mubr.bf16.mxu1 %v7491_v41 }
  0xbc   : > { %6539 = vmatpush3.bf16.msra.mxu0 %v8198_v18  ;;  %6579 = vmatpush3.bf16.msra.mxu1 %v8198_v18 }
  0xbd   : > { %6540 = vmatprep.subr.bf16.mxu0 %v8203_v19  ;;  %6580 = vmatprep.subr.bf16.mxu1 %v8203_v19 }
  0xbf   : > { %1528 = vmatmul.mubr.bf16.gmra.mxu0 %v7493_v42  ;;  %1646 = vmatmul.mubr.bf16.gmra.mxu1 %v7494_v43  ;;  %v7542_v42 = vld [vmem:[%s9551_s1 + $0x360] ss:$8 sps:$4 sm:$0xff]  }
  0xc0   : > { %6541 = vmatpush3.bf16.msra.mxu0 %v8214_v22  ;;  %6581 = vmatpush3.bf16.msra.mxu1 %v8214_v22 }
  0xc1   : > { %6542 = vmatprep.subr.bf16.mxu0 %v8219_v23  ;;  %6582 = vmatprep.subr.bf16.mxu1 %v8219_v23 }
  0xc2   : > { %1535 = vmatprep.mubr.bf16.mxu0 %v7495_v44  ;;  %1653 = vmatprep.mubr.bf16.mxu1 %v7497_v45 }
  0xc4   : > { %6543 = vmatpush3.bf16.msra.mxu0 %v8230_v26  ;;  %6583 = vmatpush3.bf16.msra.mxu1 %v8230_v26 }
  0xc5   : > { %6544 = vmatprep.subr.bf16.mxu0 %v8235_v27  ;;  %6584 = vmatprep.subr.bf16.mxu1 %v8235_v27 }
  0xc7   : > { %1536 = vmatmul.mubr.bf16.gmra.mxu0 %v7499_v46  ;;  %1654 = vmatmul.mubr.bf16.gmra.mxu1 %v7500_v47  ;;  %v7543_v47 = vld [vmem:[%s9551_s1 + $0x334] ss:$8 sps:$4 sm:$0xff]  }
  0xc8   : > { %6545 = vmatpush3.bf16.msra.mxu0 %v8246_v30  ;;  %6585 = vmatpush3.bf16.msra.mxu1 %v8246_v30 }
  0xc9   : > { %6546 = vmatprep.subr.bf16.mxu0 %v8251_v31  ;;  %6586 = vmatprep.subr.bf16.mxu1 %v8251_v31 }
  0xca   : > { %1747 = vmatprep.mubr.bf16.mxu0 %v7503_v48  ;;  %1865 = vmatprep.mubr.bf16.mxu1 %v7506_v49 }
  0xcc   : > { %6547 = vmatpush3.bf16.msra.mxu0 %v8262_v34  ;;  %6587 = vmatpush3.bf16.msra.mxu1 %v8262_v34 }
  0xcd   : > { %6612 = vmatprep.subr.bf16.mxu0 %v8273_v37  ;;  %6652 = vmatprep.subr.bf16.mxu1 %v8273_v37 }
  0xcf   : > { %1748 = vmatmul.mubr.bf16.vlgmr.msra.gmra.mxu0 %v7501_v50  ;;  %1866 = vmatmul.mubr.bf16.vlgmr.msra.gmra.mxu1 %v7504_v51 }
  0xd0   : > { %6613 = vmatpush3.bf16.msra.mxu0 %v8151_v9  ;;  %6653 = vmatpush3.bf16.msra.mxu1 %v8151_v9 }
  0xd1   : > { %6614 = vmatprep.subr.bf16.mxu0 %v8156_v2  ;;  %6654 = vmatprep.subr.bf16.mxu1 %v8156_v2 }
  0xd2   : > { %1755 = vmatprep.mubr.bf16.mxu0 %v7507_v52  ;;  %1873 = vmatprep.mubr.bf16.mxu1 %v7509_v53 }
  0xd4   : > { %6615 = vmatpush3.bf16.msra.mxu0 %v8166_v3  ;;  %6655 = vmatpush3.bf16.msra.mxu1 %v8166_v3 }
  0xd5   : > { %6616 = vmatprep.subr.bf16.mxu0 %v8171_v4  ;;  %6656 = vmatprep.subr.bf16.mxu1 %v8171_v4 }
  0xd7   : > { %1756 = vmatmul.mubr.bf16.gmra.mxu0 %v7511_v54  ;;  %1874 = vmatmul.mubr.bf16.gmra.mxu1 %v7512_v55 }
  0xd8   : > { %6617 = vmatpush3.bf16.msra.mxu0 %v8182_v14  ;;  %6657 = vmatpush3.bf16.msra.mxu1 %v8182_v14 }
  0xd9   : > { %6618 = vmatprep.subr.bf16.mxu0 %v8187_v15  ;;  %6658 = vmatprep.subr.bf16.mxu1 %v8187_v15 }
  0xda   : > { %1763 = vmatprep.mubr.bf16.mxu0 %v7513_v56  ;;  %1881 = vmatprep.mubr.bf16.mxu1 %v7515_v57  ;;  %v7547_v56 = vld [vmem:[%s9551_s1 + $0x330] ss:$8 sps:$4 sm:$0xff]  }
  0xdc   : > { %6619 = vmatpush3.bf16.msra.mxu0 %v8198_v18  ;;  %6659 = vmatpush3.bf16.msra.mxu1 %v8198_v18 }
  0xdd   : > { %6620 = vmatprep.subr.bf16.mxu0 %v8203_v19  ;;  %6660 = vmatprep.subr.bf16.mxu1 %v8203_v19 }
  0xdf   : > { %1764 = vmatmul.mubr.bf16.gmra.mxu0 %v7517_v58  ;;  %1882 = vmatmul.mubr.bf16.gmra.mxu1 %v7518_v59 }
  0xe0   : > { %6621 = vmatpush3.bf16.msra.mxu0 %v8214_v22  ;;  %6661 = vmatpush3.bf16.msra.mxu1 %v8214_v22 }
  0xe1   : > { %6622 = vmatprep.subr.bf16.mxu0 %v8219_v23  ;;  %6662 = vmatprep.subr.bf16.mxu1 %v8219_v23 }
  0xe2   : > { %1771 = vmatprep.mubr.bf16.mxu0 %v7519_v60  ;;  %1889 = vmatprep.mubr.bf16.mxu1 %v7521_v61  ;;  %v7551_v61 = vld [vmem:[%s9551_s1 + $0x384] ss:$8 sps:$4 sm:$0xff]  }
  0xe4   : > { %6623 = vmatpush3.bf16.msra.mxu0 %v8230_v26  ;;  %6663 = vmatpush3.bf16.msra.mxu1 %v8230_v26 }
  0xe5   : > { %6624 = vmatprep.subr.bf16.mxu0 %v8235_v27  ;;  %6664 = vmatprep.subr.bf16.mxu1 %v8235_v27 }
  0xe7   : > { %1772 = vmatmul.mubr.bf16.gmra.mxu0 %v7523_v62  ;;  %1890 = vmatmul.mubr.bf16.gmra.mxu1 %v7524_v63 }
  0xe8   : > { %6625 = vmatpush3.bf16.msra.mxu0 %v8246_v30  ;;  %6665 = vmatpush3.bf16.msra.mxu1 %v8246_v30 }
  0xe9   : > { %6626 = vmatprep.subr.bf16.mxu0 %v8251_v31  ;;  %6666 = vmatprep.subr.bf16.mxu1 %v8251_v31 }
  0xea   : > { %1983 = vmatprep.mubr.bf16.mxu0 %v7527_v0  ;;  %2101 = vmatprep.mubr.bf16.mxu1 %v7530_v1 }
  0xec   : > { %6627 = vmatpush3.bf16.msra.mxu0 %v8262_v34  ;;  %6667 = vmatpush3.bf16.msra.mxu1 %v8262_v34 }
  0xed   : > { %6692 = vmatprep.subr.bf16.mxu0 %v8273_v37  ;;  %6732 = vmatprep.subr.bf16.mxu1 %v8273_v37 }
  0xef   : > { %v6148_v10 = vpop.f32.mrf.mxu0  ;;  %v6188_v11 = vpop.f32.mrf.mxu1  ;;  %1984 = vmatmul.mubr.bf16.vlgmr.msra.gmra.mxu0 %v7525_v5  ;;  %2102 = vmatmul.mubr.bf16.vlgmr.msra.gmra.mxu1 %v7528_v6 }
  0xf0   : > { %6693 = vmatpush3.bf16.msra.mxu0 %v8151_v9  ;;  %6733 = vmatpush3.bf16.msra.mxu1 %v8151_v9  ;;  %v7536_v9 = vld [vmem:[%s9551_s1 + $0x350] ss:$8 sps:$4 sm:$0xff]  }
  0xf1   : > { %v6149_v12 = vpop.f32.mrf.mxu0  ;;  %v6189_v13 = vpop.f32.mrf.mxu1  ;;  %6694 = vmatprep.subr.bf16.mxu0 %v8156_v2  ;;  %6734 = vmatprep.subr.bf16.mxu1 %v8156_v2 }
  0xf2   : > { %v8441_v16 = vadd.f32 %v6149_v12, %v6148_v10  ;;  %1991 = vmatprep.mubr.bf16.mxu0 %v7531_v7  ;;  %2109 = vmatprep.mubr.bf16.mxu1 %v7533_v8  ;;  %v6190_v25 = vadd.f32 %v6189_v13, %v6188_v11  ;;  %v7549_v10 = vld [vmem:[%s9551_s1 + $0x380] ss:$8 sps:$4 sm:$0xff]   ;;  %v7560_v11 = vld [vmem:[%s9551_s1 + $0x3d4] ss:$8 sps:$4 sm:$0xff]  }
  0xf3   : > { %v6151_v17 = vpop.f32.mrf.mxu0  ;;  %v6191_v20 = vpop.f32.mrf.mxu1 }
  0xf4   : > { %6695 = vmatpush3.bf16.msra.mxu0 %v8166_v3  ;;  %6735 = vmatpush3.bf16.msra.mxu1 %v8166_v3  ;;  %v7539_v3 = vld [vmem:[%s9551_s1 + $0x364] ss:$8 sps:$4 sm:$0xff]  }
  0xf5   : > { %v6152_v24 = vpop.f32.mrf.mxu0  ;;  %v6192_v2 = vpop.f32.mrf.mxu1  ;;  %6696 = vmatprep.subr.bf16.mxu0 %v8171_v4  ;;  %6736 = vmatprep.subr.bf16.mxu1 %v8171_v4 }
  0xf6   : > { %v8453_v28 = vadd.f32 %v6152_v24, %v6151_v17  ;;  %v6193_v29 = vadd.f32 %v6192_v2, %v6191_v20 }
  0xf7   : > { %v6154_v33 = vpop.f32.mrf.mxu0  ;;  %v6194_v35 = vpop.f32.mrf.mxu1  ;;  %1992 = vmatmul.mubr.bf16.gmra.mxu0 %v7535_v21  ;;  %2110 = vmatmul.mubr.bf16.gmra.mxu1 %v7536_v9 }
  0xf8   : > { %v600_v36 = vpack.c.bf16 %v8453_v28, %v8441_v16  ;;  %6697 = vmatpush3.bf16.msra.mxu0 %v8182_v14  ;;  %6737 = vmatpush3.bf16.msra.mxu1 %v8182_v14  ;;  %v718_v4 = vpack.c.bf16 %v6193_v29, %v6190_v25  ;;  %v7541_v14 = vld [vmem:[%s9551_s1 + $0x320] ss:$8 sps:$4 sm:$0xff]  }
  0xf9   : > { %v6155_v37 = vpop.f32.mrf.mxu0  ;;  %v6195_v38 = vpop.f32.mrf.mxu1  ;;  %6698 = vmatprep.subr.bf16.mxu0 %v8187_v15  ;;  %6738 = vmatprep.subr.bf16.mxu1 %v8187_v15 }
  0xfa   : > { %v8467_v39 = vadd.f32 %v6155_v37, %v6154_v33  ;;  %2378 = vrot.lane.b32.xlu0 %v718_v4, %s7721_s23  ;;  %1999 = vmatprep.mubr.bf16.mxu0 %v7537_v32  ;;  %v6196_v44 = vadd.f32 %v6195_v38, %v6194_v35  ;;  %v7555_v35 = vld [vmem:[%s9551_s1 + $0x390] ss:$8 sps:$4 sm:$0xff]   ;;  %v7563_v4 = vld [vmem:[%s9551_s1 + $0x3a4] ss:$8 sps:$4 sm:$0xff]  }
  0xfb   : > { %v6157_v40 = vpop.f32.mrf.mxu0  ;;  %v6197_v41 = vpop.f32.mrf.mxu1  ;;  %2117 = vmatprep.mubr.bf16.mxu1 %v7539_v3  ;;  %v7558_v3 = vld [vmem:[%s9551_s1 + $0x3d0] ss:$8 sps:$4 sm:$0xff]   ;;  %v7566_v37 = vld [vmem:[%s9551_s1 + $0x3e4] ss:$8 sps:$4 sm:$0xff]  }
  0xfc   : > { %6699 = vmatpush3.bf16.msra.mxu0 %v8198_v18  ;;  %6739 = vmatpush3.bf16.msra.mxu1 %v8198_v18  ;;  %v7545_v18 = vld [vmem:[%s9551_s1 + $0x374] ss:$8 sps:$4 sm:$0xff]  }
  0xfd   : > { %v6158_v15 = vpop.f32.mrf.mxu0  ;;  %v6198_v43 = vpop.f32.mrf.mxu1  ;;  %6700 = vmatprep.subr.bf16.mxu0 %v8203_v19  ;;  %6740 = vmatprep.subr.bf16.mxu1 %v8203_v19 }
  0xfe   : > { %v8480_v45 = vadd.f32 %v6158_v15, %v6157_v40  ;;  %v6199_v46 = vadd.f32 %v6198_v43, %v6197_v41 }
  0xff   : > { %v6160_v48 = vpop.f32.mrf.mxu0  ;;  %v6200_v49 = vpop.f32.mrf.mxu1  ;;  %2000 = vmatmul.mubr.bf16.gmra.mxu0 %v7541_v14  ;;  %2118 = vmatmul.mubr.bf16.gmra.mxu1 %v7542_v42 }
 0x100   : > { %v601_v50 = vpack.c.bf16 %v8480_v45, %v8467_v39  ;;  %v719_v19 = vpack.c.bf16 %v6199_v46, %v6196_v44  ;;  %6701 = vmatpush3.bf16.msra.mxu0 %v8214_v22  ;;  %6741 = vmatpush3.bf16.msra.mxu1 %v8214_v22  ;;  %v7548_v22 = vld [vmem:[%s9551_s1 + $0x370] ss:$8 sps:$4 sm:$0xff]  }
 0x101   : > { %v6161_v51 = vpop.f32.mrf.mxu0  ;;  %v6201_v52 = vpop.f32.mrf.mxu1  ;;  %6702 = vmatprep.subr.bf16.mxu0 %v8219_v23  ;;  %6742 = vmatprep.subr.bf16.mxu1 %v8219_v23 }
 0x102   : > { %v8494_v53 = vadd.f32 %v6161_v51, %v6160_v48  ;;  %2380 = vrot.lane.b32.xlu0 %v719_v19, %s7721_s23  ;;  %2007 = vmatprep.mubr.bf16.mxu0 %v7543_v47  ;;  %v6202_v58 = vadd.f32 %v6201_v52, %v6200_v49  ;;  %v7561_v51 = vld [vmem:[%s9551_s1 + $0x3a0] ss:$8 sps:$4 sm:$0xff]  }
 0x103   : > { %v6163_v54 = vpop.f32.mrf.mxu0  ;;  %v6203_v55 = vpop.f32.mrf.mxu1  ;;  %2125 = vmatprep.mubr.bf16.mxu1 %v7545_v18  ;;  %v7564_v52 = vld [vmem:[%s9551_s1 + $0x3e0] ss:$8 sps:$4 sm:$0xff]  }
 0x104   : > { %6703 = vmatpush3.bf16.msra.mxu0 %v8230_v26  ;;  %6743 = vmatpush3.bf16.msra.mxu1 %v8230_v26  ;;  %v7554_v26 = vld [vmem:[%s9551_s1 + $0x3c4] ss:$8 sps:$4 sm:$0xff]  }
 0x105   : > { %v6164_v23 = vpop.f32.mrf.mxu0  ;;  %v6204_v57 = vpop.f32.mrf.mxu1  ;;  %6704 = vmatprep.subr.bf16.mxu0 %v8235_v27  ;;  %6744 = vmatprep.subr.bf16.mxu1 %v8235_v27 }
 0x106   : > { %v8507_v59 = vadd.f32 %v6164_v23, %v6163_v54  ;;  %v6205_v60 = vadd.f32 %v6204_v57, %v6203_v55  ;;  %v7569_v54 = vld [vmem:[%s9551_s1 + $0x3b4] ss:$8 sps:$4 sm:$0xff]  }
 0x107   : > { %v6166_v62 = vpop.f32.mrf.mxu0  ;;  %v6206_v63 = vpop.f32.mrf.mxu1  ;;  %2008 = vmatmul.mubr.bf16.gmra.mxu0 %v7547_v56  ;;  %2126 = vmatmul.mubr.bf16.gmra.mxu1 %v7548_v22  ;;  %v7572_v55 = vld [vmem:[%s9551_s1 + $0x3f4] ss:$8 sps:$4 sm:$0xff]  }
 0x108   : > { %v602_v0 = vpack.c.bf16 %v8507_v59, %v8494_v53  ;;  %6705 = vmatpush3.bf16.msra.mxu0 %v8246_v30  ;;  %6745 = vmatpush3.bf16.msra.mxu1 %v8246_v30  ;;  %v720_v27 = vpack.c.bf16 %v6205_v60, %v6202_v58  ;;  %v7552_v30 = vld [vmem:[%s9551_s1 + $0x3c0] ss:$8 sps:$4 sm:$0xff]  }
 0x109   : > { %v6167_v1 = vpop.f32.mrf.mxu0  ;;  %v6207_v5 = vpop.f32.mrf.mxu1  ;;  %6706 = vmatprep.subr.bf16.mxu0 %v8251_v31  ;;  %6746 = vmatprep.subr.bf16.mxu1 %v8251_v31  ;;  %v7557_v31 = vld [vmem:[%s9551_s1 + $0x394] ss:$8 sps:$4 sm:$0xff]  }
 0x10a   : > { %v8521_v6 = vadd.f32 %v6167_v1, %v6166_v62  ;;  %2382 = vrot.lane.b32.xlu1 %v720_v27, %s7721_s23  ;;  %2219 = vmatprep.mubr.bf16.mxu0 %v7551_v61  ;;  %v6208_v17 = vadd.f32 %v6207_v5, %v6206_v63 }
 0x10b   : > { %v6169_v7 = vpop.f32.mrf.mxu0  ;;  %v6209_v8 = vpop.f32.mrf.mxu1  ;;  %2337 = vmatprep.mubr.bf16.mxu1 %v7554_v26 }
 0x10c   : > { %6707 = vmatpush3.bf16.msra.mxu0 %v8262_v34  ;;  %6747 = vmatpush3.bf16.msra.mxu1 %v8262_v34 }
 0x10d   : > { %v6170_v12 = vpop.f32.mrf.mxu0  ;;  %v6210_v13 = vpop.f32.mrf.mxu1 }
 0x10e   : > { %v8538_v20 = vadd.f32 %v6170_v12, %v6169_v7  ;;  %v6211_v21 = vadd.f32 %v6210_v13, %v6209_v8  ;;  %v7567_v7 = vld [vmem:[%s9551_s1 + $0x3b0] ss:$8 sps:$4 sm:$0xff]  }
 0x10f   : > { %v6228_v9 = vpop.f32.mrf.mxu0  ;;  %v6268_v24 = vpop.f32.mrf.mxu1  ;;  %2220 = vmatmul.mubr.bf16.vlgmr.msra.gmra.mxu0 %v7549_v10  ;;  %2338 = vmatmul.mubr.bf16.vlgmr.msra.gmra.mxu1 %v7552_v30  ;;  %v7570_v8 = vld [vmem:[%s9551_s1 + $0x3f0] ss:$8 sps:$4 sm:$0xff]  }
 0x110   : > { %v603_v34 = vpack.c.bf16 %v8538_v20, %v8521_v6  ;;  %v721_v2 = vpack.c.bf16 %v6211_v21, %v6208_v17  ;;  %2227 = vmatprep.mubr.bf16.mxu0 %v7557_v31  ;;  %2345 = vmatprep.mubr.bf16.mxu1 %v7560_v11 }
 0x111   : > { %v6229_v25 = vpop.f32.mrf.mxu0  ;;  %v6269_v29 = vpop.f32.mrf.mxu1 }
 0x112   : > { %2384 = vrot.lane.b32.xlu0 %v721_v2, %s7721_s23  ;;  %v6230_v41 = vadd.f32 %v6229_v25, %v6228_v9  ;;  %v6270_v14 = vadd.f32 %v6269_v29, %v6268_v24  ;;  %s7722_s23 = smov 24  }
 0x113   : > { %v6231_v32 = vpop.f32.mrf.mxu0  ;;  %v6271_v33 = vpop.f32.mrf.mxu1 }
 0x115   : > { %v6232_v38 = vpop.f32.mrf.mxu0  ;;  %v6272_v40 = vpop.f32.mrf.mxu1 }
 0x116   : > { %v6233_v42 = vadd.f32 %v6232_v38, %v6231_v32  ;;  %v6273_v15 = vadd.f32 %v6272_v40, %v6271_v33 }
 0x117   : > { %v6234_v43 = vpop.f32.mrf.mxu0  ;;  %v6274_v44 = vpop.f32.mrf.mxu1  ;;  %2228 = vmatmul.mubr.bf16.gmra.mxu0 %v7555_v35  ;;  %2346 = vmatmul.mubr.bf16.gmra.mxu1 %v7558_v3 }
 0x118   : > { %v836_v46 = vpack.c.bf16 %v6233_v42, %v6230_v41  ;;  %v954_v47 = vpack.c.bf16 %v6273_v15, %v6270_v14  ;;  %2235 = vmatprep.mubr.bf16.mxu0 %v7563_v4  ;;  %2353 = vmatprep.mubr.bf16.mxu1 %v7566_v37 }
 0x119   : > { %v6235_v48 = vpop.f32.mrf.mxu0  ;;  %v6275_v49 = vpop.f32.mrf.mxu1 }
 0x11a   : > { %2402 = vrot.lane.b32.xlu0 %v954_v47, %s7722_s23  ;;  %2390 = vrot.lane.b32.xlu1 %v836_v46, %s7723_s20  ;;  %v6236_v23 = vadd.f32 %v6235_v48, %v6234_v43  ;;  %v6276_v27 = vadd.f32 %v6275_v49, %v6274_v44 }
 0x11b   : > { %v6237_v18 = vpop.f32.mrf.mxu0  ;;  %v6277_v19 = vpop.f32.mrf.mxu1 }
 0x11d   : > { %v6238_v56 = vpop.f32.mrf.mxu0  ;;  %v6278_v22 = vpop.f32.mrf.mxu1 }
 0x11e   : > { %v6239_v57 = vadd.f32 %v6238_v56, %v6237_v18  ;;  %v6279_v62 = vadd.f32 %v6278_v22, %v6277_v19 }
 0x11f   : > { %v6240_v58 = vpop.f32.mrf.mxu0  ;;  %v6280_v60 = vpop.f32.mrf.mxu1  ;;  %2236 = vmatmul.mubr.bf16.gmra.mxu0 %v7561_v51  ;;  %2354 = vmatmul.mubr.bf16.gmra.mxu1 %v7564_v52 }
 0x120   : > { %v837_v61 = vpack.c.bf16 %v6239_v57, %v6236_v23  ;;  %2243 = vmatprep.mubr.bf16.mxu0 %v7569_v54  ;;  %2361 = vmatprep.mubr.bf16.mxu1 %v7572_v55  ;;  %v955_v10 = vpack.c.bf16 %v6279_v62, %v6276_v27 }
 0x121   : > { %v6241_v63 = vpop.f32.mrf.mxu0  ;;  %v6281_v26 = vpop.f32.mrf.mxu1 }
 0x122   : > { %2392 = vrot.lane.b32.xlu1 %v837_v61, %s7723_s20  ;;  %v6242_v11 = vadd.f32 %v6241_v63, %v6240_v58  ;;  %v6282_v25 = vadd.f32 %v6281_v26, %v6280_v60 }
 0x123   : > { %v6243_v1 = vpop.f32.mrf.mxu0  ;;  %v6283_v5 = vpop.f32.mrf.mxu1 }
 0x125   : > { %v6244_v30 = vpop.f32.mrf.mxu0  ;;  %v6284_v31 = vpop.f32.mrf.mxu1 }
 0x126   : > { %v6245_v12 = vadd.f32 %v6244_v30, %v6243_v1  ;;  %2404 = vrot.lane.b32.xlu1 %v955_v10, %s7722_s23  ;;  %v6285_v9 = vadd.f32 %v6284_v31, %v6283_v5 }
 0x127   : > { %v6246_v13 = vpop.f32.mrf.mxu0  ;;  %v6286_v17 = vpop.f32.mrf.mxu1  ;;  %2244 = vmatmul.mubr.bf16.gmra.mxu0 %v7567_v7  ;;  %2362 = vmatmul.mubr.bf16.gmra.mxu1 %v7570_v8 }
 0x128   : > { %v838_v21 = vpack.c.bf16 %v6245_v12, %v6242_v11  ;;  %v956_v33 = vpack.c.bf16 %v6285_v9, %v6282_v25 }
 0x129   : > { %v6247_v24 = vpop.f32.mrf.mxu0  ;;  %v6287_v2 = vpop.f32.mrf.mxu1 }
 0x12a   : > { %2394 = vrot.lane.b32.xlu1 %v838_v21, %s7723_s20  ;;  %v6248_v4 = vadd.f32 %v6247_v24, %v6246_v13  ;;  %v6288_v43 = vadd.f32 %v6287_v2, %v6286_v17 }
 0x12b   : > { %v6249_v29 = vpop.f32.mrf.mxu0  ;;  %v6289_v32 = vpop.f32.mrf.mxu1 }
 0x12d   : > { %v6250_v35 = vpop.f32.mrf.mxu0  ;;  %v6290_v3 = vpop.f32.mrf.mxu1 }
 0x12e   : > { %v6251_v37 = vadd.f32 %v6250_v35, %v6249_v29  ;;  %2406 = vrot.lane.b32.xlu1 %v956_v33, %s7722_s23  ;;  %v6291_v14 = vadd.f32 %v6290_v3, %v6289_v32 }
 0x12f   : > { %v6308_v38 = vpop.f32.mrf.mxu0  ;;  %v6348_v40 = vpop.f32.mrf.mxu1 }
 0x130   : > { %v839_v41 = vpack.c.bf16 %v6251_v37, %v6248_v4  ;;  %v957_v47 = vpack.c.bf16 %v6291_v14, %v6288_v43 }
 0x131   : > { %v6309_v42 = vpop.f32.mrf.mxu0  ;;  %v6349_v15 = vpop.f32.mrf.mxu1 }
 0x132   : > { %2396 = vrot.lane.b32.xlu0 %v839_v41, %s7723_s20  ;;  %v6310_v18 = vadd.f32 %v6309_v42, %v6308_v38  ;;  %v6350_v23 = vadd.f32 %v6349_v15, %v6348_v40  ;;  %s7729_s20 = smov 72  }
 0x133   : > { %v6311_v44 = vpop.f32.mrf.mxu0  ;;  %v6351_v46 = vpop.f32.mrf.mxu1 }
 0x135   : > { %v6312_v48 = vpop.f32.mrf.mxu0  ;;  %v6352_v49 = vpop.f32.mrf.mxu1 }
 0x136   : > { %v6313_v19 = vadd.f32 %v6312_v48, %v6311_v44  ;;  %2408 = vrot.lane.b32.xlu0 %v957_v47, %s7722_s23  ;;  %v6353_v55 = vadd.f32 %v6352_v49, %v6351_v46  ;;  %s7728_s23 = smov 64  }
 0x137   : > { %v6314_v51 = vpop.f32.mrf.mxu0  ;;  %v6354_v52 = vpop.f32.mrf.mxu1 }
 0x138   : > { %v1072_v54 = vpack.c.bf16 %v6313_v19, %v6310_v18  ;;  %v1190_v60 = vpack.c.bf16 %v6353_v55, %v6350_v23 }
 0x139   : > { %v6315_v56 = vpop.f32.mrf.mxu0  ;;  %v6355_v22 = vpop.f32.mrf.mxu1 }
 0x13a   : > { %2414 = vrot.lane.b32.xlu0 %v1072_v54, %s7724_s16  ;;  %v6316_v63 = vadd.f32 %v6315_v56, %v6314_v51  ;;  %v6356_v30 = vadd.f32 %v6355_v22, %v6354_v52 }
 0x13b   : > { %v6317_v57 = vpop.f32.mrf.mxu0  ;;  %v6357_v58 = vpop.f32.mrf.mxu1 }
 0x13d   : > { %v6318_v61 = vpop.f32.mrf.mxu0  ;;  %v6358_v62 = vpop.f32.mrf.mxu1 }
 0x13e   : > { %v6319_v26 = vadd.f32 %v6318_v61, %v6317_v57  ;;  %2426 = vrot.lane.b32.xlu0 %v1190_v60, %s7725_s17  ;;  %v6359_v7 = vadd.f32 %v6358_v62, %v6357_v58 }
 0x13f   : > { %v6320_v27 = vpop.f32.mrf.mxu0  ;;  %v6360_v1 = vpop.f32.mrf.mxu1 }
 0x140   : > { %v1073_v5 = vpack.c.bf16 %v6319_v26, %v6316_v63  ;;  %v1191_v12 = vpack.c.bf16 %v6359_v7, %v6356_v30 }
 0x141   : > { %v6321_v8 = vpop.f32.mrf.mxu0  ;;  %v6361_v10 = vpop.f32.mrf.mxu1 }
 0x142   : > { %2416 = vrot.lane.b32.xlu1 %v1073_v5, %s7724_s16  ;;  %v6322_v21 = vadd.f32 %v6321_v8, %v6320_v27  ;;  %v6362_v35 = vadd.f32 %v6361_v10, %v6360_v1 }
 0x143   : > { %v6323_v31 = vpop.f32.mrf.mxu0  ;;  %v6363_v11 = vpop.f32.mrf.mxu1 }
 0x145   : > { %v6324_v13 = vpop.f32.mrf.mxu0  ;;  %v6364_v17 = vpop.f32.mrf.mxu1 }
 0x146   : > { %v6325_v9 = vadd.f32 %v6324_v13, %v6323_v31  ;;  %2428 = vrot.lane.b32.xlu1 %v1191_v12, %s7725_s17  ;;  %v6365_v29 = vadd.f32 %v6364_v17, %v6363_v11 }
 0x147   : > { %v6326_v24 = vpop.f32.mrf.mxu0  ;;  %v6366_v2 = vpop.f32.mrf.mxu1 }
 0x148   : > { %v1074_v25 = vpack.c.bf16 %v6325_v9, %v6322_v21  ;;  %v1192_v37 = vpack.c.bf16 %v6365_v29, %v6362_v35 }
 0x149   : > { %v6327_v32 = vpop.f32.mrf.mxu0  ;;  %v6367_v33 = vpop.f32.mrf.mxu1 }
 0x14a   : > { %2418 = vrot.lane.b32.xlu1 %v1074_v25, %s7724_s16  ;;  %v6328_v41 = vadd.f32 %v6327_v32, %v6326_v24  ;;  %v6368_v48 = vadd.f32 %v6367_v33, %v6366_v2 }
 0x14b   : > { %v6329_v3 = vpop.f32.mrf.mxu0  ;;  %v6369_v4 = vpop.f32.mrf.mxu1 }
 0x14d   : > { %v6330_v38 = vpop.f32.mrf.mxu0  ;;  %v6370_v40 = vpop.f32.mrf.mxu1 }
 0x14e   : > { %v6331_v14 = vadd.f32 %v6330_v38, %v6329_v3  ;;  %2430 = vrot.lane.b32.xlu1 %v1192_v37, %s7725_s17  ;;  %v6371_v44 = vadd.f32 %v6370_v40, %v6369_v4 }
 0x14f   : > { %v6388_v42 = vpop.f32.mrf.mxu0  ;;  %v6428_v15 = vpop.f32.mrf.mxu1 }
 0x150   : > { %v1075_v43 = vpack.c.bf16 %v6331_v14, %v6328_v41  ;;  %v1193_v19 = vpack.c.bf16 %v6371_v44, %v6368_v48 }
 0x151   : > { %v6389_v46 = vpop.f32.mrf.mxu0  ;;  %v6429_v47 = vpop.f32.mrf.mxu1 }
 0x152   : > { %2420 = vrot.lane.b32.xlu0 %v1075_v43, %s7724_s16  ;;  %v6390_v54 = vadd.f32 %v6389_v46, %v6388_v42  ;;  %v6430_v61 = vadd.f32 %v6429_v47, %v6428_v15 }
 0x153   : > { %v6391_v49 = vpop.f32.mrf.mxu0  ;;  %v6431_v18 = vpop.f32.mrf.mxu1 }
 0x155   : > { %v6392_v51 = vpop.f32.mrf.mxu0  ;;  %v6432_v52 = vpop.f32.mrf.mxu1 }
 0x156   : > { %v6393_v55 = vadd.f32 %v6392_v51, %v6391_v49  ;;  %2432 = vrot.lane.b32.xlu0 %v1193_v19, %s7725_s17  ;;  %v6433_v57 = vadd.f32 %v6432_v52, %v6431_v18 }
 0x157   : > { %v6394_v56 = vpop.f32.mrf.mxu0  ;;  %v6434_v22 = vpop.f32.mrf.mxu1 }
 0x158   : > { %v1308_v23 = vpack.c.bf16 %v6393_v55, %v6390_v54  ;;  %v1426_v26 = vpack.c.bf16 %v6433_v57, %v6430_v61 }
 0x159   : > { %v6395_v58 = vpop.f32.mrf.mxu0  ;;  %v6435_v60 = vpop.f32.mrf.mxu1 }
 0x15a   : > { %2438 = vrot.lane.b32.xlu0 %v1308_v23, %s7726_s18  ;;  %v6396_v5 = vadd.f32 %v6395_v58, %v6394_v56  ;;  %v6436_v13 = vadd.f32 %v6435_v60, %v6434_v22 }
 0x15b   : > { %v6397_v62 = vpop.f32.mrf.mxu0  ;;  %v6437_v63 = vpop.f32.mrf.mxu1 }
 0x15d   : > { %v6398_v27 = vpop.f32.mrf.mxu0  ;;  %v6438_v1 = vpop.f32.mrf.mxu1 }
 0x15e   : > { %v6399_v7 = vadd.f32 %v6398_v27, %v6397_v62  ;;  %2450 = vrot.lane.b32.xlu0 %v1426_v26, %s7727_s19  ;;  %v6439_v31 = vadd.f32 %v6438_v1, %v6437_v63 }
 0x15f   : > { %v6400_v8 = vpop.f32.mrf.mxu0  ;;  %v6440_v10 = vpop.f32.mrf.mxu1 }
 0x160   : > { %v1309_v30 = vpack.c.bf16 %v6399_v7, %v6396_v5  ;;  %v1427_v9 = vpack.c.bf16 %v6439_v31, %v6436_v13 }
 0x161   : > { %v6401_v11 = vpop.f32.mrf.mxu0  ;;  %v6441_v12 = vpop.f32.mrf.mxu1 }
 0x162   : > { %2440 = vrot.lane.b32.xlu1 %v1309_v30, %s7726_s18  ;;  %v6402_v25 = vadd.f32 %v6401_v11, %v6400_v8  ;;  %v6442_v38 = vadd.f32 %v6441_v12, %v6440_v10 }
 0x163   : > { %v6403_v17 = vpop.f32.mrf.mxu0  ;;  %v6443_v21 = vpop.f32.mrf.mxu1 }
 0x165   : > { %v6404_v24 = vpop.f32.mrf.mxu0  ;;  %v6444_v2 = vpop.f32.mrf.mxu1 }
 0x166   : > { %v6405_v29 = vadd.f32 %v6404_v24, %v6403_v17  ;;  %2452 = vrot.lane.b32.xlu1 %v1427_v9, %s7727_s19  ;;  %v6445_v3 = vadd.f32 %v6444_v2, %v6443_v21 }
 0x167   : > { %v6406_v32 = vpop.f32.mrf.mxu0  ;;  %v6446_v33 = vpop.f32.mrf.mxu1 }
 0x168   : > { %v1310_v35 = vpack.c.bf16 %v6405_v29, %v6402_v25  ;;  %v1428_v14 = vpack.c.bf16 %v6445_v3, %v6442_v38 }
 0x169   : > { %v6407_v4 = vpop.f32.mrf.mxu0  ;;  %v6447_v37 = vpop.f32.mrf.mxu1 }
 0x16a   : > { %2442 = vrot.lane.b32.xlu1 %v1310_v35, %s7726_s18  ;;  %v6408_v46 = vadd.f32 %v6407_v4, %v6406_v32  ;;  %v6448_v54 = vadd.f32 %v6447_v37, %v6446_v33 }
 0x16b   : > { %v6409_v40 = vpop.f32.mrf.mxu0  ;;  %v6449_v41 = vpop.f32.mrf.mxu1 }
 0x16c   : > { %v2379_v42 = vpop.permute.xlu0 %2378 }
 0x16d   : > { %v8598_v15 = vsel %vm2554_vm0, %v600_v36, %v2379_v42  ;;  %v6410_v43 = vpop.f32.mrf.mxu0  ;;  %v6450_v44 = vpop.f32.mrf.mxu1 }
 0x16e   : > { %v6411_v47 = vadd.f32 %v6410_v43, %v6409_v40  ;;  %2454 = vrot.lane.b32.xlu1 %v1428_v14, %s7727_s19  ;;  %v6451_v19 = vadd.f32 %v6450_v44, %v6449_v41 }
 0x16f   : > { %v6468_v48 = vpop.f32.mrf.mxu0  ;;  %v6508_v49 = vpop.f32.mrf.mxu1 }
 0x170   : > { %v1311_v18 = vpack.c.bf16 %v6411_v47, %v6408_v46  ;;  %v1429_v28 = vpack.c.bf16 %v6451_v19, %v6448_v54 }
 0x171   : > { %v6469_v51 = vpop.f32.mrf.mxu0  ;;  %v6509_v52 = vpop.f32.mrf.mxu1 }
 0x172   : > { %2444 = vrot.lane.b32.xlu0 %v1311_v18, %s7726_s18  ;;  %v6470_v57 = vadd.f32 %v6469_v51, %v6468_v48  ;;  %v6510_v58 = vadd.f32 %v6509_v52, %v6508_v49 }
 0x173   : > { %v6471_v55 = vpop.f32.mrf.mxu0  ;;  %v6511_v16 = vpop.f32.mrf.mxu1 }
 0x174   : > { %v2381_v36 = vpop.permute.xlu0 %2380 }
 0x175   : > { %v8606_v56 = vsel %vm2554_vm0, %v601_v50, %v2381_v36  ;;  %v6472_v22 = vpop.f32.mrf.mxu0  ;;  %v6512_v23 = vpop.f32.mrf.mxu1 }
 0x176   : > { %v6473_v60 = vadd.f32 %v6472_v22, %v6471_v55  ;;  %v6513_v61 = vadd.f32 %v6512_v23, %v6511_v16  ;;  %2456 = vrot.lane.b32.xlu0 %v1429_v28, %s7727_s19 }
 0x177   : > { %v6474_v62 = vpop.f32.mrf.mxu0  ;;  %v6514_v63 = vpop.f32.mrf.mxu1 }
 0x178   : > { %v1544_v26 = vpack.c.bf16 %v6473_v60, %v6470_v57  ;;  %v1662_v27 = vpack.c.bf16 %v6513_v61, %v6510_v58 }
 0x179   : > { %v6475_v1 = vpop.f32.mrf.mxu0  ;;  %v6515_v5 = vpop.f32.mrf.mxu1 }
 0x17a   : > { %2462 = vrot.lane.b32.xlu0 %v1544_v26, %s7728_s23  ;;  %2474 = vrot.lane.b32.xlu1 %v1662_v27, %s7729_s20  ;;  %v6476_v30 = vadd.f32 %v6475_v1, %v6474_v62  ;;  %v6516_v24 = vadd.f32 %v6515_v5, %v6514_v63 }
 0x17b   : > { %v6477_v39 = vpop.f32.mrf.mxu0  ;;  %v6517_v45 = vpop.f32.mrf.mxu1 }
 0x17c   : > { %v2383_v50 = vpop.permute.xlu1 %2382 }
 0x17d   : > { %v8615_v7 = vsel %vm2554_vm0, %v602_v0, %v2383_v50  ;;  %v6478_v8 = vpop.f32.mrf.mxu0  ;;  %v6518_v10 = vpop.f32.mrf.mxu1 }
 0x17e   : > { %v6479_v31 = vadd.f32 %v6478_v8, %v6477_v39  ;;  %v6519_v17 = vadd.f32 %v6518_v10, %v6517_v45 }
 0x17f   : > { %v6480_v11 = vpop.f32.mrf.mxu0  ;;  %v6520_v12 = vpop.f32.mrf.mxu1 }
 0x180   : > { %v1545_v13 = vpack.c.bf16 %v6479_v31, %v6476_v30  ;;  %v1663_v29 = vpack.c.bf16 %v6519_v17, %v6516_v24 }
 0x181   : > { %v6481_v21 = vpop.f32.mrf.mxu0  ;;  %v6521_v9 = vpop.f32.mrf.mxu1 }
 0x182   : > { %2464 = vrot.lane.b32.xlu0 %v1545_v13, %s7728_s23  ;;  %v6482_v33 = vadd.f32 %v6481_v21, %v6480_v11  ;;  %v6522_v35 = vadd.f32 %v6521_v9, %v6520_v12 }
 0x183   : > { %v6483_v2 = vpop.f32.mrf.mxu0  ;;  %v6523_v25 = vpop.f32.mrf.mxu1 }
 0x184   : > { %v2385_v53 = vpop.permute.xlu0 %2384 }
 0x185   : > { %v8622_v59 = vsel %vm2554_vm0, %v603_v34, %v2385_v53  ;;  %v6484_v0 = vpop.f32.mrf.mxu0  ;;  %v6524_v32 = vpop.f32.mrf.mxu1  ;;  %vm5591_vm0 = vcmask 1043456  }
 0x186   : > { %v6485_v3 = vadd.f32 %v6484_v0, %v6483_v2  ;;  %v6525_v4 = vadd.f32 %v6524_v32, %v6523_v25  ;;  %2476 = vrot.lane.b32.xlu0 %v1663_v29, %s7729_s20 }
 0x187   : > { %v6486_v37 = vpop.f32.mrf.mxu0  ;;  %v6526_v38 = vpop.f32.mrf.mxu1 }
 0x188   : > { %v1546_v40 = vpack.c.bf16 %v6485_v3, %v6482_v33  ;;  %v1664_v41 = vpack.c.bf16 %v6525_v4, %v6522_v35 }
 0x189   : > { %v6487_v14 = vpop.f32.mrf.mxu0  ;;  %v6527_v42 = vpop.f32.mrf.mxu1 }
 0x18a   : > { %2478 = vrot.lane.b32.xlu0 %v1664_v41, %s7729_s20  ;;  %2466 = vrot.lane.b32.xlu1 %v1546_v40, %s7728_s23  ;;  %v6488_v48 = vadd.f32 %v6487_v14, %v6486_v37  ;;  %v6528_v28 = vadd.f32 %v6527_v42, %v6526_v38 }
 0x18b   : > { %v6489_v6 = vpop.f32.mrf.mxu0  ;;  %v6529_v20 = vpop.f32.mrf.mxu1 }
 0x18c   : > { %v2403_v34 = vpop.permute.xlu0 %2402  ;;  %v2391_v43 = vpop.permute.xlu1 %2390 }
 0x18d   : > { %v2569_v44 = vsel %vm2567_vm1, %v8598_v15, %v2391_v43  ;;  %v6490_v46 = vpop.f32.mrf.mxu0  ;;  %v6530_v47 = vpop.f32.mrf.mxu1 }
 0x18e   : > { %v6491_v49 = vadd.f32 %v6490_v46, %v6489_v6  ;;  %v8630_v18 = vsel %vm2576_vm2, %v2569_v44, %v2403_v34  ;;  %v6531_v54 = vadd.f32 %v6530_v47, %v6529_v20 }
 0x18f   : > { %v6548_v19 = vpop.f32.mrf.mxu0  ;;  %v6588_v51 = vpop.f32.mrf.mxu1 }
 0x190   : > { %v1547_v52 = vpack.c.bf16 %v6491_v49, %v6488_v48  ;;  %v1665_v23 = vpack.c.bf16 %v6531_v54, %v6528_v28 }
 0x191   : > { %v6549_v55 = vpop.f32.mrf.mxu0  ;;  %v6589_v16 = vpop.f32.mrf.mxu1 }
 0x192   : > { %2468 = vrot.lane.b32.xlu1 %v1547_v52, %s7728_s23  ;;  %v6550_v61 = vadd.f32 %v6549_v55, %v6548_v19  ;;  %v6590_v8 = vadd.f32 %v6589_v16, %v6588_v51 }
 0x193   : > { %v6551_v36 = vpop.f32.mrf.mxu0  ;;  %v6591_v22 = vpop.f32.mrf.mxu1 }
 0x194   : > { %v2393_v15 = vpop.permute.xlu1 %2392 }
 0x195   : > { %v2571_v57 = vsel %vm2567_vm1, %v8606_v56, %v2393_v15  ;;  %v6552_v58 = vpop.f32.mrf.mxu0  ;;  %v6592_v60 = vpop.f32.mrf.mxu1 }
 0x196   : > { %v6553_v62 = vadd.f32 %v6552_v58, %v6551_v36  ;;  %2480 = vrot.lane.b32.xlu1 %v1665_v23, %s7729_s20  ;;  %v6593_v1 = vadd.f32 %v6592_v60, %v6591_v22 }
 0x197   : > { %v6554_v63 = vpop.f32.mrf.mxu0  ;;  %v6594_v26 = vpop.f32.mrf.mxu1 }
 0x198   : > { %v1780_v27 = vpack.c.bf16 %v6553_v62, %v6550_v61  ;;  %v2405_v5 = vpop.permute.xlu1 %2404  ;;  %v1898_v30 = vpack.c.bf16 %v6593_v1, %v6590_v8 }
 0x199   : > { %v8637_v39 = vsel %vm2576_vm2, %v2571_v57, %v2405_v5  ;;  %v6555_v45 = vpop.f32.mrf.mxu0  ;;  %v6595_v50 = vpop.f32.mrf.mxu1 }
 0x19a   : > { %2486 = vrot.lane.b32.xlu1 %v1780_v27, %s7730_s21  ;;  %v6556_v17 = vadd.f32 %v6555_v45, %v6554_v63  ;;  %v6596_v33 = vadd.f32 %v6595_v50, %v6594_v26 }
 0x19b   : > { %v6557_v56 = vpop.f32.mrf.mxu0  ;;  %v6597_v10 = vpop.f32.mrf.mxu1 }
 0x19c   : > { %v2395_v31 = vpop.permute.xlu1 %2394 }
 0x19d   : > { %v2573_v11 = vsel %vm2567_vm1, %v8615_v7, %v2395_v31  ;;  %v6558_v12 = vpop.f32.mrf.mxu0  ;;  %v6598_v13 = vpop.f32.mrf.mxu1  ;;  %v7573_v31 = vld [vmem:[%s9552_s2 + $0x38] sm:$0xff]  }
 0x19e   : > { %v6559_v21 = vadd.f32 %v6558_v12, %v6557_v56  ;;  %2498 = vrot.lane.b32.xlu1 %v1898_v30, %s7731_s24  ;;  %v6599_v25 = vadd.f32 %v6598_v13, %v6597_v10  ;;  %7028 = vmatprep.subr.bf16.mxu0 %v7573_v31 }
 0x19f   : > { %v6560_v9 = vpop.f32.mrf.mxu0  ;;  %v6600_v24 = vpop.f32.mrf.mxu1  ;;  %7029 = vmatpush3.bf16.msra.mxu0 %v7573_v31 }
 0x1a0   : > { %v1781_v2 = vpack.c.bf16 %v6559_v21, %v6556_v17  ;;  %v2407_v29 = vpop.permute.xlu1 %2406  ;;  %v1899_v3 = vpack.c.bf16 %v6599_v25, %v6596_v33 }
 0x1a1   : > { %v8644_v53 = vsel %vm2576_vm2, %v2573_v11, %v2407_v29  ;;  %v6561_v0 = vpop.f32.mrf.mxu0  ;;  %v6601_v32 = vpop.f32.mrf.mxu1 }
 0x1a2   : > { %2488 = vrot.lane.b32.xlu0 %v1781_v2, %s7730_s21  ;;  %v6562_v41 = vadd.f32 %v6561_v0, %v6560_v9  ;;  %v6602_v48 = vadd.f32 %v6601_v32, %v6600_v24  ;;  %v7574_v2 = vld [vmem:[%s9552_s2 + $0x30] sm:$0xff]  }
 0x1a3   : > { %v6563_v7 = vpop.f32.mrf.mxu0  ;;  %v6603_v35 = vpop.f32.mrf.mxu1  ;;  %7030 = vmatprep.subr.bf16.mxu0 %v7574_v2 }
 0x1a4   : > { %v2397_v4 = vpop.permute.xlu0 %2396  ;;  %7031 = vmatpush3.bf16.msra.mxu0 %v7574_v2 }
 0x1a5   : > { %v2575_v37 = vsel %vm2567_vm1, %v8622_v59, %v2397_v4  ;;  %v6564_v38 = vpop.f32.mrf.mxu0  ;;  %v6604_v40 = vpop.f32.mrf.mxu1 }
 0x1a6   : > { %v6565_v14 = vadd.f32 %v6564_v38, %v6563_v7  ;;  %2500 = vrot.lane.b32.xlu0 %v1899_v3, %s7731_s24  ;;  %v6605_v34 = vadd.f32 %v6604_v40, %v6603_v35 }
 0x1a7   : > { %v6566_v42 = vpop.f32.mrf.mxu0  ;;  %v6606_v6 = vpop.f32.mrf.mxu1 }
 0x1a8   : > { %v1782_v20 = vpack.c.bf16 %v6565_v14, %v6562_v41  ;;  %v2409_v43 = vpop.permute.xlu0 %2408  ;;  %v1900_v19 = vpack.c.bf16 %v6605_v34, %v6602_v48 }
 0x1a9   : > { %v8651_v44 = vsel %vm2576_vm2, %v2575_v37, %v2409_v43  ;;  %v6567_v46 = vpop.f32.mrf.mxu0  ;;  %v6607_v47 = vpop.f32.mrf.mxu1 }
 0x1aa   : > { %2490 = vrot.lane.b32.xlu0 %v1782_v20, %s7730_s21  ;;  %v6568_v16 = vadd.f32 %v6567_v46, %v6566_v42  ;;  %v6608_v60 = vadd.f32 %v6607_v47, %v6606_v6  ;;  %v7576_v46 = vld [vmem:[%s9552_s2 + $0x20] sm:$0xff]  }
 0x1ab   : > { %v6569_v59 = vpop.f32.mrf.mxu0  ;;  %v6609_v49 = vpop.f32.mrf.mxu1 }
 0x1ac   : > { %v2415_v51 = vpop.permute.xlu0 %2414 }
 0x1ad   : > { %v8656_v52 = vsel %vm2585_vm3, %v8630_v18, %v2415_v51  ;;  %v6570_v54 = vpop.f32.mrf.mxu0  ;;  %v6610_v55 = vpop.f32.mrf.mxu1 }
 0x1ae   : > { %v6571_v28 = vadd.f32 %v6570_v54, %v6569_v59  ;;  %2502 = vrot.lane.b32.xlu0 %v1900_v19, %s7731_s24  ;;  %v6611_v15 = vadd.f32 %v6610_v55, %v6609_v49  ;;  %v7577_v49 = vld [vmem:[%s9552_s2 + $0x18] sm:$0xff]  }
 0x1af   : > { %v6628_v36 = vpop.f32.mrf.mxu0  ;;  %v6668_v22 = vpop.f32.mrf.mxu1 }
 0x1b0   : > { %v1783_v23 = vpack.c.bf16 %v6571_v28, %v6568_v16  ;;  %v1901_v63 = vpack.c.bf16 %v6611_v15, %v6608_v60  ;;  %v8676_v3 = vpop.permute.xlu0 %2426 }
 0x1b1   : > { %v6629_v57 = vpop.f32.mrf.mxu0  ;;  %v6669_v58 = vpop.f32.mrf.mxu1 }
 0x1b2   : > { %2492 = vrot.lane.b32.xlu1 %v1783_v23, %s7730_s21  ;;  %v6630_v5 = vadd.f32 %v6629_v57, %v6628_v36  ;;  %v6670_v13 = vadd.f32 %v6669_v58, %v6668_v22 }
 0x1b3   : > { %v6631_v61 = vpop.f32.mrf.mxu0  ;;  %v6671_v62 = vpop.f32.mrf.mxu1 }
 0x1b4   : > { %v2417_v18 = vpop.permute.xlu1 %2416 }
 0x1b5   : > { %v2589_v26 = vsel %vm2585_vm3, %v8637_v39, %v2417_v18  ;;  %v6632_v27 = vpop.f32.mrf.mxu0  ;;  %v6672_v1 = vpop.f32.mrf.mxu1 }
 0x1b6   : > { %v6633_v45 = vadd.f32 %v6632_v27, %v6631_v61  ;;  %2504 = vrot.lane.b32.xlu1 %v1901_v63, %s7731_s24  ;;  %v6673_v10 = vadd.f32 %v6672_v1, %v6671_v62  ;;  %v7578_v61 = vld [vmem:[%s9552_s2 + $0x10] sm:$0xff]  }
 0x1b7   : > { %v6634_v50 = vpop.f32.mrf.mxu0  ;;  %v6674_v8 = vpop.f32.mrf.mxu1 }
 0x1b8   : > { %v2016_v56 = vpack.c.bf16 %v6633_v45, %v6630_v5  ;;  %v2429_v30 = vpop.permute.xlu1 %2428  ;;  %v2134_v9 = vpack.c.bf16 %v6673_v10, %v6670_v13  ;;  %v7579_v45 = vld [vmem:[%s9552_s2 + $0x8] sm:$0xff]  }
 0x1b9   : > { %v8667_v11 = vsel %vm2594_vm4, %v2589_v26, %v2429_v30  ;;  %v6635_v39 = vpop.f32.mrf.mxu0  ;;  %v6675_v12 = vpop.f32.mrf.mxu1  ;;  %v7580_v30 = vld [vmem:[%s9552_s2] sm:$0xff]  }
 0x1ba   : > { %2510 = vrot.lane.b32.xlu1 %v2016_v56, %s7732_s26  ;;  %v6636_v32 = vadd.f32 %v6635_v39, %v6634_v50  ;;  %v6676_v42 = vadd.f32 %v6675_v12, %v6674_v8 }
 0x1bb   : > { %v6637_v17 = vpop.f32.mrf.mxu0  ;;  %v6677_v21 = vpop.f32.mrf.mxu1 }
 0x1bc   : > { %v2419_v24 = vpop.permute.xlu1 %2418 }
 0x1bd   : > { %v2591_v25 = vsel %vm2585_vm3, %v8644_v53, %v2419_v24  ;;  %v6638_v29 = vpop.f32.mrf.mxu0  ;;  %v6678_v0 = vpop.f32.mrf.mxu1  ;;  %v7575_v53 = vld [vmem:[%s9552_s2 + $0x28] sm:$0xff]  }
 0x1be   : > { %v6639_v33 = vadd.f32 %v6638_v29, %v6637_v17  ;;  %2522 = vrot.lane.b32.xlu1 %v2134_v9, %s7733_s29  ;;  %v6679_v37 = vadd.f32 %v6678_v0, %v6677_v21  ;;  %7032 = vmatprep.subr.bf16.mxu0 %v7575_v53 }
 0x1bf   : > { %v6640_v7 = vpop.f32.mrf.mxu0  ;;  %v6680_v35 = vpop.f32.mrf.mxu1  ;;  %7033 = vmatpush3.bf16.msra.mxu0 %v7575_v53 }
 0x1c0   : > { %v2017_v4 = vpack.c.bf16 %v6639_v33, %v6636_v32  ;;  %v2431_v38 = vpop.permute.xlu1 %2430  ;;  %v2135_v34 = vpack.c.bf16 %v6679_v37, %v6676_v42  ;;  %7034 = vmatprep.subr.bf16.mxu0 %v7576_v46 }
 0x1c1   : > { %v8682_v40 = vsel %vm2594_vm4, %v2591_v25, %v2431_v38  ;;  %v6641_v41 = vpop.f32.mrf.mxu0  ;;  %v6681_v14 = vpop.f32.mrf.mxu1 }
 0x1c2   : > { %2512 = vrot.lane.b32.xlu0 %v2017_v4, %s7732_s26  ;;  %v6642_v19 = vadd.f32 %v6641_v41, %v6640_v7  ;;  %v6682_v15 = vadd.f32 %v6681_v14, %v6680_v35 }
 0x1c3   : > { %v6643_v6 = vpop.f32.mrf.mxu0  ;;  %v6683_v20 = vpop.f32.mrf.mxu1  ;;  %7035 = vmatpush3.bf16.msra.mxu0 %v7576_v46 }
 0x1c4   : > { %v2421_v43 = vpop.permute.xlu0 %2420  ;;  %7036 = vmatprep.subr.bf16.mxu0 %v7577_v49 }
 0x1c5   : > { %v2593_v47 = vsel %vm2585_vm3, %v8651_v44, %v2421_v43  ;;  %v6644_v48 = vpop.f32.mrf.mxu0  ;;  %v6684_v59 = vpop.f32.mrf.mxu1 }
 0x1c6   : > { %v6645_v51 = vadd.f32 %v6644_v48, %v6643_v6  ;;  %2524 = vrot.lane.b32.xlu0 %v2135_v34, %s7733_s29  ;;  %v6685_v28 = vadd.f32 %v6684_v59, %v6683_v20 }
 0x1c7   : > { %v6646_v54 = vpop.f32.mrf.mxu0  ;;  %v6686_v55 = vpop.f32.mrf.mxu1  ;;  %7037 = vmatpush3.bf16.msra.mxu0 %v7577_v49 }
 0x1c8   : > { %v2018_v16 = vpack.c.bf16 %v6645_v51, %v6642_v19  ;;  %v2433_v36 = vpop.permute.xlu0 %2432  ;;  %v2136_v60 = vpack.c.bf16 %v6685_v28, %v6682_v15  ;;  %7038 = vmatprep.subr.bf16.mxu0 %v7578_v61 }
 0x1c9   : > { %v8695_v44 = vsel %vm2594_vm4, %v2593_v47, %v2433_v36  ;;  %v6647_v22 = vpop.f32.mrf.mxu0  ;;  %v6687_v23 = vpop.f32.mrf.mxu1 }
 0x1ca   : > { %2514 = vrot.lane.b32.xlu0 %v2018_v16, %s7732_s26  ;;  %v6648_v18 = vadd.f32 %v6647_v22, %v6646_v54  ;;  %v6688_v38 = vadd.f32 %v6687_v23, %v6686_v55 }
 0x1cb   : > { %v6649_v57 = vpop.f32.mrf.mxu0  ;;  %v6689_v58 = vpop.f32.mrf.mxu1  ;;  %7039 = vmatpush3.bf16.msra.mxu0 %v7578_v61 }
 0x1cc   : > { %7040 = vmatprep.subr.bf16.mxu0 %v7579_v45  ;;  %v8709_v29 = vpop.permute.xlu0 %2438 }
 0x1cd   : > { %v6650_v62 = vpop.f32.mrf.mxu0  ;;  %v6690_v63 = vpop.f32.mrf.mxu1 }
 0x1ce   : > { %v6651_v26 = vadd.f32 %v6650_v62, %v6649_v57  ;;  %2526 = vrot.lane.b32.xlu0 %v2136_v60, %s7733_s29  ;;  %v6691_v7 = vadd.f32 %v6690_v63, %v6689_v58 }
 0x1cf   : > { %v6708_v27 = vpop.f32.mrf.mxu0  ;;  %v6748_v1 = vpop.f32.mrf.mxu1  ;;  %7041 = vmatpush3.bf16.msra.mxu0 %v7579_v45 }
 0x1d0   : > { %v2019_v5 = vpack.c.bf16 %v6651_v26, %v6648_v18  ;;  %7042 = vmatprep.subr.bf16.mxu0 %v7580_v30  ;;  %v2137_v6 = vpack.c.bf16 %v6691_v7, %v6688_v38  ;;  %v8713_v20 = vpop.permute.xlu0 %2450 }
 0x1d1   : > { %v6709_v50 = vpop.f32.mrf.mxu0  ;;  %v6749_v8 = vpop.f32.mrf.mxu1 }
 0x1d2   : > { %2516 = vrot.lane.b32.xlu1 %v2019_v5, %s7732_s26  ;;  %v6710_v12 = vadd.f32 %v6709_v50, %v6708_v27  ;;  %v6750_v0 = vadd.f32 %v6749_v8, %v6748_v1 }
 0x1d3   : > { %v6711_v56 = vpop.f32.mrf.mxu0  ;;  %v6751_v10 = vpop.f32.mrf.mxu1  ;;  %7043 = vmatpush3.bf16.msra.mxu0 %v7580_v30 }
 0x1d4   : > { %v2441_v30 = vpop.permute.xlu1 %2440 }
 0x1d5   : > { %v6712_v31 = vpop.f32.mrf.mxu0  ;;  %v6752_v39 = vpop.f32.mrf.mxu1 }
 0x1d6   : > { %v6713_v13 = vadd.f32 %v6712_v31, %v6711_v56  ;;  %v6753_v24 = vadd.f32 %v6752_v39, %v6751_v10 }
 0x1d7   : > { %v6714_v17 = vpop.f32.mrf.mxu0  ;;  %v6754_v21 = vpop.f32.mrf.mxu1 }
 0x1d8   : > { %v2252_v9 = vpack.c.bf16 %v6713_v13, %v6710_v12  ;;  %v2370_v35 = vpack.c.bf16 %v6753_v24, %v6750_v0  ;;  %v2453_v31 = vpop.permute.xlu1 %2452 }
 0x1d9   : > { %v6715_v2 = vpop.f32.mrf.mxu0  ;;  %v6755_v25 = vpop.f32.mrf.mxu1 }
 0x1da   : > { %2534 = vrot.lane.b32.xlu1 %v2252_v9, %s7734_s27  ;;  %v6716_v53 = vadd.f32 %v6715_v2, %v6714_v17  ;;  %v6756_v48 = vadd.f32 %v6755_v25, %v6754_v21 }
 0x1db   : > { %v6717_v32 = vpop.f32.mrf.mxu0  ;;  %v6757_v33 = vpop.f32.mrf.mxu1 }
 0x1dc   : > { %v2443_v39 = vpop.permute.xlu1 %2442 }
 0x1dd   : > { %v6718_v4 = vpop.f32.mrf.mxu0  ;;  %v6758_v37 = vpop.f32.mrf.mxu1 }
 0x1de   : > { %v6719_v41 = vadd.f32 %v6718_v4, %v6717_v32  ;;  %2546 = vrot.lane.b32.xlu1 %v2370_v35, %s7735_s28  ;;  %v6759_v43 = vadd.f32 %v6758_v37, %v6757_v33 }
 0x1df   : > { %v6720_v14 = vpop.f32.mrf.mxu0  ;;  %v6760_v42 = vpop.f32.mrf.mxu1 }
 0x1e0   : > { %v2253_v34 = vpack.c.bf16 %v6719_v41, %v6716_v53  ;;  %v2371_v19 = vpack.c.bf16 %v6759_v43, %v6756_v48  ;;  %v2455_v12 = vpop.permute.xlu1 %2454 }
 0x1e1   : > { %v6721_v46 = vpop.f32.mrf.mxu0  ;;  %v6761_v47 = vpop.f32.mrf.mxu1 }
 0x1e2   : > { %2536 = vrot.lane.b32.xlu0 %v2253_v34, %s7734_s27  ;;  %2528 = vrot.lane.b32.xlu1 %v2137_v6, %s7733_s29  ;;  %v6722_v28 = vadd.f32 %v6721_v46, %v6720_v14  ;;  %v6762_v63 = vadd.f32 %v6761_v47, %v6760_v42  ;;  %v2596_v34 = vsel %vm2594_vm4, %v8656_v52, %v8676_v3 }
 0x1e3   : > { %v6723_v59 = vpop.f32.mrf.mxu0  ;;  %v6763_v49 = vpop.f32.mrf.mxu1  ;;  %v2605_v43 = vsel %vm2603_vm5, %v2596_v34, %v8709_v29 }
 0x1e4   : > { %v2445_v51 = vpop.permute.xlu0 %2444  ;;  %v2614_v46 = vsel %vm2612_vm6, %v2605_v43, %v8713_v20 }
 0x1e5   : > { %v2611_v54 = vsel %vm2603_vm5, %v8695_v44, %v2445_v51  ;;  %v6724_v55 = vpop.f32.mrf.mxu0  ;;  %v6764_v16 = vpop.f32.mrf.mxu1  ;;  %v2607_v51 = vsel %vm2603_vm5, %v8667_v11, %v2441_v30  ;;  %v2609_v11 = vsel %vm2603_vm5, %v8682_v40, %v2443_v39 }
 0x1e6   : > { %v6725_v36 = vadd.f32 %v6724_v55, %v6723_v59  ;;  %2548 = vrot.lane.b32.xlu0 %v2371_v19, %s7735_s28  ;;  %v6765_v57 = vadd.f32 %v6764_v16, %v6763_v49 }
 0x1e7   : > { %v6726_v22 = vpop.f32.mrf.mxu0  ;;  %v6766_v23 = vpop.f32.mrf.mxu1 }
 0x1e8   : > { %v2254_v15 = vpack.c.bf16 %v6725_v36, %v6722_v28  ;;  %v2457_v58 = vpop.permute.xlu0 %2456  ;;  %v2372_v26 = vpack.c.bf16 %v6765_v57, %v6762_v63  ;;  %v2616_v28 = vsel %vm2612_vm6, %v2607_v51, %v2453_v31 }
 0x1e9   : > { %v8721_v60 = vsel %vm2612_vm6, %v2611_v54, %v2457_v58  ;;  %v6727_v61 = vpop.f32.mrf.mxu0  ;;  %v6767_v62 = vpop.f32.mrf.mxu1 }
 0x1ea   : > { %2538 = vrot.lane.b32.xlu0 %v2254_v15, %s7734_s27  ;;  %v6728_v5 = vadd.f32 %v6727_v61, %v6726_v22  ;;  %v6768_v56 = vadd.f32 %v6767_v62, %v6766_v23  ;;  %v2618_v62 = vsel %vm2612_vm6, %v2609_v11, %v2455_v12  ;;  %v7588_v11 = vld [vmem:[%s9553_s3 + $0x38] sm:$0xff]  }
 0x1eb   : > { %v6729_v44 = vpop.f32.mrf.mxu0  ;;  %v6769_v18 = vpop.f32.mrf.mxu1 }
 0x1ec   : > { %v2463_v13 = vpop.permute.xlu0 %2462  ;;  %v2475_v17 = vpop.permute.xlu1 %2474 }
 0x1ed   : > { %v6730_v27 = vpop.f32.mrf.mxu0  ;;  %v6770_v1 = vpop.f32.mrf.mxu1  ;;  %v2623_v47 = vsel %vm2621_vm7, %v2614_v46, %v2463_v13 }
 0x1ee   : > { %v6731_v45 = vadd.f32 %v6730_v27, %v6729_v44  ;;  %2550 = vrot.lane.b32.xlu0 %v2372_v26, %s7735_s28  ;;  %v6771_v8 = vadd.f32 %v6770_v1, %v6769_v18  ;;  %v2632_v49 = vsel %vm2630_vm8, %v2623_v47, %v2475_v17 }
 0x1f0   : > { %v2255_v50 = vpack.c.bf16 %v6731_v45, %v6728_v5  ;;  %v2373_v10 = vpack.c.bf16 %v6771_v8, %v6768_v56 }
 0x1f2   : > { %2540 = vrot.lane.b32.xlu1 %v2255_v50, %s7734_s27  ;;  %s5663_s27 = sshll.u32 %s9562_s14, 2 }
 0x1f3   : > { %s357_s30 = scalar_lea.vmem %s9560_s10, %s5663_s27 }
 0x1f4   : > { %v2465_v21 = vpop.permute.xlu0 %2464 }
 0x1f5   : > { %v2625_v22 = vsel %vm2621_vm7, %v2616_v28, %v2465_v21  ;;  %v7581_v28 = vld [vmem:[%s9553_s3 + $0x8] sm:$0xff]  }
 0x1f6   : > { %2552 = vrot.lane.b32.xlu1 %v2373_v10, %s7735_s28 }
 0x1f8   : > { %v2477_v2 = vpop.permute.xlu0 %2476 }
 0x1f9   : > { %v2634_v23 = vsel %vm2630_vm8, %v2625_v22, %v2477_v2  ;;  %v7583_v22 = vld [vmem:[%s9553_s3 + $0x10] sm:$0xff]  }
 0x1fc   : > { %v2467_v9 = vpop.permute.xlu1 %2466  ;;  %v2479_v0 = vpop.permute.xlu0 %2478 }
 0x1fd   : > { %v2627_v44 = vsel %vm2621_vm7, %v2618_v62, %v2467_v9  ;;  %v7590_v62 = vld [vmem:[%s9553_s3 + $0x40] sm:$0xff]  }
 0x1fe   : > { %v2636_v1 = vsel %vm2630_vm8, %v2627_v44, %v2479_v0  ;;  %v7592_v44 = vld [vmem:[%s9553_s3 + $0x58] sm:$0xff]  }
 0x204   : > { %v8727_v24 = vpop.permute.xlu1 %2468 }
 0x205   : > { %v2629_v39 = vsel %vm2621_vm7, %v8721_v60, %v8727_v24  ;;  %v7736_v24 = vmov 0.0  }
 0x206   : > { %7052 = vmatprep.subr.bf16.mxu1 %v7736_v24  ;;  %7064 = vmatprep.subr.bf16.mxu0 %v7736_v24 }
 0x207   : > { %7060 = vmatprep.mubr.msk.bf16.mxu1 %vm7737_vm15, %v7736_v24 }
 0x208   : > { %v8729_v25 = vpop.permute.xlu1 %2480 }
 0x209   : > { %v2638_v12 = vsel %vm2630_vm8, %v2629_v39, %v8729_v25 }
 0x20c   : > { %v2487_v32 = vpop.permute.xlu1 %2486 }
 0x20d   : > { %v2641_v19 = vsel %vm2639_vm9, %v2632_v49, %v2487_v32 }
 0x210   : > { %v2499_v7 = vpop.permute.xlu1 %2498 }
 0x211   : > { %v2650_v3 = vsel %vm2648_vm10, %v2641_v19, %v2499_v7 }
 0x214   : > { %v2489_v33 = vpop.permute.xlu0 %2488 }
 0x215   : > { %v2643_v15 = vsel %vm2639_vm9, %v2634_v23, %v2489_v33  ;;  %v7584_v23 = vld [vmem:[%s9553_s3 + $0x18] sm:$0xff]  }
 0x218   : > { %v2501_v35 = vpop.permute.xlu0 %2500 }
 0x219   : > { %v2652_v58 = vsel %vm2648_vm10, %v2643_v15, %v2501_v35  ;;  %v7585_v15 = vld [vmem:[%s9553_s3 + $0x28] sm:$0xff]  }
 0x21c   : > { %v2491_v37 = vpop.permute.xlu0 %2490 }
 0x21d   : > { %v2645_v5 = vsel %vm2639_vm9, %v2636_v1, %v2491_v37  ;;  %v7596_v1 = vld [vmem:[%s9553_s3 + $0x78] sm:$0xff]  }
 0x220   : > { %v2503_v53 = vpop.permute.xlu0 %2502 }
 0x221   : > { %v2654_v40 = vsel %vm2648_vm10, %v2645_v5, %v2503_v53 }
 0x224   : > { %v8731_v4 = vpop.permute.xlu1 %2492 }
 0x225   : > { %v2647_v13 = vsel %vm2639_vm9, %v2638_v12, %v8731_v4  ;;  %v7597_v12 = vld [vmem:[%s9554_s4 + $0x78] sm:$0xff]  }
 0x228   : > { %v8733_v38 = vpop.permute.xlu1 %2504 }
 0x229   : > { %v2656_v21 = vsel %vm2648_vm10, %v2647_v13, %v8733_v38  ;;  %v7598_v13 = vld [vmem:[%s9554_s4 + $0x38] sm:$0xff]  }
 0x22c   : > { %v2511_v41 = vpop.permute.xlu1 %2510 }
 0x22d   : > { %v2659_v29 = vsel %vm2657_vm11, %v2650_v3, %v2511_v41 }
 0x230   : > { %v2523_v42 = vpop.permute.xlu1 %2522 }
 0x231   : > { %v2668_v20 = vsel %vm2666_vm12, %v2659_v29, %v2523_v42 }
 0x234   : > { %v2513_v14 = vpop.permute.xlu0 %2512 }
 0x235   : > { %v2661_v61 = vsel %vm2657_vm11, %v2652_v58, %v2513_v14  ;;  %v7587_v58 = vld [vmem:[%s9553_s3 + $0x30] sm:$0xff]  }
 0x238   : > { %v2525_v6 = vpop.permute.xlu0 %2524 }
 0x239   : > { %v2670_v63 = vsel %vm2666_vm12, %v2661_v61, %v2525_v6  ;;  %v7589_v61 = vld [vmem:[%s9553_s3 + $0x48] sm:$0xff]  }
 0x23c   : > { %v2515_v59 = vpop.permute.xlu0 %2514 }
 0x23d   : > { %v2663_v50 = vsel %vm2657_vm11, %v2654_v40, %v2515_v59 }
 0x240   : > { %v2527_v54 = vpop.permute.xlu0 %2526 }
 0x241   : > { %v2672_v8 = vsel %vm2666_vm12, %v2663_v50, %v2527_v54 }
 0x244   : > { %v2517_v48 = vpop.permute.xlu1 %2516 }
 0x245   : > { %v2665_v9 = vsel %vm2657_vm11, %v2656_v21, %v2517_v48  ;;  %v7600_v21 = vld [vmem:[%s9554_s4 + $0x30] sm:$0xff]  }
 0x24c   : > { %v2535_v52 = vpop.permute.xlu1 %2534 }
 0x24d   : > { %v2677_v55 = vsel %vm2675_vm13, %v2668_v20, %v2535_v52 }
 0x250   : > { %v2547_v16 = vpop.permute.xlu1 %2546 }
 0x251   : > { %v2686_v36 = vsel %vm2684_vm14, %v2677_v55, %v2547_v16 }
 0x252   : > { %7044 = vmatprep.mubr.bf16.mxu0 %v2686_v36  ;;  %v7582_v36 = vld [vmem:[%s9553_s3] sm:$0xff]  }
 0x254   : > { %v2537_v57 = vpop.permute.xlu0 %2536  ;;  %v2529_v56 = vpop.permute.xlu1 %2528 }
 0x255   : > { %v2679_v18 = vsel %vm2675_vm13, %v2670_v63, %v2537_v57  ;;  %v2674_v2 = vsel %vm2666_vm12, %v2665_v9, %v2529_v56  ;;  %v7586_v57 = vld [vmem:[%s9553_s3 + $0x20] sm:$0xff]   ;;  %v7591_v63 = vld [vmem:[%s9553_s3 + $0x50] sm:$0xff]   ;;  %v7601_v9 = vld [vmem:[%s9554_s4 + $0x68] sm:$0xff]  }
 0x258   : > { %v2549_v26 = vpop.permute.xlu0 %2548 }
 0x259   : > { %v2689_v27 = vsel %vm2684_vm14, %v2679_v18, %v2549_v26  ;;  %v7593_v18 = vld [vmem:[%s9553_s3 + $0x68] sm:$0xff]   ;;  %v7594_v26 = vld [vmem:[%s9553_s3 + $0x60] sm:$0xff]  }
 0x25a   : > { %7045 = vmatmul.mubr.bf16.vlgmr.msra.gmra.mxu0 %v2689_v27  ;;  %v7595_v27 = vld [vmem:[%s9553_s3 + $0x70] sm:$0xff]  }
 0x25c   : > { %v2539_v45 = vpop.permute.xlu0 %2538 }
 0x25d   : > { %v2681_v10 = vsel %vm2675_vm13, %v2672_v8, %v2539_v45 }
 0x260   : > { %v2551_v30 = vpop.permute.xlu0 %2550 }
 0x261   : > { %v2692_v31 = vsel %vm2684_vm14, %v2681_v10, %v2551_v30 }
 0x262   : > { %7048 = vmatprep.mubr.bf16.mxu0 %v2692_v31 }
 0x264   : > { %v2541_v17 = vpop.permute.xlu1 %2540 }
 0x265   : > { %v2683_v0 = vsel %vm2675_vm13, %v2674_v2, %v2541_v17  ;;  %v7599_v17 = vld [vmem:[%s9554_s4 + $0x70] sm:$0xff]  }
 0x268   : > { %v2553_v32 = vpop.permute.xlu1 %2552 }
 0x269   : > { %v2695_v60 = vsel %vm2684_vm14, %v2683_v0, %v2553_v32 }
 0x26a   : > { %7049 = vmatmul.mubr.bf16.gmra.mxu0 %v2695_v60 }
 0x26b   : > { %7072 = vmatprep.mubr.msk.bf16.mxu0 %vm7737_vm15, %v7736_v24 }
 0x31a   : > { %v7046_v25 = vpop.f32.mrf.mxu0 }
 0x31b   : > { %v2828_v59 = vmul.f32 0.2, %v7046_v25 }
 0x31c   : > { %v2795_v33 = vpop.f32.mrf.mxu0 }
 0x31d   : > { %v2836_v29 = vmax.f32 %v7046_v25, %v2828_v59  ;;  %v2826_v20 = vmul.f32 0.2, %v2795_v33  ;;  %v7609_v59 = vld [vmem:[%s9554_s4 + $0x48] sm:$0xff]  }
 0x31e   : > { %v7047_v7 = vpop.f32.mrf.mxu0 }
 0x31f   : > { %v2829_v46 = vmul.f32 0.2, %v7047_v7  ;;  %v2834_v55 = vmax.f32 %v2795_v33, %v2826_v20 }
 0x320   : > { %v2798_v35 = vpop.f32.mrf.mxu0 }
 0x321   : > { %v2837_v19 = vmax.f32 %v7047_v7, %v2829_v46  ;;  %v2827_v52 = vmul.f32 0.2, %v2798_v35  ;;  %v7608_v46 = vld [vmem:[%s9554_s4 + $0x10] sm:$0xff]  }
 0x323   : > { %v8803_v51 = vpack.c.bf16 %v2837_v19, %v2836_v29  ;;  %v2835_v54 = vmax.f32 %v2798_v35, %v2827_v52  ;;  %v7610_v29 = vld [vmem:[%s9554_s4 + $0x8] sm:$0xff]  }
 0x325   : > { %v8809_v16 = vpack.c.bf16 %v2835_v54, %v2834_v55  ;;  %v7611_v54 = vld [vmem:[%s9554_s4 + $0x40] sm:$0xff]  }
 0x326   : > { %v7612_v55 = vld [vmem:[%s9554_s4] sm:$0xff]  }
 0x32a   : > { %v7050_v4 = vpop.f32.mrf.mxu0 }
 0x32b   : > { %v2832_v38 = vmul.f32 0.2, %v7050_v4 }
 0x32c   : > { %v2811_v37 = vpop.f32.mrf.mxu0 }
 0x32d   : > { %v2840_v42 = vmax.f32 %v7050_v4, %v2832_v38  ;;  %v2830_v6 = vmul.f32 0.2, %v2811_v37  ;;  %v7602_v38 = vld [vmem:[%s9554_s4 + $0x28] sm:$0xff]  }
 0x32e   : > { %v7051_v53 = vpop.f32.mrf.mxu0 }
 0x32f   : > { %v2833_v41 = vmul.f32 0.2, %v7051_v53  ;;  %v2838_v49 = vmax.f32 %v2811_v37, %v2830_v6  ;;  %v7607_v6 = vld [vmem:[%s9554_s4 + $0x50] sm:$0xff]  }
 0x330   : > { %v2814_v14 = vpop.f32.mrf.mxu0 }
 0x331   : > { %v2841_v34 = vmax.f32 %v7051_v53, %v2833_v41  ;;  %v2831_v43 = vmul.f32 0.2, %v2814_v14  ;;  %v7603_v53 = vld [vmem:[%s9554_s4 + $0x60] sm:$0xff]  }
 0x332   : > { %v7604_v41 = vld [vmem:[%s9554_s4 + $0x20] sm:$0xff]  }
 0x333   : > { %v8791_v47 = vpack.c.bf16 %v2841_v34, %v2840_v42  ;;  %v2839_v48 = vmax.f32 %v2814_v14, %v2831_v43  ;;  %v7605_v14 = vld [vmem:[%s9554_s4 + $0x58] sm:$0xff]  }
 0x334   : > { %v7606_v42 = vld [vmem:[%s9554_s4 + $0x18] sm:$0xff]  }
 0x335   : > { %7053 = vmatpush3.bf16.msra.mxu1 %v8791_v47  ;;  %7065 = vmatpush3.bf16.msra.mxu0 %v8791_v47  ;;  %v8797_v3 = vpack.c.bf16 %v2839_v48, %v2838_v49 }
 0x336   : > { %7054 = vmatprep.subr.bf16.mxu1 %v7736_v24  ;;  %7066 = vmatprep.subr.bf16.mxu0 %v7736_v24 }
 0x339   : > { %7055 = vmatpush3.bf16.msra.mxu1 %v8797_v3  ;;  %7067 = vmatpush3.bf16.msra.mxu0 %v8797_v3 }
 0x33a   : > { %7056 = vmatprep.subr.bf16.mxu1 %v7736_v24  ;;  %7068 = vmatprep.subr.bf16.mxu0 %v7736_v24 }
 0x33d   : > { %7057 = vmatpush3.bf16.msra.mxu1 %v8803_v51  ;;  %7069 = vmatpush3.bf16.msra.mxu0 %v8803_v51 }
 0x33e   : > { %7058 = vmatprep.subr.bf16.mxu1 %v7736_v24  ;;  %7070 = vmatprep.subr.bf16.mxu0 %v7736_v24 }
 0x341   : > { %7059 = vmatpush3.bf16.msra.mxu1 %v8809_v16  ;;  %7071 = vmatpush3.bf16.msra.mxu0 %v8809_v16 }
 0x342   : > { %7076 = vmatprep.subr.bf16.mxu1 %v7736_v24  ;;  %7088 = vmatprep.subr.bf16.mxu0 %v7736_v24 }
 0x344   : > { %7073 = vmatmul.mubr.msk.bf16.vlgmr.msra.gmra.mxu0 %vm2621_vm7, %v7581_v28  ;;  %7061 = vmatmul.mubr.msk.bf16.vlgmr.msra.gmra.mxu1 %vm2621_vm7, %v7582_v36 }
 0x345   : > { %7077 = vmatpush3.bf16.msra.mxu1 %v8791_v47  ;;  %7089 = vmatpush3.bf16.msra.mxu0 %v8791_v47 }
 0x346   : > { %7078 = vmatprep.subr.bf16.mxu1 %v7736_v24  ;;  %7090 = vmatprep.subr.bf16.mxu0 %v7736_v24 }
 0x347   : > { %7084 = vmatprep.mubr.msk.bf16.mxu1 %vm7737_vm15, %v7736_v24  ;;  %7096 = vmatprep.mubr.msk.bf16.mxu0 %vm7737_vm15, %v7736_v24 }
 0x349   : > { %7079 = vmatpush3.bf16.msra.mxu1 %v8797_v3  ;;  %7091 = vmatpush3.bf16.msra.mxu0 %v8797_v3 }
 0x34a   : > { %7080 = vmatprep.subr.bf16.mxu1 %v7736_v24  ;;  %7092 = vmatprep.subr.bf16.mxu0 %v7736_v24 }
 0x34d   : > { %7081 = vmatpush3.bf16.msra.mxu1 %v8803_v51  ;;  %7093 = vmatpush3.bf16.msra.mxu0 %v8803_v51 }
 0x34e   : > { %7082 = vmatprep.subr.bf16.mxu1 %v7736_v24  ;;  %7094 = vmatprep.subr.bf16.mxu0 %v7736_v24 }
 0x351   : > { %7083 = vmatpush3.bf16.msra.mxu1 %v8809_v16  ;;  %7095 = vmatpush3.bf16.msra.mxu0 %v8809_v16 }
 0x352   : > { %7100 = vmatprep.subr.bf16.mxu1 %v7736_v24  ;;  %7112 = vmatprep.subr.bf16.mxu0 %v7736_v24 }
 0x354   : > { %7085 = vmatmul.mubr.msk.bf16.vlgmr.msra.gmra.mxu1 %vm2621_vm7, %v7583_v22  ;;  %7097 = vmatmul.mubr.msk.bf16.vlgmr.msra.gmra.mxu0 %vm2621_vm7, %v7584_v23 }
 0x355   : > { %7101 = vmatpush3.bf16.msra.mxu1 %v8791_v47  ;;  %7113 = vmatpush3.bf16.msra.mxu0 %v8791_v47 }
 0x356   : > { %7102 = vmatprep.subr.bf16.mxu1 %v7736_v24  ;;  %7114 = vmatprep.subr.bf16.mxu0 %v7736_v24 }
 0x357   : > { %7120 = vmatprep.mubr.msk.bf16.mxu0 %vm7737_vm15, %v7736_v24  ;;  %7108 = vmatprep.mubr.msk.bf16.mxu1 %vm7737_vm15, %v7736_v24 }
 0x359   : > { %7103 = vmatpush3.bf16.msra.mxu1 %v8797_v3  ;;  %7115 = vmatpush3.bf16.msra.mxu0 %v8797_v3 }
 0x35a   : > { %7104 = vmatprep.subr.bf16.mxu1 %v7736_v24  ;;  %7116 = vmatprep.subr.bf16.mxu0 %v7736_v24 }
 0x35d   : > { %7105 = vmatpush3.bf16.msra.mxu1 %v8803_v51  ;;  %7117 = vmatpush3.bf16.msra.mxu0 %v8803_v51 }
 0x35e   : > { %7106 = vmatprep.subr.bf16.mxu1 %v7736_v24  ;;  %7118 = vmatprep.subr.bf16.mxu0 %v7736_v24 }
 0x361   : > { %7107 = vmatpush3.bf16.msra.mxu1 %v8809_v16  ;;  %7119 = vmatpush3.bf16.msra.mxu0 %v8809_v16 }
 0x362   : > { %7124 = vmatprep.subr.bf16.mxu1 %v7736_v24  ;;  %7136 = vmatprep.subr.bf16.mxu0 %v7736_v24 }
 0x364   : > { %7121 = vmatmul.mubr.msk.bf16.vlgmr.msra.gmra.mxu0 %vm2621_vm7, %v7585_v15  ;;  %7109 = vmatmul.mubr.msk.bf16.vlgmr.msra.gmra.mxu1 %vm2621_vm7, %v7586_v57 }
 0x365   : > { %7125 = vmatpush3.bf16.msra.mxu1 %v8791_v47  ;;  %7137 = vmatpush3.bf16.msra.mxu0 %v8791_v47 }
 0x366   : > { %7126 = vmatprep.subr.bf16.mxu1 %v7736_v24  ;;  %7138 = vmatprep.subr.bf16.mxu0 %v7736_v24 }
 0x367   : > { %7132 = vmatprep.mubr.msk.bf16.mxu1 %vm7737_vm15, %v7736_v24  ;;  %7144 = vmatprep.mubr.msk.bf16.mxu0 %vm7737_vm15, %v7736_v24 }
 0x369   : > { %7127 = vmatpush3.bf16.msra.mxu1 %v8797_v3  ;;  %7139 = vmatpush3.bf16.msra.mxu0 %v8797_v3 }
 0x36a   : > { %7128 = vmatprep.subr.bf16.mxu1 %v7736_v24  ;;  %7140 = vmatprep.subr.bf16.mxu0 %v7736_v24 }
 0x36d   : > { %7129 = vmatpush3.bf16.msra.mxu1 %v8803_v51  ;;  %7141 = vmatpush3.bf16.msra.mxu0 %v8803_v51 }
 0x36e   : > { %7130 = vmatprep.subr.bf16.mxu1 %v7736_v24  ;;  %7142 = vmatprep.subr.bf16.mxu0 %v7736_v24 }
 0x371   : > { %7131 = vmatpush3.bf16.msra.mxu1 %v8809_v16  ;;  %7143 = vmatpush3.bf16.msra.mxu0 %v8809_v16 }
 0x372   : > { %7148 = vmatprep.subr.bf16.mxu1 %v7736_v24  ;;  %7160 = vmatprep.subr.bf16.mxu0 %v7736_v24 }
 0x374   : > { %7133 = vmatmul.mubr.msk.bf16.vlgmr.msra.gmra.mxu1 %vm2621_vm7, %v7587_v58  ;;  %7145 = vmatmul.mubr.msk.bf16.vlgmr.msra.gmra.mxu0 %vm2621_vm7, %v7588_v11 }
 0x375   : > { %7149 = vmatpush3.bf16.msra.mxu1 %v8791_v47  ;;  %7161 = vmatpush3.bf16.msra.mxu0 %v8791_v47 }
 0x376   : > { %7150 = vmatprep.subr.bf16.mxu1 %v7736_v24  ;;  %7162 = vmatprep.subr.bf16.mxu0 %v7736_v24 }
 0x377   : > { %7168 = vmatprep.mubr.msk.bf16.mxu0 %vm7737_vm15, %v7736_v24  ;;  %7156 = vmatprep.mubr.msk.bf16.mxu1 %vm7737_vm15, %v7736_v24 }
 0x379   : > { %7151 = vmatpush3.bf16.msra.mxu1 %v8797_v3  ;;  %7163 = vmatpush3.bf16.msra.mxu0 %v8797_v3 }
 0x37a   : > { %7152 = vmatprep.subr.bf16.mxu1 %v7736_v24  ;;  %7164 = vmatprep.subr.bf16.mxu0 %v7736_v24 }
 0x37d   : > { %7153 = vmatpush3.bf16.msra.mxu1 %v8803_v51  ;;  %7165 = vmatpush3.bf16.msra.mxu0 %v8803_v51 }
 0x37e   : > { %7154 = vmatprep.subr.bf16.mxu1 %v7736_v24  ;;  %7166 = vmatprep.subr.bf16.mxu0 %v7736_v24 }
 0x381   : > { %7155 = vmatpush3.bf16.msra.mxu1 %v8809_v16  ;;  %7167 = vmatpush3.bf16.msra.mxu0 %v8809_v16 }
 0x382   : > { %7172 = vmatprep.subr.bf16.mxu1 %v7736_v24  ;;  %7184 = vmatprep.subr.bf16.mxu0 %v7736_v24 }
 0x384   : > { %7169 = vmatmul.mubr.msk.bf16.vlgmr.msra.gmra.mxu0 %vm2621_vm7, %v7589_v61  ;;  %7157 = vmatmul.mubr.msk.bf16.vlgmr.msra.gmra.mxu1 %vm2621_vm7, %v7590_v62 }
 0x385   : > { %7173 = vmatpush3.bf16.msra.mxu1 %v8791_v47  ;;  %7185 = vmatpush3.bf16.msra.mxu0 %v8791_v47 }
 0x386   : > { %7174 = vmatprep.subr.bf16.mxu1 %v7736_v24  ;;  %7186 = vmatprep.subr.bf16.mxu0 %v7736_v24 }
 0x387   : > { %7180 = vmatprep.mubr.msk.bf16.mxu1 %vm7737_vm15, %v7736_v24  ;;  %7192 = vmatprep.mubr.msk.bf16.mxu0 %vm7737_vm15, %v7736_v24 }
 0x389   : > { %7175 = vmatpush3.bf16.msra.mxu1 %v8797_v3  ;;  %7187 = vmatpush3.bf16.msra.mxu0 %v8797_v3 }
 0x38a   : > { %7176 = vmatprep.subr.bf16.mxu1 %v7736_v24  ;;  %7188 = vmatprep.subr.bf16.mxu0 %v7736_v24 }
 0x38d   : > { %7177 = vmatpush3.bf16.msra.mxu1 %v8803_v51  ;;  %7189 = vmatpush3.bf16.msra.mxu0 %v8803_v51 }
 0x38e   : > { %7178 = vmatprep.subr.bf16.mxu1 %v7736_v24  ;;  %7190 = vmatprep.subr.bf16.mxu0 %v7736_v24 }
 0x391   : > { %7179 = vmatpush3.bf16.msra.mxu1 %v8809_v16  ;;  %7191 = vmatpush3.bf16.msra.mxu0 %v8809_v16 }
 0x392   : > { %7196 = vmatprep.subr.bf16.mxu1 %v7736_v24  ;;  %7208 = vmatprep.subr.bf16.mxu0 %v7736_v24 }
 0x394   : > { %7181 = vmatmul.mubr.msk.bf16.vlgmr.msra.gmra.mxu1 %vm2621_vm7, %v7591_v63  ;;  %7193 = vmatmul.mubr.msk.bf16.vlgmr.msra.gmra.mxu0 %vm2621_vm7, %v7592_v44 }
 0x395   : > { %7197 = vmatpush3.bf16.msra.mxu1 %v8791_v47  ;;  %7209 = vmatpush3.bf16.msra.mxu0 %v8791_v47 }
 0x396   : > { %7198 = vmatprep.subr.bf16.mxu1 %v7736_v24  ;;  %7210 = vmatprep.subr.bf16.mxu0 %v7736_v24 }
 0x397   : > { %7216 = vmatprep.mubr.msk.bf16.mxu0 %vm7737_vm15, %v7736_v24  ;;  %7204 = vmatprep.mubr.msk.bf16.mxu1 %vm7737_vm15, %v7736_v24 }
 0x399   : > { %7199 = vmatpush3.bf16.msra.mxu1 %v8797_v3  ;;  %7211 = vmatpush3.bf16.msra.mxu0 %v8797_v3 }
 0x39a   : > { %7200 = vmatprep.subr.bf16.mxu1 %v7736_v24  ;;  %7212 = vmatprep.subr.bf16.mxu0 %v7736_v24 }
 0x39d   : > { %7201 = vmatpush3.bf16.msra.mxu1 %v8803_v51  ;;  %7213 = vmatpush3.bf16.msra.mxu0 %v8803_v51 }
 0x39e   : > { %7202 = vmatprep.subr.bf16.mxu1 %v7736_v24  ;;  %7214 = vmatprep.subr.bf16.mxu0 %v7736_v24 }
 0x3a1   : > { %7203 = vmatpush3.bf16.msra.mxu1 %v8809_v16  ;;  %7215 = vmatpush3.bf16.msra.mxu0 %v8809_v16 }
 0x3a2   : > { %7220 = vmatprep.subr.bf16.mxu1 %v7736_v24  ;;  %7232 = vmatprep.subr.bf16.mxu0 %v7736_v24 }
 0x3a4   : > { %7217 = vmatmul.mubr.msk.bf16.vlgmr.msra.gmra.mxu0 %vm2621_vm7, %v7593_v18  ;;  %7205 = vmatmul.mubr.msk.bf16.vlgmr.msra.gmra.mxu1 %vm2621_vm7, %v7594_v26 }
 0x3a5   : > { %7221 = vmatpush3.bf16.msra.mxu1 %v8791_v47  ;;  %7233 = vmatpush3.bf16.msra.mxu0 %v8791_v47 }
 0x3a6   : > { %7222 = vmatprep.subr.bf16.mxu1 %v7736_v24  ;;  %7234 = vmatprep.subr.bf16.mxu0 %v7736_v24 }
 0x3a7   : > { %7228 = vmatprep.mubr.msk.bf16.mxu1 %vm7737_vm15, %v7736_v24  ;;  %7240 = vmatprep.mubr.msk.bf16.mxu0 %vm7737_vm15, %v7736_v24 }
 0x3a9   : > { %7223 = vmatpush3.bf16.msra.mxu1 %v8797_v3  ;;  %7235 = vmatpush3.bf16.msra.mxu0 %v8797_v3 }
 0x3aa   : > { %7224 = vmatprep.subr.bf16.mxu1 %v7736_v24  ;;  %7236 = vmatprep.subr.bf16.mxu0 %v7736_v24 }
 0x3ad   : > { %7225 = vmatpush3.bf16.msra.mxu1 %v8803_v51  ;;  %7237 = vmatpush3.bf16.msra.mxu0 %v8803_v51 }
 0x3ae   : > { %7226 = vmatprep.subr.bf16.mxu1 %v7736_v24  ;;  %7238 = vmatprep.subr.bf16.mxu0 %v7736_v24 }
 0x3b1   : > { %7227 = vmatpush3.bf16.msra.mxu1 %v8809_v16  ;;  %7239 = vmatpush3.bf16.msra.mxu0 %v8809_v16 }
 0x3b2   : > { %6864 = vmatprep.subr.bf16.mxu1 %v7597_v12  ;;  %v7617_v12 = vld [vmem:[%s9554_s4 + $0xe8] sm:$0xff]  }
 0x3b4   : > { %7229 = vmatmul.mubr.msk.bf16.vlgmr.msra.gmra.mxu1 %vm2621_vm7, %v7595_v27  ;;  %7241 = vmatmul.mubr.msk.bf16.vlgmr.msra.gmra.mxu0 %vm2621_vm7, %v7596_v1 }
 0x3b5   : > { %6865 = vmatpush3.bf16.msra.mxu1 %v7598_v13 }
 0x3b6   : > { %6866 = vmatprep.subr.bf16.mxu1 %v7599_v17 }
 0x3b9   : > { %6867 = vmatpush3.bf16.msra.mxu1 %v7600_v21  ;;  %v7618_v21 = vld [vmem:[%s9554_s4 + $0xa8] sm:$0xff]  }
 0x3ba   : > { %6868 = vmatprep.subr.bf16.mxu1 %v7601_v9 }
 0x3bd   : > { %6869 = vmatpush3.bf16.msra.mxu1 %v7602_v38  ;;  %v7623_v38 = vld [vmem:[%s9554_s4 + $0xd0] sm:$0xff]  }
 0x3be   : > { %6870 = vmatprep.subr.bf16.mxu1 %v7603_v53 }
 0x3c1   : > { %6871 = vmatpush3.bf16.msra.mxu1 %v7604_v41 }
 0x3c2   : > { %6872 = vmatprep.subr.bf16.mxu1 %v7605_v14  ;;  %v7624_v14 = vld [vmem:[%s9554_s4 + $0x90] sm:$0xff]  }
 0x3c5   : > { %6873 = vmatpush3.bf16.msra.mxu1 %v7606_v42 }
 0x3c6   : > { %6874 = vmatprep.subr.bf16.mxu1 %v7607_v6 }
 0x3c9   : > { %6875 = vmatpush3.bf16.msra.mxu1 %v7608_v46 }
 0x3ca   : > { %6876 = vmatprep.subr.bf16.mxu1 %v7609_v59 }
 0x3cd   : > { %6877 = vmatpush3.bf16.msra.mxu1 %v7610_v29 }
 0x3ce   : > { %6878 = vmatprep.subr.bf16.mxu1 %v7611_v54  ;;  %v7628_v54 = vld [vmem:[%s9554_s4 + $0x80] sm:$0xff]  }
 0x3d1   : > { %6879 = vmatpush3.bf16.msra.mxu1 %v7612_v55 }
 0x3d2   : > { %7244 = vmatprep.subr.bf16.mxu1 %v7736_v24 }
 0x404   : > { %v2943_v5 = vpop.f32.mrf.mxu0  ;;  %v9017_v45 = vpop.f32.mrf.mxu1 }
 0x406   : > { %v7074_v40 = vpop.f32.mrf.mxu0  ;;  %v7062_v50 = vpop.f32.mrf.mxu1 }
 0x408   : > { %v2946_v8 = vpop.f32.mrf.mxu0  ;;  %v9019_v56 = vpop.f32.mrf.mxu1 }
 0x409   : > { %v2950_v10 = vpack.c.bf16 %v2946_v8, %v2943_v5  ;;  %v2897_v30 = vpack.c.bf16 %v9019_v56, %v9017_v45  ;;  %v7613_v8 = vld [vmem:[%s9554_s4 + $0xf8] sm:$0xff]  }
 0x40a   : > { %v7063_v31 = vpop.f32.mrf.mxu1  ;;  %v7075_v39 = vpop.f32.mrf.mxu0  ;;  %6886 = vmatprep.subr.bf16.mxu0 %v7613_v8 }
 0x40b   : > { %3694 = vrot.lane.b32.xlu1 %v2950_v10, %s7724_s16  ;;  %v7614_v10 = vld [vmem:[%s9554_s4 + $0xb8] sm:$0xff]   ;;  %v7615_v31 = vld [vmem:[%s9554_s4 + $0xf0] sm:$0xff]  }
 0x40c   : > { %6887 = vmatpush3.bf16.msra.mxu0 %v7614_v10  ;;  %v7616_v39 = vld [vmem:[%s9554_s4 + $0xb0] sm:$0xff]  }
 0x40d   : > { %6888 = vmatprep.subr.bf16.mxu0 %v7615_v31 }
 0x410   : > { %6889 = vmatpush3.bf16.msra.mxu0 %v7616_v39 }
 0x411   : > { %6890 = vmatprep.subr.bf16.mxu0 %v7617_v12 }
 0x414   : > { %v2996_v2 = vpop.f32.mrf.mxu1  ;;  %v3049_v0 = vpop.f32.mrf.mxu0  ;;  %6891 = vmatpush3.bf16.msra.mxu0 %v7618_v21 }
 0x416   : > { %v7086_v32 = vpop.f32.mrf.mxu1  ;;  %v7098_v60 = vpop.f32.mrf.mxu0 }
 0x418   : > { %v2999_v25 = vpop.f32.mrf.mxu1  ;;  %v3052_v33 = vpop.f32.mrf.mxu0 }
 0x419   : > { %v3003_v7 = vpack.c.bf16 %v2999_v25, %v2996_v2  ;;  %v3056_v35 = vpack.c.bf16 %v3052_v33, %v3049_v0 }
 0x41a   : > { %v7087_v4 = vpop.f32.mrf.mxu1  ;;  %v7099_v37 = vpop.f32.mrf.mxu0 }
 0x41b   : > { %3697 = vrot.lane.b32.xlu1 %v3003_v7, %s7728_s23  ;;  %3700 = vrot.lane.b32.xlu0 %v3056_v35, %s7732_s26  ;;  %v7619_v7 = vld [vmem:[%s9554_s4 + $0xe0] sm:$0xff]   ;;  %v7621_v4 = vld [vmem:[%s9554_s4 + $0xd8] sm:$0xff]  }
 0x41c   : > { %v7620_v35 = vld [vmem:[%s9554_s4 + $0xa0] sm:$0xff]   ;;  %6892 = vmatprep.subr.bf16.mxu0 %v7619_v7  ;;  %v7622_v37 = vld [vmem:[%s9554_s4 + $0x98] sm:$0xff]  }
 0x41d   : > { %6893 = vmatpush3.bf16.msra.mxu0 %v7620_v35 }
 0x41e   : > { %6894 = vmatprep.subr.bf16.mxu0 %v7621_v4 }
 0x421   : > { %6895 = vmatpush3.bf16.msra.mxu0 %v7622_v37 }
 0x422   : > { %6896 = vmatprep.subr.bf16.mxu0 %v7623_v38 }
 0x424   : > { %v3155_v34 = vpop.f32.mrf.mxu0  ;;  %v9059_v43 = vpop.f32.mrf.mxu1 }
 0x425   : > { %6897 = vmatpush3.bf16.msra.mxu0 %v7624_v14 }
 0x426   : > { %v7122_v47 = vpop.f32.mrf.mxu0  ;;  %v7110_v48 = vpop.f32.mrf.mxu1 }
 0x428   : > { %v3158_v49 = vpop.f32.mrf.mxu0  ;;  %v9067_v19 = vpop.f32.mrf.mxu1 }
 0x429   : > { %v3162_v52 = vpack.c.bf16 %v3158_v49, %v3155_v34  ;;  %v3109_v3 = vpack.c.bf16 %v9067_v19, %v9059_v43  ;;  %v7625_v34 = vld [vmem:[%s9554_s4 + $0xc8] sm:$0xff]  }
 0x42a   : > { %v7111_v20 = vpop.f32.mrf.mxu1  ;;  %v7123_v51 = vpop.f32.mrf.mxu0  ;;  %v7626_v49 = vld [vmem:[%s9554_s4 + $0x88] sm:$0xff]   ;;  %6898 = vmatprep.subr.bf16.mxu0 %v7625_v34 }
 0x42b   : > { %3703 = vrot.lane.b32.xlu0 %v3162_v52, %s7724_s16  ;;  %6899 = vmatpush3.bf16.msra.mxu0 %v7626_v49  ;;  %v7627_v51 = vld [vmem:[%s9554_s4 + $0xc0] sm:$0xff]  }
 0x42c   : > { %6900 = vmatprep.subr.bf16.mxu0 %v7627_v51  ;;  %v6034_v49 = vld [vmem:[%s9556_s6 + $0x4] sm:$0x3]  ;;  %v6042_v51 = vld [vmem:[%s9556_s6 + $0xc] sm:$0x3] }
 0x42f   : > { %6901 = vmatpush3.bf16.msra.mxu0 %v7628_v54  ;;  %v6040_v54 = vld [vmem:[%s9556_s6 + $0xa] sm:$0x3] }
 0x430   : > { %7256 = vmatprep.subr.bf16.mxu0 %v7736_v24 }
 0x434   : > { %v3208_v16 = vpop.f32.mrf.mxu1  ;;  %v3261_v28 = vpop.f32.mrf.mxu0 }
 0x436   : > { %v7134_v36 = vpop.f32.mrf.mxu1  ;;  %v7146_v22 = vpop.f32.mrf.mxu0 }
 0x438   : > { %v3211_v23 = vpop.f32.mrf.mxu1  ;;  %v3264_v15 = vpop.f32.mrf.mxu0 }
 0x439   : > { %v3215_v57 = vpack.c.bf16 %v3211_v23, %v3208_v16  ;;  %v3268_v61 = vpack.c.bf16 %v3264_v15, %v3261_v28 }
 0x43a   : > { %v7135_v58 = vpop.f32.mrf.mxu1  ;;  %v7147_v11 = vpop.f32.mrf.mxu0 }
 0x43b   : > { %3706 = vrot.lane.b32.xlu0 %v3215_v57, %s7728_s23 }
 0x43f   : > { %3709 = vrot.lane.b32.xlu0 %v3268_v61, %s7732_s26 }
 0x444   : > { %v3367_v62 = vpop.f32.mrf.mxu0  ;;  %v9084_v63 = vpop.f32.mrf.mxu1 }
 0x446   : > { %v7170_v44 = vpop.f32.mrf.mxu0  ;;  %v7158_v18 = vpop.f32.mrf.mxu1 }
 0x448   : > { %v3370_v26 = vpop.f32.mrf.mxu0  ;;  %v9086_v27 = vpop.f32.mrf.mxu1 }
 0x449   : > { %v3374_v1 = vpack.c.bf16 %v3370_v26, %v3367_v62  ;;  %v3321_v5 = vpack.c.bf16 %v9086_v27, %v9084_v63  ;;  %v5998_v27 = vld [vmem:[%s9555_s5] ss:$0 sm:$0xff] }
 0x44a   : > { %v7159_v40 = vpop.f32.mrf.mxu1  ;;  %v7171_v50 = vpop.f32.mrf.mxu0 }
 0x44b   : > { %3712 = vrot.lane.b32.xlu1 %v3374_v1, %s7724_s16 }
 0x454   : > { %v3420_v13 = vpop.f32.mrf.mxu1  ;;  %v3473_v17 = vpop.f32.mrf.mxu0 }
 0x456   : > { %v7182_v9 = vpop.f32.mrf.mxu1  ;;  %v7194_v2 = vpop.f32.mrf.mxu0 }
 0x458   : > { %v3423_v0 = vpop.f32.mrf.mxu1  ;;  %v3476_v32 = vpop.f32.mrf.mxu0 }
 0x459   : > { %v3427_v60 = vpack.c.bf16 %v3423_v0, %v3420_v13  ;;  %v3480_v20 = vpack.c.bf16 %v3476_v32, %v3473_v17 }
 0x45a   : > { %v7183_v25 = vpop.f32.mrf.mxu1  ;;  %v7195_v33 = vpop.f32.mrf.mxu0 }
 0x45b   : > { %3715 = vrot.lane.b32.xlu1 %v3427_v60, %s7728_s23 }
 0x464   : > { %v3579_v53 = vpop.f32.mrf.mxu0  ;;  %v3526_v41 = vpop.f32.mrf.mxu1 }
 0x466   : > { %v7218_v42 = vpop.f32.mrf.mxu0  ;;  %v7206_v6 = vpop.f32.mrf.mxu1 }
 0x468   : > { %v3582_v46 = vpop.f32.mrf.mxu0  ;;  %v3529_v47 = vpop.f32.mrf.mxu1 }
 0x469   : > { %v3586_v48 = vpack.c.bf16 %v3582_v46, %v3579_v53  ;;  %v3533_v59 = vpack.c.bf16 %v3529_v47, %v3526_v41 }
 0x46a   : > { %v7207_v52 = vpop.f32.mrf.mxu1  ;;  %v7219_v29 = vpop.f32.mrf.mxu0 }
 0x46b   : > { %3721 = vrot.lane.b32.xlu1 %v3586_v48, %s7724_s16  ;;  %v6032_v52 = vld [vmem:[%s9556_s6 + $0x2] sm:$0x3]  ;;  %v6038_v29 = vld [vmem:[%s9556_s6 + $0x8] sm:$0x3] }
 0x46f   : > { %3718 = vrot.lane.b32.xlu1 %v3480_v20, %s7732_s26  ;;  %v6036_v20 = vld [vmem:[%s9556_s6 + $0x6] sm:$0x3] }
 0x474   : > { %v3632_v55 = vpop.f32.mrf.mxu1  ;;  %v3685_v16 = vpop.f32.mrf.mxu0 }
 0x476   : > { %v7230_v28 = vpop.f32.mrf.mxu1  ;;  %v7242_v36 = vpop.f32.mrf.mxu0 }
 0x477   : > { %v6050_v28 = vld [vmem:[%s9556_s6 + $0x14] sm:$0x3]  ;;  %v6048_v36 = vld [vmem:[%s9556_s6 + $0x12] sm:$0x3] }
 0x478   : > { %v3635_v22 = vpop.f32.mrf.mxu1  ;;  %v3688_v23 = vpop.f32.mrf.mxu0 }
 0x479   : > { %v3639_v15 = vpack.c.bf16 %v3635_v22, %v3632_v55  ;;  %v3692_v11 = vpack.c.bf16 %v3688_v23, %v3685_v16  ;;  %v6046_v55 = vld [vmem:[%s9556_s6 + $0x10] sm:$0x3]  ;;  %v6044_v16 = vld [vmem:[%s9556_s6 + $0xe] sm:$0x3]  ;;  %v6054_v22 = vld [vmem:[%s9556_s6 + $0x18] sm:$0x3] }
 0x47a   : > { %v7231_v57 = vpop.f32.mrf.mxu1  ;;  %v7243_v58 = vpop.f32.mrf.mxu0  ;;  %v6052_v23 = vld [vmem:[%s9556_s6 + $0x16] sm:$0x3] }
 0x47b   : > { %3724 = vrot.lane.b32.xlu0 %v3639_v15, %s7728_s23  ;;  %v6058_v15 = vld [vmem:[%s9556_s6 + $0x1c] sm:$0x3]  ;;  %v6056_v57 = vld [vmem:[%s9556_s6 + $0x1a] sm:$0x3]  ;;  %v6060_v58 = vld [vmem:[%s9556_s6 + $0x1e] sm:$0x3] }
 0x47d   : > { %v3695_v62 = vpop.permute.xlu1 %3694 }
 0x47e   : > { %v3731_v1 = vsel %vm2585_vm3, %v2897_v30, %v3695_v62  ;;  %v7631_v62 = vld [vmem:[%s9557_s7 + $0x70] sm:$0xff]  }
 0x47f   : > { %3727 = vrot.lane.b32.xlu0 %v3692_v11, %s7732_s26  ;;  %v7629_v11 = vld [vmem:[%s9557_s7 + $0x78] sm:$0xff]  }
 0x48d   : > { %v3701_v61 = vpop.permute.xlu0 %3700  ;;  %v3698_v18 = vpop.permute.xlu1 %3697 }
 0x48e   : > { %v3733_v40 = vsel %vm2621_vm7, %v3731_v1, %v3698_v18  ;;  %v7640_v18 = vld [vmem:[%s9557_s7 + $0xb8] sm:$0xff]   ;;  %v7642_v1 = vld [vmem:[%s9557_s7 + $0xf0] sm:$0xff]  }
 0x48f   : > { %v3735_v39 = vsel %vm2657_vm11, %v3733_v40, %v3701_v61  ;;  %v7630_v61 = vld [vmem:[%s9557_s7 + $0x38] sm:$0xff]   ;;  %v7644_v40 = vld [vmem:[%s9557_s7 + $0xb0] sm:$0xff]  }
 0x49d   : > { %v3704_v44 = vpop.permute.xlu0 %3703 }
 0x49e   : > { %v3739_v50 = vsel %vm2585_vm3, %v3109_v3, %v3704_v44  ;;  %v7638_v44 = vld [vmem:[%s9557_s7 + $0xf8] sm:$0xff]  }
 0x4ad   : > { %v3707_v26 = vpop.permute.xlu0 %3706 }
 0x4ae   : > { %v3741_v8 = vsel %vm2621_vm7, %v3739_v50, %v3707_v26  ;;  %v7633_v26 = vld [vmem:[%s9557_s7 + $0x68] sm:$0xff]  }
 0x4af   : > { %v7634_v50 = vld [vmem:[%s9557_s7 + $0x28] sm:$0xff]  }
 0x4b1   : > { %v3710_v10 = vpop.permute.xlu0 %3709 }
 0x4b2   : > { %v3743_v31 = vsel %vm2657_vm11, %v3741_v8, %v3710_v10  ;;  %v7635_v8 = vld [vmem:[%s9557_s7 + $0x60] sm:$0xff]  }
 0x4b3   : > { %4056 = vmatprep.mubr.bf16.mxu1 %v3743_v31  ;;  %v7636_v10 = vld [vmem:[%s9557_s7 + $0x20] sm:$0xff]   ;;  %v7637_v31 = vld [vmem:[%s9557_s7 + $0x58] sm:$0xff]  }
 0x4b4   : > { %4057 = vmatmul.mubr.bf16.vlgmr.msra.gmra.mxu1 %v3735_v39  ;;  %v7639_v39 = vld [vmem:[%s9557_s7 + $0x18] sm:$0xff]  }
 0x4b5   : > { %7246 = vmatprep.mubr.msk.bf16.mxu1 %vm7737_vm15, %v7736_v24 }
 0x4bd   : > { %v3713_v45 = vpop.permute.xlu1 %3712 }
 0x4be   : > { %v3747_v3 = vsel %vm2585_vm3, %v3321_v5, %v3713_v45  ;;  %v7641_v45 = vld [vmem:[%s9557_s7 + $0x50] sm:$0xff]  }
 0x4cd   : > { %v3716_v56 = vpop.permute.xlu1 %3715 }
 0x4ce   : > { %v3749_v21 = vsel %vm2621_vm7, %v3747_v3, %v3716_v56  ;;  %v7643_v56 = vld [vmem:[%s9557_s7 + $0x10] sm:$0xff]   ;;  %v7649_v3 = vld [vmem:[%s9557_s7 + $0x40] sm:$0xff]  }
 0x4dd   : > { %v3722_v30 = vpop.permute.xlu1 %3721 }
 0x4de   : > { %v3755_v43 = vsel %vm2585_vm3, %v3533_v59, %v3722_v30  ;;  %v4111_v59 = vld [vmem:[%s9556_s6] sm:$0x3]  ;;  %v7645_v30 = vld [vmem:[%s9557_s7 + $0x48] sm:$0xff]  }
 0x4e1   : > { %v3719_v19 = vpop.permute.xlu1 %3718 }
 0x4e2   : > { %v3751_v2 = vsel %vm2657_vm11, %v3749_v21, %v3719_v19  ;;  %v7648_v19 = vld [vmem:[%s9557_s7 + $0xa8] sm:$0xff]  }
 0x4ed   : > { %v3725_v12 = vpop.permute.xlu0 %3724 }
 0x4ee   : > { %v3757_v13 = vsel %vm2621_vm7, %v3755_v43, %v3725_v12  ;;  %v7646_v12 = vld [vmem:[%s9557_s7 + $0xe8] sm:$0xff]  }
 0x4ef   : > { %v7647_v43 = vld [vmem:[%s9557_s7 + $0x8] sm:$0xff]  }
 0x4f1   : > { %v3728_v17 = vpop.permute.xlu0 %3727 }
 0x4f2   : > { %v3759_v9 = vsel %vm2657_vm11, %v3757_v13, %v3728_v17  ;;  %v7650_v13 = vld [vmem:[%s9557_s7 + $0xe0] sm:$0xff]  }
 0x4f3   : > { %4097 = vmatprep.mubr.bf16.mxu0 %v3759_v9  ;;  %v7651_v9 = vld [vmem:[%s9557_s7] sm:$0xff]  }
 0x4f4   : > { %4098 = vmatmul.mubr.bf16.vlgmr.msra.gmra.mxu0 %v3751_v2  ;;  %v7652_v2 = vld [vmem:[%s9557_s7 + $0xa0] sm:$0xff]  }
 0x4f5   : > { %7258 = vmatprep.mubr.msk.bf16.mxu0 %vm7737_vm15, %v7736_v24 }
 0x574   : > { %v6880_v0 = vpop.f32.mrf.mxu1 }
 0x576   : > { %v6881_v32 = vpop.f32.mrf.mxu1 }
 0x577   : > { %v6882_v63 = vadd.f32 %v6881_v32, %v6880_v0 }
 0x578   : > { %v6883_v60 = vpop.f32.mrf.mxu1 }
 0x579   : > { %v4059_v7 = vadd.f32 %v6882_v63, %v5998_v27 }
 0x57a   : > { %v6884_v5 = vpop.f32.mrf.mxu1 }
 0x57b   : > { %v6885_v35 = vadd.f32 %v6884_v5, %v6883_v60 }
 0x57d   : > { %v4062_v41 = vadd.f32 %v6885_v35, %v5998_v27  ;;  %v7655_v35 = vld [vmem:[%s9557_s7 + $0x98] sm:$0xff]  }
 0x5b4   : > { %v6902_v25 = vpop.f32.mrf.mxu0 }
 0x5b6   : > { %v6903_v33 = vpop.f32.mrf.mxu0 }
 0x5b7   : > { %v6904_v4 = vadd.f32 %v6903_v33, %v6902_v25  ;;  %v7653_v25 = vld [vmem:[%s9557_s7 + $0xd8] sm:$0xff]  }
 0x5b8   : > { %v6905_v37 = vpop.f32.mrf.mxu0  ;;  %v7654_v33 = vld [vmem:[%s9557_s7 + $0x178] sm:$0xff]  }
 0x5b9   : > { %v4100_v38 = vadd.f32 %v6904_v4, %v4059_v7 }
 0x5ba   : > { %v6906_v53 = vpop.f32.mrf.mxu0 }
 0x5bb   : > { %v6907_v14 = vadd.f32 %v6906_v53, %v6905_v37  ;;  %v4106_v42 = vmul.f32 0.2, %v4100_v38 }
 0x5bd   : > { %v4103_v6 = vadd.f32 %v6907_v14, %v4062_v41  ;;  %v4108_v46 = vmax.f32 %v4100_v38, %v4106_v42  ;;  %v7657_v38 = vld [vmem:[%s9557_s7 + $0xd0] sm:$0xff]  }
 0x5be   : > { %v7659_v14 = vld [vmem:[%s9557_s7 + $0x90] sm:$0xff]  }
 0x5bf   : > { %v4107_v34 = vmul.f32 0.2, %v4103_v6 }
 0x5c1   : > { %v4109_v47 = vmax.f32 %v4103_v6, %v4107_v34  ;;  %v7661_v34 = vld [vmem:[%s9557_s7 + $0xc8] sm:$0xff]  }
 0x5c3   : > { %v9173_v48 = vpack.c.bf16 %v4109_v47, %v4108_v46 }
 0x5c5   : > { %7245 = vmatpush3.bf16.msra.mxu1 %v9173_v48  ;;  %7257 = vmatpush3.bf16.msra.mxu0 %v9173_v48 }
 0x5c6   : > { %7250 = vmatprep.subr.bf16.mxu1 %v7736_v24  ;;  %7268 = vmatprep.subr.bf16.mxu0 %v7736_v24 }
 0x5c8   : > { %7247 = vmatmul.mubr.msk.bf16.vlgmr.msra.gmra.mxu1 %vm2567_vm1, %v4111_v59  ;;  %7259 = vmatmul.mubr.msk.bf16.vlgmr.msra.gmra.mxu0 %vm2567_vm1, %v6034_v49 }
 0x5c9   : > { %7251 = vmatpush3.bf16.msra.mxu1 %v9173_v48  ;;  %7269 = vmatpush3.bf16.msra.mxu0 %v9173_v48 }
 0x5ca   : > { %7252 = vmatprep.mubr.msk.bf16.mxu1 %vm7737_vm15, %v7736_v24  ;;  %7262 = vmatprep.subr.bf16.mxu1 %v7736_v24 }
 0x5cb   : > { %7270 = vmatprep.mubr.msk.bf16.mxu0 %vm7737_vm15, %v7736_v24  ;;  %7280 = vmatprep.subr.bf16.mxu0 %v7736_v24 }
 0x5d0   : > { %7253 = vmatmul.mubr.msk.bf16.vlgmr.msra.gmra.mxu1 %vm2567_vm1, %v6032_v52  ;;  %7271 = vmatmul.mubr.msk.bf16.vlgmr.msra.gmra.mxu0 %vm2567_vm1, %v6038_v29  ;;  %v7665_v29 = vld [vmem:[%s9557_s7 + $0xc0] sm:$0xff]  }
 0x5d1   : > { %7263 = vmatpush3.bf16.msra.mxu1 %v9173_v48  ;;  %7281 = vmatpush3.bf16.msra.mxu0 %v9173_v48 }
 0x5d2   : > { %7264 = vmatprep.mubr.msk.bf16.mxu1 %vm7737_vm15, %v7736_v24  ;;  %7274 = vmatprep.subr.bf16.mxu1 %v7736_v24 }
 0x5d3   : > { %7282 = vmatprep.mubr.msk.bf16.mxu0 %vm7737_vm15, %v7736_v24  ;;  %7292 = vmatprep.subr.bf16.mxu0 %v7736_v24 }
 0x5d8   : > { %7265 = vmatmul.mubr.msk.bf16.vlgmr.msra.gmra.mxu1 %vm2567_vm1, %v6036_v20  ;;  %7283 = vmatmul.mubr.msk.bf16.vlgmr.msra.gmra.mxu0 %vm2567_vm1, %v6042_v51 }
 0x5d9   : > { %7275 = vmatpush3.bf16.msra.mxu1 %v9173_v48  ;;  %7293 = vmatpush3.bf16.msra.mxu0 %v9173_v48 }
 0x5da   : > { %7276 = vmatprep.mubr.msk.bf16.mxu1 %vm7737_vm15, %v7736_v24  ;;  %7286 = vmatprep.subr.bf16.mxu1 %v7736_v24 }
 0x5db   : > { %7294 = vmatprep.mubr.msk.bf16.mxu0 %vm7737_vm15, %v7736_v24  ;;  %7304 = vmatprep.subr.bf16.mxu0 %v7736_v24 }
 0x5e0   : > { %7277 = vmatmul.mubr.msk.bf16.vlgmr.msra.gmra.mxu1 %vm2567_vm1, %v6040_v54  ;;  %7295 = vmatmul.mubr.msk.bf16.vlgmr.msra.gmra.mxu0 %vm2567_vm1, %v6046_v55  ;;  %v7667_v54 = vld [vmem:[%s9557_s7 + $0x80] sm:$0xff]  }
 0x5e1   : > { %7287 = vmatpush3.bf16.msra.mxu1 %v9173_v48  ;;  %7305 = vmatpush3.bf16.msra.mxu0 %v9173_v48 }
 0x5e2   : > { %7288 = vmatprep.mubr.msk.bf16.mxu1 %vm7737_vm15, %v7736_v24  ;;  %7298 = vmatprep.subr.bf16.mxu1 %v7736_v24 }
 0x5e3   : > { %7306 = vmatprep.mubr.msk.bf16.mxu0 %vm7737_vm15, %v7736_v24  ;;  %7316 = vmatprep.subr.bf16.mxu0 %v7736_v24 }
 0x5e8   : > { %7289 = vmatmul.mubr.msk.bf16.vlgmr.msra.gmra.mxu1 %vm2567_vm1, %v6044_v16  ;;  %7307 = vmatmul.mubr.msk.bf16.vlgmr.msra.gmra.mxu0 %vm2567_vm1, %v6050_v28 }
 0x5e9   : > { %7299 = vmatpush3.bf16.msra.mxu1 %v9173_v48  ;;  %7317 = vmatpush3.bf16.msra.mxu0 %v9173_v48 }
 0x5ea   : > { %7300 = vmatprep.mubr.msk.bf16.mxu1 %vm7737_vm15, %v7736_v24  ;;  %7310 = vmatprep.subr.bf16.mxu1 %v7736_v24 }
 0x5eb   : > { %7318 = vmatprep.mubr.msk.bf16.mxu0 %vm7737_vm15, %v7736_v24  ;;  %7328 = vmatprep.subr.bf16.mxu0 %v7736_v24 }
 0x5f0   : > { %7301 = vmatmul.mubr.msk.bf16.vlgmr.msra.gmra.mxu1 %vm2567_vm1, %v6048_v36  ;;  %7319 = vmatmul.mubr.msk.bf16.vlgmr.msra.gmra.mxu0 %vm2567_vm1, %v6054_v22  ;;  %v7670_v22 = vld [vmem:[%s9557_s7 + $0x1f8] sm:$0xff]  }
 0x5f1   : > { %7311 = vmatpush3.bf16.msra.mxu1 %v9173_v48  ;;  %7329 = vmatpush3.bf16.msra.mxu0 %v9173_v48 }
 0x5f2   : > { %7312 = vmatprep.mubr.msk.bf16.mxu1 %vm7737_vm15, %v7736_v24  ;;  %7322 = vmatprep.subr.bf16.mxu1 %v7736_v24 }
 0x5f3   : > { %7330 = vmatprep.mubr.msk.bf16.mxu0 %vm7737_vm15, %v7736_v24  ;;  %6940 = vmatprep.subr.bf16.mxu0 %v7629_v11 }
 0x5f8   : > { %7313 = vmatmul.mubr.msk.bf16.vlgmr.msra.gmra.mxu1 %vm2567_vm1, %v6052_v23  ;;  %7331 = vmatmul.mubr.msk.bf16.vlgmr.msra.gmra.mxu0 %vm2567_vm1, %v6058_v15 }
 0x5f9   : > { %7323 = vmatpush3.bf16.msra.mxu1 %v9173_v48  ;;  %7324 = vmatprep.mubr.msk.bf16.mxu1 %vm7737_vm15, %v7736_v24 }
 0x5fa   : > { %7334 = vmatprep.subr.bf16.mxu1 %v7736_v24  ;;  %6941 = vmatpush3.bf16.msra.mxu0 %v7630_v61 }
 0x5fb   : > { %6942 = vmatprep.subr.bf16.mxu0 %v7631_v62 }
 0x600   : > { %7325 = vmatmul.mubr.msk.bf16.vlgmr.msra.gmra.mxu1 %vm2567_vm1, %v6056_v57 }
 0x601   : > { %7335 = vmatpush3.bf16.msra.mxu1 %v9173_v48  ;;  %7336 = vmatprep.mubr.msk.bf16.mxu1 %vm7737_vm15, %v7736_v24  ;;  %v7632_v24 = vld [vmem:[%s9557_s7 + $0x30] sm:$0xff]   ;;  %v7663_v48 = vld [vmem:[%s9557_s7 + $0x88] sm:$0xff]  }
 0x602   : > { %6962 = vmatprep.subr.bf16.mxu1 %v7638_v44  ;;  %6943 = vmatpush3.bf16.msra.mxu0 %v7632_v24 }
 0x603   : > { %6944 = vmatprep.subr.bf16.mxu0 %v7633_v26 }
 0x606   : > { %6945 = vmatpush3.bf16.msra.mxu0 %v7634_v50 }
 0x607   : > { %6946 = vmatprep.subr.bf16.mxu0 %v7635_v8 }
 0x608   : > { %7337 = vmatmul.mubr.msk.bf16.vlgmr.msra.gmra.mxu1 %vm2567_vm1, %v6060_v58  ;;  %vm5601_vm1 = vcmask 3072  }
 0x609   : > { %6963 = vmatpush3.bf16.msra.mxu1 %v7640_v18 }
 0x60a   : > { %6964 = vmatprep.subr.bf16.mxu1 %v7642_v1  ;;  %6947 = vmatpush3.bf16.msra.mxu0 %v7636_v10 }
 0x60b   : > { %6948 = vmatprep.subr.bf16.mxu0 %v7637_v31 }
 0x60d   : > { %6965 = vmatpush3.bf16.msra.mxu1 %v7644_v40 }
 0x60e   : > { %6949 = vmatpush3.bf16.msra.mxu0 %v7639_v39  ;;  %6966 = vmatprep.subr.bf16.mxu1 %v7646_v12 }
 0x60f   : > { %6950 = vmatprep.subr.bf16.mxu0 %v7641_v45 }
 0x611   : > { %6967 = vmatpush3.bf16.msra.mxu1 %v7648_v19 }
 0x612   : > { %6951 = vmatpush3.bf16.msra.mxu0 %v7643_v56  ;;  %6968 = vmatprep.subr.bf16.mxu1 %v7650_v13 }
 0x613   : > { %6952 = vmatprep.subr.bf16.mxu0 %v7645_v30 }
 0x615   : > { %6969 = vmatpush3.bf16.msra.mxu1 %v7652_v2 }
 0x616   : > { %6953 = vmatpush3.bf16.msra.mxu0 %v7647_v43  ;;  %6970 = vmatprep.subr.bf16.mxu1 %v7653_v25 }
 0x617   : > { %6954 = vmatprep.subr.bf16.mxu0 %v7649_v3 }
 0x619   : > { %6971 = vmatpush3.bf16.msra.mxu1 %v7655_v35 }
 0x61a   : > { %6955 = vmatpush3.bf16.msra.mxu0 %v7651_v9  ;;  %6972 = vmatprep.subr.bf16.mxu1 %v7657_v38 }
 0x61b   : > { %6984 = vmatprep.subr.bf16.mxu0 %v7654_v33 }
 0x61d   : > { %6973 = vmatpush3.bf16.msra.mxu1 %v7659_v14 }
 0x61e   : > { %6974 = vmatprep.subr.bf16.mxu1 %v7661_v34 }
 0x621   : > { %6975 = vmatpush3.bf16.msra.mxu1 %v7663_v48 }
 0x622   : > { %6976 = vmatprep.subr.bf16.mxu1 %v7665_v29 }
 0x625   : > { %6977 = vmatpush3.bf16.msra.mxu1 %v7667_v54  ;;  %v7664_v54 = vld [vmem:[%s9557_s7 + $0x128] sm:$0xff]  }
 0x626   : > { %7006 = vmatprep.subr.bf16.mxu1 %v7670_v22 }
 0x688   : > { %v9363_v17 = vpop.f32.mrf.mxu1  ;;  %v9365_v21 = vpop.f32.mrf.mxu0 }
 0x689   : > { %v4155_v48 = vpack.c.bf16 %v9363_v17, %v9363_v17  ;;  %v7660_v17 = vld [vmem:[%s9557_s7 + $0x130] sm:$0xff]  }
 0x68a   : > { %v7248_v0 = vpop.f32.mrf.mxu1  ;;  %v7260_v32 = vpop.f32.mrf.mxu0 }
 0x68c   : > { %v4152_v60 = vpop.f32.mrf.mxu1  ;;  %v4244_v63 = vpop.f32.mrf.mxu0 }
 0x68e   : > { %v7249_v27 = vpop.f32.mrf.mxu1  ;;  %v7261_v5 = vpop.f32.mrf.mxu0 }
 0x690   : > { %v4195_v7 = vpop.f32.mrf.mxu1  ;;  %v9382_v4 = vpop.f32.mrf.mxu0 }
 0x691   : > { %v4201_v37 = vpack.c.bf16 %v4195_v7, %v4195_v7  ;;  %v4339_v22 = vpack.c.bf16 %v9382_v4, %v9382_v4  ;;  %v7674_v4 = vld [vmem:[%s9557_s7 + $0x1f0] sm:$0xff]  }
 0x692   : > { %v7254_v53 = vpop.f32.mrf.mxu1  ;;  %v7272_v41 = vpop.f32.mrf.mxu0 }
 0x693   : > { %4847 = vrot.lane.b32.xlu1 %v4201_v37, %s7728_s23 }
 0x694   : > { %v4198_v42 = vpop.f32.mrf.mxu1  ;;  %v4336_v6 = vpop.f32.mrf.mxu0 }
 0x696   : > { %v7255_v46 = vpop.f32.mrf.mxu1  ;;  %v7273_v47 = vpop.f32.mrf.mxu0 }
 0x697   : > { %v4247_v46 = vpack.c.bf16 %v9365_v21, %v9365_v21  ;;  %v7662_v21 = vld [vmem:[%s9557_s7 + $0x168] sm:$0xff]  }
 0x698   : > { %v4287_v59 = vpop.f32.mrf.mxu1  ;;  %v9397_v49 = vpop.f32.mrf.mxu0 }
 0x699   : > { %v4293_v52 = vpack.c.bf16 %v4287_v59, %v4287_v59 }
 0x69a   : > { %v7266_v20 = vpop.f32.mrf.mxu1  ;;  %v7284_v51 = vpop.f32.mrf.mxu0 }
 0x69b   : > { %4850 = vrot.lane.b32.xlu0 %v4293_v52, %s7728_s23  ;;  %v7656_v52 = vld [vmem:[%s9557_s7 + $0x138] sm:$0xff]   ;;  %v7658_v20 = vld [vmem:[%s9557_s7 + $0x170] sm:$0xff]  }
 0x69c   : > { %v4290_v55 = vpop.f32.mrf.mxu1  ;;  %v4428_v16 = vpop.f32.mrf.mxu0 }
 0x69d   : > { %v7666_v55 = vld [vmem:[%s9557_s7 + $0x160] sm:$0xff]  }
 0x69e   : > { %v7267_v28 = vpop.f32.mrf.mxu1  ;;  %v7285_v36 = vpop.f32.mrf.mxu0  ;;  %v7668_v16 = vld [vmem:[%s9557_s7 + $0x120] sm:$0xff]  }
 0x69f   : > { %v4431_v28 = vpack.c.bf16 %v9397_v49, %v9397_v49  ;;  %v7669_v36 = vld [vmem:[%s9557_s7 + $0x158] sm:$0xff]  }
 0x6a0   : > { %v4379_v23 = vpop.f32.mrf.mxu1  ;;  %v9409_v15 = vpop.f32.mrf.mxu0 }
 0x6a1   : > { %v4385_v57 = vpack.c.bf16 %v4379_v23, %v4379_v23 }
 0x6a2   : > { %v7278_v58 = vpop.f32.mrf.mxu1  ;;  %v7296_v11 = vpop.f32.mrf.mxu0 }
 0x6a3   : > { %4853 = vrot.lane.b32.xlu1 %v4385_v57, %s7728_s23  ;;  %v7671_v58 = vld [vmem:[%s9557_s7 + $0x118] sm:$0xff]  }
 0x6a4   : > { %v4382_v61 = vpop.f32.mrf.mxu1  ;;  %v4520_v62 = vpop.f32.mrf.mxu0  ;;  %v7672_v11 = vld [vmem:[%s9557_s7 + $0x1b8] sm:$0xff]  }
 0x6a5   : > { %v7673_v61 = vld [vmem:[%s9557_s7 + $0x150] sm:$0xff]  }
 0x6a6   : > { %v7279_v24 = vpop.f32.mrf.mxu1  ;;  %v7297_v44 = vpop.f32.mrf.mxu0 }
 0x6a7   : > { %v7675_v24 = vld [vmem:[%s9557_s7 + $0x110] sm:$0xff]  }
 0x6a8   : > { %v4471_v18 = vpop.f32.mrf.mxu1  ;;  %v9412_v26 = vpop.f32.mrf.mxu0  ;;  %v7676_v44 = vld [vmem:[%s9557_s7 + $0x1b0] sm:$0xff]  }
 0x6a9   : > { %v4477_v1 = vpack.c.bf16 %v4471_v18, %v4471_v18  ;;  %v7677_v18 = vld [vmem:[%s9557_s7 + $0x148] sm:$0xff]  }
 0x6aa   : > { %v7290_v40 = vpop.f32.mrf.mxu1  ;;  %v7308_v50 = vpop.f32.mrf.mxu0 }
 0x6ab   : > { %4856 = vrot.lane.b32.xlu0 %v4477_v1, %s7728_s23  ;;  %v7678_v1 = vld [vmem:[%s9557_s7 + $0x1e8] sm:$0xff]  }
 0x6ac   : > { %v4474_v8 = vpop.f32.mrf.mxu1  ;;  %v4612_v10 = vpop.f32.mrf.mxu0  ;;  %v7679_v40 = vld [vmem:[%s9557_s7 + $0x108] sm:$0xff]  }
 0x6ad   : > { %v7680_v50 = vld [vmem:[%s9557_s7 + $0x1a8] sm:$0xff]   ;;  %v7681_v8 = vld [vmem:[%s9557_s7 + $0x140] sm:$0xff]  }
 0x6ae   : > { %v7291_v31 = vpop.f32.mrf.mxu1  ;;  %v7309_v39 = vpop.f32.mrf.mxu0  ;;  %v7682_v10 = vld [vmem:[%s9557_s7 + $0x1e0] sm:$0xff]  }
 0x6af   : > { %v7683_v31 = vld [vmem:[%s9557_s7 + $0x100] sm:$0xff]  }
 0x6b0   : > { %v4563_v45 = vpop.f32.mrf.mxu1  ;;  %v9415_v56 = vpop.f32.mrf.mxu0  ;;  %v7684_v39 = vld [vmem:[%s9557_s7 + $0x1a0] sm:$0xff]  }
 0x6b1   : > { %v4569_v30 = vpack.c.bf16 %v4563_v45, %v4563_v45  ;;  %v4615_v45 = vpack.c.bf16 %v9412_v26, %v9412_v26  ;;  %v7687_v26 = vld [vmem:[%s9557_s7 + $0x1d0] sm:$0xff]  }
 0x6b2   : > { %v7302_v12 = vpop.f32.mrf.mxu1  ;;  %v7320_v43 = vpop.f32.mrf.mxu0 }
 0x6b3   : > { %4859 = vrot.lane.b32.xlu1 %v4569_v30, %s7728_s23  ;;  %v7685_v30 = vld [vmem:[%s9557_s7 + $0x1d8] sm:$0xff]   ;;  %v4523_v12 = vpack.c.bf16 %v9409_v15, %v9409_v15  ;;  %v7688_v15 = vld [vmem:[%s9557_s7 + $0x190] sm:$0xff]  }
 0x6b4   : > { %v4566_v19 = vpop.f32.mrf.mxu1  ;;  %v4704_v3 = vpop.f32.mrf.mxu0 }
 0x6b5   : > { %v7686_v3 = vld [vmem:[%s9557_s7 + $0x198] sm:$0xff]  }
 0x6b6   : > { %v7303_v13 = vpop.f32.mrf.mxu1  ;;  %v7321_v9 = vpop.f32.mrf.mxu0 }
 0x6b8   : > { %v4655_v2 = vpop.f32.mrf.mxu1  ;;  %v9418_v0 = vpop.f32.mrf.mxu0 }
 0x6b9   : > { %v4661_v32 = vpack.c.bf16 %v4655_v2, %v4655_v2  ;;  %v7689_v2 = vld [vmem:[%s9557_s7 + $0x1c8] sm:$0xff]  }
 0x6ba   : > { %v7314_v60 = vpop.f32.mrf.mxu1  ;;  %v7332_v63 = vpop.f32.mrf.mxu0 }
 0x6bb   : > { %4862 = vrot.lane.b32.xlu0 %v4661_v32, %s7728_s23  ;;  %v7690_v32 = vld [vmem:[%s9557_s7 + $0x188] sm:$0xff]   ;;  %v7691_v60 = vld [vmem:[%s9557_s7 + $0x1c0] sm:$0xff]  }
 0x6bc   : > { %v4658_v27 = vpop.f32.mrf.mxu1  ;;  %v4796_v5 = vpop.f32.mrf.mxu0  ;;  %v7692_v63 = vld [vmem:[%s9557_s7 + $0x180] sm:$0xff]  }
 0x6bd   : > { %v4799_v27 = vpack.c.bf16 %v9418_v0, %v9418_v0  ;;  %v4707_v5 = vpack.c.bf16 %v9415_v56, %v9415_v56 }
 0x6be   : > { %v7315_v25 = vpop.f32.mrf.mxu1  ;;  %v7333_v33 = vpop.f32.mrf.mxu0 }
 0x6c0   : > { %v4747_v7 = vpop.f32.mrf.mxu1 }
 0x6c1   : > { %v4753_v35 = vpack.c.bf16 %v4747_v7, %v4747_v7 }
 0x6c2   : > { %v7326_v37 = vpop.f32.mrf.mxu1 }
 0x6c3   : > { %4865 = vrot.lane.b32.xlu1 %v4753_v35, %s7728_s23 }
 0x6c4   : > { %v4750_v38 = vpop.f32.mrf.mxu1 }
 0x6c6   : > { %v7327_v53 = vpop.f32.mrf.mxu1 }
 0x6c8   : > { %v4839_v41 = vpop.f32.mrf.mxu1 }
 0x6c9   : > { %v4845_v14 = vpack.c.bf16 %v4839_v41, %v4839_v41 }
 0x6ca   : > { %v7338_v42 = vpop.f32.mrf.mxu1 }
 0x6cb   : > { %4868 = vrot.lane.b32.xlu0 %v4845_v14, %s7728_s23 }
 0x6cc   : > { %v4842_v6 = vpop.f32.mrf.mxu1 }
 0x6ce   : > { %v7339_v34 = vpop.f32.mrf.mxu1 }
 0x705   : > { %v4848_v47 = vpop.permute.xlu1 %4847 }
 0x706   : > { %v4872_v51 = vsel %vm2621_vm7, %v4155_v48, %v4848_v47 }
 0x70d   : > { %v4851_v59 = vpop.permute.xlu0 %4850 }
 0x70e   : > { %v4876_v29 = vsel %vm2621_vm7, %v4247_v46, %v4851_v59  ;;  %v6062_v59 = vld [vmem:[%s9558_s8] ss:$0 sm:$0xff] }
 0x70f   : > { %5453 = vmatprep.mubr.bf16.mxu0 %v4876_v29 }
 0x710   : > { %5454 = vmatmul.mubr.bf16.vlgmr.msra.gmra.mxu0 %v4872_v51 }
 0x711   : > { %6985 = vmatpush3.bf16.msra.mxu0 %v7656_v52 }
 0x712   : > { %6986 = vmatprep.subr.bf16.mxu0 %v7658_v20 }
 0x715   : > { %6987 = vmatpush3.bf16.msra.mxu0 %v7660_v17  ;;  %v4854_v23 = vpop.permute.xlu1 %4853 }
 0x716   : > { %6988 = vmatprep.subr.bf16.mxu0 %v7662_v21  ;;  %v4880_v62 = vsel %vm2621_vm7, %v4339_v22, %v4854_v23  ;;  %v6127_v23 = vld [vmem:[%s9559_s9] ss:$0 sm:$0xff] }
 0x719   : > { %6989 = vmatpush3.bf16.msra.mxu0 %v7664_v54 }
 0x71a   : > { %6990 = vmatprep.subr.bf16.mxu0 %v7666_v55 }
 0x71d   : > { %6991 = vmatpush3.bf16.msra.mxu0 %v7668_v16  ;;  %v4857_v57 = vpop.permute.xlu0 %4856 }
 0x71e   : > { %v4884_v49 = vsel %vm2621_vm7, %v4431_v28, %v4857_v57  ;;  %6992 = vmatprep.subr.bf16.mxu0 %v7669_v36 }
 0x71f   : > { %5493 = vmatprep.mubr.bf16.mxu1 %v4884_v49 }
 0x720   : > { %5494 = vmatmul.mubr.bf16.vlgmr.msra.gmra.mxu1 %v4880_v62 }
 0x721   : > { %6993 = vmatpush3.bf16.msra.mxu0 %v7671_v58  ;;  %7007 = vmatpush3.bf16.msra.mxu1 %v7672_v11 }
 0x722   : > { %6994 = vmatprep.subr.bf16.mxu0 %v7673_v61  ;;  %7008 = vmatprep.subr.bf16.mxu1 %v7674_v4 }
 0x725   : > { %6995 = vmatpush3.bf16.msra.mxu0 %v7675_v24  ;;  %7009 = vmatpush3.bf16.msra.mxu1 %v7676_v44  ;;  %v4860_v43 = vpop.permute.xlu1 %4859 }
 0x726   : > { %6996 = vmatprep.subr.bf16.mxu0 %v7677_v18  ;;  %7010 = vmatprep.subr.bf16.mxu1 %v7678_v1  ;;  %v4888_v9 = vsel %vm2621_vm7, %v4523_v12, %v4860_v43 }
 0x729   : > { %6997 = vmatpush3.bf16.msra.mxu0 %v7679_v40  ;;  %7011 = vmatpush3.bf16.msra.mxu1 %v7680_v50 }
 0x72a   : > { %6998 = vmatprep.subr.bf16.mxu0 %v7681_v8  ;;  %7012 = vmatprep.subr.bf16.mxu1 %v7682_v10 }
 0x72d   : > { %6999 = vmatpush3.bf16.msra.mxu0 %v7683_v31  ;;  %7013 = vmatpush3.bf16.msra.mxu1 %v7684_v39  ;;  %v4863_v19 = vpop.permute.xlu0 %4862 }
 0x72e   : > { %v4892_v13 = vsel %vm2621_vm7, %v4615_v45, %v4863_v19  ;;  %7014 = vmatprep.subr.bf16.mxu1 %v7685_v30 }
 0x72f   : > { %5533 = vmatprep.mubr.bf16.mxu0 %v4892_v13 }
 0x730   : > { %5534 = vmatmul.mubr.bf16.vlgmr.msra.gmra.mxu0 %v4888_v9 }
 0x731   : > { %7015 = vmatpush3.bf16.msra.mxu1 %v7686_v3 }
 0x732   : > { %7016 = vmatprep.subr.bf16.mxu1 %v7687_v26 }
 0x735   : > { %7017 = vmatpush3.bf16.msra.mxu1 %v7688_v15  ;;  %v4866_v25 = vpop.permute.xlu1 %4865 }
 0x736   : > { %7018 = vmatprep.subr.bf16.mxu1 %v7689_v2  ;;  %v4896_v35 = vsel %vm2621_vm7, %v4707_v5, %v4866_v25 }
 0x739   : > { %7019 = vmatpush3.bf16.msra.mxu1 %v7690_v32 }
 0x73a   : > { %7020 = vmatprep.subr.bf16.mxu1 %v7691_v60 }
 0x73d   : > { %7021 = vmatpush3.bf16.msra.mxu1 %v7692_v63  ;;  %v4869_v33 = vpop.permute.xlu0 %4868 }
 0x73e   : > { %v4900_v7 = vsel %vm2621_vm7, %v4799_v27, %v4869_v33 }
 0x73f   : > { %5573 = vmatprep.mubr.bf16.mxu1 %v4900_v7 }
 0x740   : > { %5574 = vmatmul.mubr.bf16.vlgmr.msra.gmra.mxu1 %v4896_v35 }
 0x7d0   : > { %v6956_v37 = vpop.f32.mrf.mxu0 }
 0x7d2   : > { %v6957_v38 = vpop.f32.mrf.mxu0 }
 0x7d3   : > { %v6958_v48 = vadd.f32 %v6957_v38, %v6956_v37 }
 0x7d4   : > { %v6959_v53 = vpop.f32.mrf.mxu0 }
 0x7d5   : > { %v5456_v29 = vadd.f32 %v6958_v48, %v6062_v59 }
 0x7d6   : > { %v6960_v41 = vpop.f32.mrf.mxu0 }
 0x7e0   : > { %v6978_v14 = vpop.f32.mrf.mxu1 }
 0x7e2   : > { %v6979_v42 = vpop.f32.mrf.mxu1 }
 0x7e3   : > { %v6980_v52 = vadd.f32 %v6979_v42, %v6978_v14 }
 0x7e4   : > { %v6981_v0 = vpop.f32.mrf.mxu1 }
 0x7e5   : > { %v5496_v17 = vadd.f32 %v6980_v52, %v5456_v29 }
 0x7e6   : > { %v6982_v6 = vpop.f32.mrf.mxu1 }
 0x7f0   : > { %v7000_v34 = vpop.f32.mrf.mxu0 }
 0x7f2   : > { %v7001_v46 = vpop.f32.mrf.mxu0 }
 0x7f3   : > { %v7002_v20 = vadd.f32 %v7001_v46, %v7000_v34 }
 0x7f4   : > { %v7003_v56 = vpop.f32.mrf.mxu0 }
 0x7f5   : > { %v5536_v54 = vadd.f32 %v7002_v20, %v5496_v17 }
 0x7f6   : > { %v7004_v47 = vpop.f32.mrf.mxu0 }
 0x800   : > { %v7022_v51 = vpop.f32.mrf.mxu1 }
 0x802   : > { %v7023_v21 = vpop.f32.mrf.mxu1 }
 0x803   : > { %v7024_v55 = vadd.f32 %v7023_v21, %v7022_v51 }
 0x804   : > { %v7025_v16 = vpop.f32.mrf.mxu1 }
 0x805   : > { %v5576_v28 = vadd.f32 %v7024_v55, %v5536_v54 }
 0x806   : > { %v7026_v36 = vpop.f32.mrf.mxu1 }
 0x807   : > { %v5581_v22 = vmul.f32 0.2, %v5576_v28 }
 0x809   : > { %v5582_v57 = vmax.f32 %v5576_v28, %v5581_v22 }
 0x80b   : > { %v5590_v58 = vmul.f32 %v6127_v23, %v5582_v57 }
 0x80d   : > { %v5592_v11 = vsel %vm5591_vm0, %v5590_v58, 0.0 }
 0x80e   : > { %5593 = vadd.xlane.f32.xlu0 %v5592_v11 }
 0x897   : > { %v5594_v49 = vpop.xlane.xlu0 %5593 }
 0x898   : > { %v6128_v61 = vmul.f32 -1.442695, %v5594_v49 }
 0x89a   : > { %7693 = vpow2.f32 %v6128_v61 }
 0x8a7   : > { %v7694_v4 = vpop.eup %7693 }
 0x8a8   : > { %v5598_v62 = vadd.f32 1.0, %v7694_v4 }
 0x8aa   : > { %7695 = vrcp.f32 %v5598_v62 }
 0x8b7   : > { %v7696_v24 = vpop.eup %7695 }
 0x8b8   : > { %5602 = vst.msk [vmem:[%s357_s30] sm:$0xf] %vm5601_vm1, %v7696_v24 }
 0x8b9 PF: > { %s20_s13 = sadd.s32 1, %s7719_s13  }
 0x8ba   : > { %p17_p4 = scmp.ge.s32.totalorder %s20_s13, 4  }
 0x8bc   :  { %19 = sbr.rel (!%p17_p4) target bundleno = 1 (0x1), region = 135 }

</bundles_post_ra>
